<compile_context>
chip_gen: v7x
topology: tpu7x:2x2x1
jax: 0.10.0
libtpu: 0.0.40
codegen_flags: <defaults>
</compile_context>

<pallas_src>
import jax
import jax.numpy as jnp
from jax.experimental import pallas as pl
from jax.experimental.pallas import tpu as pltpu


# ----------------------------------------------------------------------------
# Fused block kernel (one image per grid step)
# ----------------------------------------------------------------------------
def _make_block_kernel(stride, Wh, HWh, Ho, Wo, residual, conv_shortcut):
    s = stride
    nph = s * s          # number of stride-phase planes (1 or 4)
    ROWS = 128           # row chunk for the 1x1 matmul stages (bounds vreg use)

    def kernel(*refs):
        xph_ref, m_ref, w1_ref, b1_ref, w2_ref, b2_ref, w3_ref, b3_ref = refs[:8]
        idx = 8
        xr_ref = ws_ref = bs_ref = None
        if residual:
            xr_ref = refs[idx]; idx += 1
            if conv_shortcut:
                ws_ref, bs_ref = refs[idx], refs[idx + 1]; idx += 2
        o_ref, hph_ref, g_ref = refs[idx], refs[idx + 1], refs[idx + 2]

        # ------ stage 1: 1x1 expand + BN1 + ReLU6 on padded phase planes ------
        w1 = w1_ref[...]                       # (cin, cmid), BN1 scale folded
        b1 = b1_ref[...]                       # (1, cmid)
        for p in range(nph):                   # static unroll over phases
            r0 = 0
            while r0 < HWh:                    # static row chunks
                rows = min(ROWS, HWh - r0)
                xc = xph_ref[0, p, pl.ds(r0, rows), :]
                h = jnp.dot(xc, w1, preferred_element_type=jnp.float32)
                h = jnp.clip(h + b1, 0.0, 6.0)
                # mask zeroes the spatial halo so the depthwise sees 0-padding
                hph_ref[p, pl.ds(r0, rows), :] = h * m_ref[p, pl.ds(r0, rows), :]
                r0 += rows

        # ------ stage 2: depthwise 3x3 + BN2 + ReLU6 (unrolled 9-tap MAC) -----
        # stride is folded into the phase decomposition: tap (dy, dx) of output
        # row i is a unit-stride window of phase (dy % s, dx % s).
        w2 = [w2_ref[k] for k in range(9)]     # 9 x (1, cmid), BN2 folded
        b2 = b2_ref[...]                       # (1, cmid)
        for i in range(Ho):                    # static unroll over output rows
            acc = None
            for dy in range(3):
                for dx in range(3):
                    p = (dy % s) * s + (dx % s)
                    off = (i + dy // s) * Wh + (dx // s)
                    t = hph_ref[p, pl.ds(off, Wo), :] * w2[dy * 3 + dx]
                    acc = t if acc is None else acc + t
            g_ref[pl.ds(i * Wo, Wo), :] = jnp.clip(acc + b2, 0.0, 6.0)

        # ------ stage 3: 1x1 project + BN3 + ReLU6 (+ shortcut / residual) ----
        w3 = w3_ref[...]                       # (cmid, cout), BN3 scale folded
        b3 = b3_ref[...]                       # (1, cout)
        if conv_shortcut:
            ws = ws_ref[...]                   # (cin, cout), BNs scale folded
            bs = bs_ref[...]                   # (1, cout)
        M = Ho * Wo
        r0 = 0
        while r0 < M:                          # static row chunks
            rows = min(ROWS, M - r0)
            g = g_ref[pl.ds(r0, rows), :]
            y = jnp.dot(g, w3, preferred_element_type=jnp.float32)
            y = jnp.clip(y + b3, 0.0, 6.0)
            if residual:
                xr = xr_ref[0, pl.ds(r0, rows), :]
                if conv_shortcut:
                    y = y + (jnp.dot(xr, ws, preferred_element_type=jnp.float32) + bs)
                else:
                    y = y + xr
            o_ref[0, pl.ds(r0, rows), :] = y
            r0 += rows

    return kernel


# ----------------------------------------------------------------------------
# Wrapper-side glue (cheap XLA ops: pad, phase split, BN folding, reshapes)
# ----------------------------------------------------------------------------
def _phase_split_padded(x_nhwc, s):
    """Zero-pad spatially by 1, split into the s*s stride phases, flatten.

    Returns:
      xph : (N, s*s, HWhp, C)  phase planes, rows flattened (row-major), with
            the flat row count padded up to a multiple of 8.
      mph : (s*s, HWhp, 1)     1.0 at real data positions, 0.0 at halo/padding.
      Wh  : columns per geometric row of a phase plane (for tap offset math).
      HWhp: padded flat row count.
    """
    N, H, W, C = x_nhwc.shape
    Hp = pl.cdiv(H + 2, s) * s
    Wp = pl.cdiv(W + 2, s) * s
    pad = ((0, 0), (1, Hp - H - 1), (1, Wp - W - 1), (0, 0))
    xp = jnp.pad(x_nhwc, pad)
    mp = jnp.pad(jnp.ones((1, H, W, 1), jnp.float32), pad)
    Hh, Wh = Hp // s, Wp // s
    xpl = [xp[:, pr::s, pc::s, :] for pr in range(s) for pc in range(s)]
    mpl = [mp[:, pr::s, pc::s, :] for pr in range(s) for pc in range(s)]
    xph = jnp.stack(xpl, axis=1).reshape(N, s * s, Hh * Wh, C)
    mph = jnp.stack(mpl, axis=1).reshape(1, s * s, Hh * Wh, 1)[0]
    HWh = Hh * Wh
    HWhp = pl.cdiv(HWh, 8) * 8
    if HWhp != HWh:
        xph = jnp.pad(xph, ((0, 0), (0, 0), (0, HWhp - HWh), (0, 0)))
        mph = jnp.pad(mph, ((0, 0), (0, HWhp - HWh), (0, 0)))
    return xph, mph, Wh, HWhp


def fold_bn(bn, eps=1e-5):
    gamma, beta, mean, var = bn
    scale = gamma / jnp.sqrt(var + eps)
    bias = beta - mean * scale
    return scale, bias


def block_forward(x_nchw, params, expansion, cin, cout, stride):
    x = jnp.transpose(x_nchw, (0, 2, 3, 1)).astype(jnp.float32)   # NCHW -> NHWC
    N, H, W, _ = x.shape
    cmid = expansion * cin
    s = stride
    Ho = (H - 1) // s + 1
    Wo = (W - 1) // s + 1
    residual = (s == 1)
    conv_shortcut = residual and (cin != cout)

    # --- fold inference BatchNorm scale into the conv weights (bias kept) ---
    s1, b1 = fold_bn(params["bn1"])
    w1f = params["w1"][:, :, 0, 0].T * s1[None, :]                 # (cin, cmid)
    s2, b2 = fold_bn(params["bn2"])
    w2f = (params["w2"][:, 0].reshape(cmid, 9) * s2[:, None]).T    # (9, cmid)
    w2f = w2f.reshape(9, 1, cmid)
    s3, b3 = fold_bn(params["bn3"])
    w3f = params["w3"][:, :, 0, 0].T * s3[None, :]                 # (cmid, cout)

    # --- stride-phase split of the zero-padded input (cheap: cin channels) ---
    xph, mph, Wh, HWhp = _phase_split_padded(x, s)
    nph = s * s

    in_specs = [
        pl.BlockSpec((1, nph, HWhp, cin), lambda n: (n, 0, 0, 0)),   # x phases
        pl.BlockSpec((nph, HWhp, 1), lambda n: (0, 0, 0)),           # pad mask
        pl.BlockSpec((cin, cmid), lambda n: (0, 0)),                 # w1 folded
        pl.BlockSpec((1, cmid), lambda n: (0, 0)),                   # b1
        pl.BlockSpec((9, 1, cmid), lambda n: (0, 0, 0)),             # w2 folded
        pl.BlockSpec((1, cmid), lambda n: (0, 0)),                   # b2
        pl.BlockSpec((cmid, cout), lambda n: (0, 0)),                # w3 folded
        pl.BlockSpec((1, cout), lambda n: (0, 0)),                   # b3
    ]
    args = [xph, mph, w1f, b1.reshape(1, cmid), w2f, b2.reshape(1, cmid),
            w3f, b3.reshape(1, cout)]

    if residual:
        in_specs.append(pl.BlockSpec((1, H * W, cin), lambda n: (n, 0, 0)))
        args.append(x.reshape(N, H * W, cin))                        # shortcut in
        if conv_shortcut:
            ss, bsc = fold_bn(params["bns"])
            wsf = params["ws"][:, :, 0, 0].T * ss[None, :]           # (cin, cout)
            in_specs += [pl.BlockSpec((cin, cout), lambda n: (0, 0)),
                         pl.BlockSpec((1, cout), lambda n: (0, 0))]
            args += [wsf, bsc.reshape(1, cout)]

    kernel = _make_block_kernel(s, Wh, HWhp, Ho, Wo, residual, conv_shortcut)
    out2d = pl.pallas_call(
        kernel,
        out_shape=jax.ShapeDtypeStruct((N, Ho * Wo, cout), jnp.float32),
        grid=(N,),
        in_specs=in_specs,
        out_specs=pl.BlockSpec((1, Ho * Wo, cout), lambda n: (n, 0, 0)),
        scratch_shapes=[
            pltpu.VMEM((nph, HWhp, cmid), jnp.float32),   # padded expanded act.
            pltpu.VMEM((Ho * Wo, cmid), jnp.float32),     # depthwise output
        ],
        compiler_params=pltpu.CompilerParams(dimension_semantics=("parallel",)),
    )(*args)

    out = out2d.reshape(N, Ho, Wo, cout)
    return jnp.transpose(out, (0, 3, 1, 2))                          # NHWC -> NCHW


# ----------------------------------------------------------------------------
# Deterministic parameter init (shapes match the PyTorch module's __init__)
# ----------------------------------------------------------------------------
def init_block_params(key, expansion, cin, cout, stride):
    cmid = expansion * cin
    ks = jax.random.split(key, 8)

    def bn(k, c):
        k1, k2, k3, k4 = jax.random.split(k, 4)
        gamma = 1.0 + 0.1 * jax.random.normal(k1, (c,), jnp.float32)
        beta = 0.1 * jax.random.normal(k2, (c,), jnp.float32)
        mean = 0.1 * jax.random.normal(k3, (c,), jnp.float32)
        var = jax.random.uniform(k4, (c,), jnp.float32, 0.5, 1.5)
        return gamma, beta, mean, var

    params = {
        "w1": 0.1 * jax.random.normal(ks[0], (cmid, cin, 1, 1), jnp.float32),
        "bn1": bn(ks[1], cmid),
        "w2": 0.1 * jax.random.normal(ks[2], (cmid, 1, 3, 3), jnp.float32),
        "bn2": bn(ks[3], cmid),
        "w3": 0.1 * jax.random.normal(ks[4], (cout, cmid, 1, 1), jnp.float32),
        "bn3": bn(ks[5], cout),
    }
    if stride == 1 and cin != cout:
        params["ws"] = 0.1 * jax.random.normal(ks[6], (cout, cin, 1, 1), jnp.float32)
        params["bns"] = bn(ks[7], cout)
    return params


# ----------------------------------------------------------------------------
# Pure-JAX reference (lax.conv) for correctness check
# ----------------------------------------------------------------------------
def ref_block(x_nchw, params, expansion, cin, cout, stride, eps=1e-5):
    x = jnp.transpose(x_nchw, (0, 2, 3, 1))

    def bn_apply(y, bn):
        gamma, beta, mean, var = bn
        return (y - mean) / jnp.sqrt(var + eps) * gamma + beta

    def conv(x, w_oihw, stride, padding, groups):
        w = jnp.transpose(w_oihw, (2, 3, 1, 0))  # OIHW -> HWIO
        return jax.lax.conv_general_dilated(
            x, w, window_strides=(stride, stride), padding=padding,
            dimension_numbers=("NHWC", "HWIO", "NHWC"),
            feature_group_count=groups)

    cmid = expansion * cin
    h = jnp.clip(bn_apply(conv(x, params["w1"], 1, "VALID", 1), params["bn1"]), 0, 6)
    h = jnp.clip(bn_apply(conv(h, params["w2"], stride, ((1, 1), (1, 1)), cmid),
                          params["bn2"]), 0, 6)
    h = jnp.clip(bn_apply(conv(h, params["w3"], 1, "VALID", 1), params["bn3"]), 0, 6)
    if stride == 1:
        sc = (bn_apply(conv(x, params["ws"], 1, "VALID", 1), params["bns"])
              if cin != cout else x)
        h = h + sc
    return jnp.transpose(h, (0, 3, 1, 2))


# ----------------------------------------------------------------------------
if __name__ == "__main__":
    key = jax.random.PRNGKey(0)
    kx, kp1, kp2, kp3 = jax.random.split(key, 4)

    # Case 1: stride=1, in != out -> conv shortcut + residual add.
    expansion, cin, cout, stride = 6, 8, 16, 1
    N, H, W = 2, 16, 16
    x = jax.random.normal(kx, (N, cin, H, W), dtype=jnp.float32)
    params = init_block_params(kp1, expansion, cin, cout, stride)
    out = jax.block_until_ready(block_forward(x, params, expansion, cin, cout, stride))
    ref = ref_block(x, params, expansion, cin, cout, stride)
    assert out.shape == (N, cout, H, W)
    assert jnp.allclose(out, ref, atol=1e-4, rtol=1e-4)

    # Case 2: stride=2 -> no residual path, spatial downsample.
    expansion2, cin2, cout2, stride2 = 4, 8, 24, 2
    x2 = jax.random.normal(kx, (N, cin2, H, W), dtype=jnp.float32)
    params2 = init_block_params(kp2, expansion2, cin2, cout2, stride2)
    out2 = jax.block_until_ready(
        block_forward(x2, params2, expansion2, cin2, cout2, stride2))
    ref2 = ref_block(x2, params2, expansion2, cin2, cout2, stride2)
    assert out2.shape == (N, cout2, H // 2, W // 2)
    assert jnp.allclose(out2, ref2, atol=1e-4, rtol=1e-4)

    # Case 3: stride=1, in == out -> identity shortcut.
    expansion3, cin3, cout3, stride3 = 2, 16, 16, 1
    H3 = W3 = 8
    x3 = jax.random.normal(kx, (N, cin3, H3, W3), dtype=jnp.float32)
    params3 = init_block_params(kp3, expansion3, cin3, cout3, stride3)
    out3 = jax.block_until_ready(
        block_forward(x3, params3, expansion3, cin3, cout3, stride3))
    ref3 = ref_block(x3, params3, expansion3, cin3, cout3, stride3)
    assert out3.shape == (N, cout3, H3, W3)
    assert jnp.allclose(out3, ref3, atol=1e-4, rtol=1e-4)

    print("KERNEL_OK")
</pallas_src>

<mosaic_0001>
module attributes {stable_mosaic.version = 11 : i64} {
  func.func @kernel(%arg0: i32, %arg1: memref<1x1x328x8xf32, #tpu.memory_space<vmem>>, %arg2: memref<1x328x1xf32, #tpu.memory_space<vmem>>, %arg3: memref<8x48xf32, #tpu.memory_space<vmem>>, %arg4: memref<1x48xf32, #tpu.memory_space<vmem>>, %arg5: memref<9x1x48xf32, #tpu.memory_space<vmem>>, %arg6: memref<1x48xf32, #tpu.memory_space<vmem>>, %arg7: memref<48x16xf32, #tpu.memory_space<vmem>>, %arg8: memref<1x16xf32, #tpu.memory_space<vmem>>, %arg9: memref<1x256x8xf32, #tpu.memory_space<vmem>>, %arg10: memref<8x16xf32, #tpu.memory_space<vmem>>, %arg11: memref<1x16xf32, #tpu.memory_space<vmem>>, %arg12: memref<1x256x16xf32, #tpu.memory_space<vmem>>, %arg13: memref<1x328x48xf32, #tpu.memory_space<vmem>>, %arg14: memref<256x48xf32, #tpu.memory_space<vmem>>) attributes {dimension_semantics = [#tpu.dimension_semantics<parallel>], iteration_bounds = array<i64: 2>, scalar_prefetch = 0 : i64, scratch_operands = 2 : i64, tpu.core_type = #tpu.core_type<tc>, window_params = [{transform_indices = @transform_0, window_bounds = array<i64: 1, 1, 328, 8>}, {pipeline_mode = #tpu.pipeline_mode<synchronous>, transform_indices = @transform_1, window_bounds = array<i64: 1, 328, 1>}, {pipeline_mode = #tpu.pipeline_mode<synchronous>, transform_indices = @transform_2, window_bounds = array<i64: 8, 48>}, {pipeline_mode = #tpu.pipeline_mode<synchronous>, transform_indices = @transform_3, window_bounds = array<i64: 1, 48>}, {pipeline_mode = #tpu.pipeline_mode<synchronous>, transform_indices = @transform_4, window_bounds = array<i64: 9, 1, 48>}, {pipeline_mode = #tpu.pipeline_mode<synchronous>, transform_indices = @transform_5, window_bounds = array<i64: 1, 48>}, {pipeline_mode = #tpu.pipeline_mode<synchronous>, transform_indices = @transform_6, window_bounds = array<i64: 48, 16>}, {pipeline_mode = #tpu.pipeline_mode<synchronous>, transform_indices = @transform_7, window_bounds = array<i64: 1, 16>}, {transform_indices = @transform_8, window_bounds = array<i64: 1, 256, 8>}, {pipeline_mode = #tpu.pipeline_mode<synchronous>, transform_indices = @transform_9, window_bounds = array<i64: 8, 16>}, {pipeline_mode = #tpu.pipeline_mode<synchronous>, transform_indices = @transform_10, window_bounds = array<i64: 1, 16>}, {transform_indices = @transform_11, window_bounds = array<i64: 1, 256, 16>}]} {
    %c0 = arith.constant 0 : index
    %c0_0 = arith.constant 0 : index
    %0 = vector.load %arg3[%c0, %c0_0] : memref<8x48xf32, #tpu.memory_space<vmem>>, vector<8x48xf32>
    %c0_1 = arith.constant 0 : index
    %c0_2 = arith.constant 0 : index
    %1 = vector.load %arg4[%c0_1, %c0_2] : memref<1x48xf32, #tpu.memory_space<vmem>>, vector<1x48xf32>
    %c0_3 = arith.constant 0 : index
    %c0_4 = arith.constant 0 : index
    %c0_5 = arith.constant 0 : index
    %c0_6 = arith.constant 0 : index
    %2 = vector.load %arg1[%c0_3, %c0_4, %c0_5, %c0_6] : memref<1x1x328x8xf32, #tpu.memory_space<vmem>>, vector<1x1x128x8xf32>
    %3 = vector.shape_cast %2 : vector<1x1x128x8xf32> to vector<128x8xf32>
    %cst = arith.constant dense<0.000000e+00> : vector<128x48xf32>
    %4 = tpu.matmul %3, %0, %cst {dimension_numbers = #tpu.dot_dimension_numbers<[1], [0], [0], [1], [0, 0, 1, 1], [], []>} : vector<128x8xf32>, vector<8x48xf32>, vector<128x48xf32> -> vector<128x48xf32>
    %5 = vector.broadcast %1 : vector<1x48xf32> to vector<128x48xf32>
    %6 = arith.addf %4, %5 : vector<128x48xf32>
    %cst_7 = arith.constant 0.000000e+00 : f32
    %cst_8 = arith.constant 6.000000e+00 : f32
    %7 = vector.broadcast %cst_7 : f32 to vector<128x48xf32>
    %8 = arith.maximumf %7, %6 : vector<128x48xf32>
    %9 = vector.broadcast %cst_8 : f32 to vector<128x48xf32>
    %10 = arith.minimumf %9, %8 : vector<128x48xf32>
    %c0_9 = arith.constant 0 : index
    %c0_10 = arith.constant 0 : index
    %c0_11 = arith.constant 0 : index
    %11 = vector.load %arg2[%c0_9, %c0_10, %c0_11] : memref<1x328x1xf32, #tpu.memory_space<vmem>>, vector<1x128x1xf32>
    %12 = vector.shape_cast %11 : vector<1x128x1xf32> to vector<128x1xf32>
    %13 = vector.broadcast %12 : vector<128x1xf32> to vector<128x48xf32>
    %14 = arith.mulf %10, %13 : vector<128x48xf32>
    %c0_12 = arith.constant 0 : index
    %c0_13 = arith.constant 0 : index
    %c0_14 = arith.constant 0 : index
    %15 = vector.load %arg13[%c0_12, %c0_13, %c0_14] : memref<1x328x48xf32, #tpu.memory_space<vmem>>, vector<1x128x48xf32>
    %16 = vector.shape_cast %15 : vector<1x128x48xf32> to vector<128x48xf32>
    %17 = vector.shape_cast %14 : vector<128x48xf32> to vector<1x128x48xf32>
    tpu.vector_store %arg13[%c0_12, %c0_13, %c0_14], %17 {strides = array<i32>} : memref<1x328x48xf32, #tpu.memory_space<vmem>>, vector<1x128x48xf32>,
    %c0_15 = arith.constant 0 : index
    %c0_16 = arith.constant 0 : index
    %c128 = arith.constant 128 : index
    %c0_17 = arith.constant 0 : index
    %18 = vector.load %arg1[%c0_15, %c0_16, %c128, %c0_17] : memref<1x1x328x8xf32, #tpu.memory_space<vmem>>, vector<1x1x128x8xf32>
    %19 = vector.shape_cast %18 : vector<1x1x128x8xf32> to vector<128x8xf32>
    %cst_18 = arith.constant dense<0.000000e+00> : vector<128x48xf32>
    %20 = tpu.matmul %19, %0, %cst_18 {dimension_numbers = #tpu.dot_dimension_numbers<[1], [0], [0], [1], [0, 0, 1, 1], [], []>} : vector<128x8xf32>, vector<8x48xf32>, vector<128x48xf32> -> vector<128x48xf32>
    %21 = vector.broadcast %1 : vector<1x48xf32> to vector<128x48xf32>
    %22 = arith.addf %20, %21 : vector<128x48xf32>
    %cst_19 = arith.constant 0.000000e+00 : f32
    %cst_20 = arith.constant 6.000000e+00 : f32
    %23 = vector.broadcast %cst_19 : f32 to vector<128x48xf32>
    %24 = arith.maximumf %23, %22 : vector<128x48xf32>
    %25 = vector.broadcast %cst_20 : f32 to vector<128x48xf32>
    %26 = arith.minimumf %25, %24 : vector<128x48xf32>
    %c0_21 = arith.constant 0 : index
    %c128_22 = arith.constant 128 : index
    %c0_23 = arith.constant 0 : index
    %27 = vector.load %arg2[%c0_21, %c128_22, %c0_23] : memref<1x328x1xf32, #tpu.memory_space<vmem>>, vector<1x128x1xf32>
    %28 = vector.shape_cast %27 : vector<1x128x1xf32> to vector<128x1xf32>
    %29 = vector.broadcast %28 : vector<128x1xf32> to vector<128x48xf32>
    %30 = arith.mulf %26, %29 : vector<128x48xf32>
    %c0_24 = arith.constant 0 : index
    %c128_25 = arith.constant 128 : index
    %c0_26 = arith.constant 0 : index
    %31 = vector.load %arg13[%c0_24, %c128_25, %c0_26] : memref<1x328x48xf32, #tpu.memory_space<vmem>>, vector<1x128x48xf32>
    %32 = vector.shape_cast %31 : vector<1x128x48xf32> to vector<128x48xf32>
    %33 = vector.shape_cast %30 : vector<128x48xf32> to vector<1x128x48xf32>
    tpu.vector_store %arg13[%c0_24, %c128_25, %c0_26], %33 {strides = array<i32>} : memref<1x328x48xf32, #tpu.memory_space<vmem>>, vector<1x128x48xf32>,
    %c0_27 = arith.constant 0 : index
    %c0_28 = arith.constant 0 : index
    %c256 = arith.constant 256 : index
    %c0_29 = arith.constant 0 : index
    %34 = vector.load %arg1[%c0_27, %c0_28, %c256, %c0_29] : memref<1x1x328x8xf32, #tpu.memory_space<vmem>>, vector<1x1x72x8xf32>
    %35 = vector.shape_cast %34 : vector<1x1x72x8xf32> to vector<72x8xf32>
    %cst_30 = arith.constant dense<0.000000e+00> : vector<72x48xf32>
    %36 = tpu.matmul %35, %0, %cst_30 {dimension_numbers = #tpu.dot_dimension_numbers<[1], [0], [0], [1], [0, 0, 1, 1], [], []>} : vector<72x8xf32>, vector<8x48xf32>, vector<72x48xf32> -> vector<72x48xf32>
    %37 = vector.broadcast %1 : vector<1x48xf32> to vector<72x48xf32>
    %38 = arith.addf %36, %37 : vector<72x48xf32>
    %cst_31 = arith.constant 0.000000e+00 : f32
    %cst_32 = arith.constant 6.000000e+00 : f32
    %39 = vector.broadcast %cst_31 : f32 to vector<72x48xf32>
    %40 = arith.maximumf %39, %38 : vector<72x48xf32>
    %41 = vector.broadcast %cst_32 : f32 to vector<72x48xf32>
    %42 = arith.minimumf %41, %40 : vector<72x48xf32>
    %c0_33 = arith.constant 0 : index
    %c256_34 = arith.constant 256 : index
    %c0_35 = arith.constant 0 : index
    %43 = vector.load %arg2[%c0_33, %c256_34, %c0_35] : memref<1x328x1xf32, #tpu.memory_space<vmem>>, vector<1x72x1xf32>
    %44 = vector.shape_cast %43 : vector<1x72x1xf32> to vector<72x1xf32>
    %45 = vector.broadcast %44 : vector<72x1xf32> to vector<72x48xf32>
    %46 = arith.mulf %42, %45 : vector<72x48xf32>
    %c0_36 = arith.constant 0 : index
    %c256_37 = arith.constant 256 : index
    %c0_38 = arith.constant 0 : index
    %47 = vector.load %arg13[%c0_36, %c256_37, %c0_38] : memref<1x328x48xf32, #tpu.memory_space<vmem>>, vector<1x72x48xf32>
    %48 = vector.shape_cast %47 : vector<1x72x48xf32> to vector<72x48xf32>
    %49 = vector.shape_cast %46 : vector<72x48xf32> to vector<1x72x48xf32>
    tpu.vector_store %arg13[%c0_36, %c256_37, %c0_38], %49 {strides = array<i32>} : memref<1x328x48xf32, #tpu.memory_space<vmem>>, vector<1x72x48xf32>,
    %c0_39 = arith.constant 0 : index
    %c0_40 = arith.constant 0 : index
    %c0_41 = arith.constant 0 : index
    %50 = vector.load %arg5[%c0_39, %c0_40, %c0_41] : memref<9x1x48xf32, #tpu.memory_space<vmem>>, vector<1x1x48xf32>
    %51 = vector.shape_cast %50 : vector<1x1x48xf32> to vector<1x48xf32>
    %c1 = arith.constant 1 : index
    %c0_42 = arith.constant 0 : index
    %c0_43 = arith.constant 0 : index
    %52 = vector.load %arg5[%c1, %c0_42, %c0_43] : memref<9x1x48xf32, #tpu.memory_space<vmem>>, vector<1x1x48xf32>
    %53 = vector.shape_cast %52 : vector<1x1x48xf32> to vector<1x48xf32>
    %c2 = arith.constant 2 : index
    %c0_44 = arith.constant 0 : index
    %c0_45 = arith.constant 0 : index
    %54 = vector.load %arg5[%c2, %c0_44, %c0_45] : memref<9x1x48xf32, #tpu.memory_space<vmem>>, vector<1x1x48xf32>
    %55 = vector.shape_cast %54 : vector<1x1x48xf32> to vector<1x48xf32>
    %c3 = arith.constant 3 : index
    %c0_46 = arith.constant 0 : index
    %c0_47 = arith.constant 0 : index
    %56 = vector.load %arg5[%c3, %c0_46, %c0_47] : memref<9x1x48xf32, #tpu.memory_space<vmem>>, vector<1x1x48xf32>
    %57 = vector.shape_cast %56 : vector<1x1x48xf32> to vector<1x48xf32>
    %c4 = arith.constant 4 : index
    %c0_48 = arith.constant 0 : index
    %c0_49 = arith.constant 0 : index
    %58 = vector.load %arg5[%c4, %c0_48, %c0_49] : memref<9x1x48xf32, #tpu.memory_space<vmem>>, vector<1x1x48xf32>
    %59 = vector.shape_cast %58 : vector<1x1x48xf32> to vector<1x48xf32>
    %c5 = arith.constant 5 : index
    %c0_50 = arith.constant 0 : index
    %c0_51 = arith.constant 0 : index
    %60 = vector.load %arg5[%c5, %c0_50, %c0_51] : memref<9x1x48xf32, #tpu.memory_space<vmem>>, vector<1x1x48xf32>
    %61 = vector.shape_cast %60 : vector<1x1x48xf32> to vector<1x48xf32>
    %c6 = arith.constant 6 : index
    %c0_52 = arith.constant 0 : index
    %c0_53 = arith.constant 0 : index
    %62 = vector.load %arg5[%c6, %c0_52, %c0_53] : memref<9x1x48xf32, #tpu.memory_space<vmem>>, vector<1x1x48xf32>
    %63 = vector.shape_cast %62 : vector<1x1x48xf32> to vector<1x48xf32>
    %c7 = arith.constant 7 : index
    %c0_54 = arith.constant 0 : index
    %c0_55 = arith.constant 0 : index
    %64 = vector.load %arg5[%c7, %c0_54, %c0_55] : memref<9x1x48xf32, #tpu.memory_space<vmem>>, vector<1x1x48xf32>
    %65 = vector.shape_cast %64 : vector<1x1x48xf32> to vector<1x48xf32>
    %c8 = arith.constant 8 : index
    %c0_56 = arith.constant 0 : index
    %c0_57 = arith.constant 0 : index
    %66 = vector.load %arg5[%c8, %c0_56, %c0_57] : memref<9x1x48xf32, #tpu.memory_space<vmem>>, vector<1x1x48xf32>
    %67 = vector.shape_cast %66 : vector<1x1x48xf32> to vector<1x48xf32>
    %c0_58 = arith.constant 0 : index
    %c0_59 = arith.constant 0 : index
    %68 = vector.load %arg6[%c0_58, %c0_59] : memref<1x48xf32, #tpu.memory_space<vmem>>, vector<1x48xf32>
    %c0_60 = arith.constant 0 : index
    %c0_61 = arith.constant 0 : index
    %c0_62 = arith.constant 0 : index
    %69 = vector.load %arg13[%c0_60, %c0_61, %c0_62] : memref<1x328x48xf32, #tpu.memory_space<vmem>>, vector<1x16x48xf32>
    %70 = vector.shape_cast %69 : vector<1x16x48xf32> to vector<16x48xf32>
    %71 = vector.broadcast %51 : vector<1x48xf32> to vector<16x48xf32>
    %72 = arith.mulf %70, %71 : vector<16x48xf32>
    %c0_63 = arith.constant 0 : index
    %c1_64 = arith.constant 1 : index
    %c0_65 = arith.constant 0 : index
    %73 = vector.load %arg13[%c0_63, %c1_64, %c0_65] : memref<1x328x48xf32, #tpu.memory_space<vmem>>, vector<1x16x48xf32>
    %74 = vector.shape_cast %73 : vector<1x16x48xf32> to vector<16x48xf32>
    %75 = vector.broadcast %53 : vector<1x48xf32> to vector<16x48xf32>
    %76 = arith.mulf %74, %75 : vector<16x48xf32>
    %77 = arith.addf %72, %76 : vector<16x48xf32>
    %c0_66 = arith.constant 0 : index
    %c2_67 = arith.constant 2 : index
    %c0_68 = arith.constant 0 : index
    %78 = vector.load %arg13[%c0_66, %c2_67, %c0_68] : memref<1x328x48xf32, #tpu.memory_space<vmem>>, vector<1x16x48xf32>
    %79 = vector.shape_cast %78 : vector<1x16x48xf32> to vector<16x48xf32>
    %80 = vector.broadcast %55 : vector<1x48xf32> to vector<16x48xf32>
    %81 = arith.mulf %79, %80 : vector<16x48xf32>
    %82 = arith.addf %77, %81 : vector<16x48xf32>
    %c0_69 = arith.constant 0 : index
    %c18 = arith.constant 18 : index
    %c0_70 = arith.constant 0 : index
    %83 = vector.load %arg13[%c0_69, %c18, %c0_70] : memref<1x328x48xf32, #tpu.memory_space<vmem>>, vector<1x16x48xf32>
    %84 = vector.shape_cast %83 : vector<1x16x48xf32> to vector<16x48xf32>
    %85 = vector.broadcast %57 : vector<1x48xf32> to vector<16x48xf32>
    %86 = arith.mulf %84, %85 : vector<16x48xf32>
    %87 = arith.addf %82, %86 : vector<16x48xf32>
    %c0_71 = arith.constant 0 : index
    %c19 = arith.constant 19 : index
    %c0_72 = arith.constant 0 : index
    %88 = vector.load %arg13[%c0_71, %c19, %c0_72] : memref<1x328x48xf32, #tpu.memory_space<vmem>>, vector<1x16x48xf32>
    %89 = vector.shape_cast %88 : vector<1x16x48xf32> to vector<16x48xf32>
    %90 = vector.broadcast %59 : vector<1x48xf32> to vector<16x48xf32>
    %91 = arith.mulf %89, %90 : vector<16x48xf32>
    %92 = arith.addf %87, %91 : vector<16x48xf32>
    %c0_73 = arith.constant 0 : index
    %c20 = arith.constant 20 : index
    %c0_74 = arith.constant 0 : index
    %93 = vector.load %arg13[%c0_73, %c20, %c0_74] : memref<1x328x48xf32, #tpu.memory_space<vmem>>, vector<1x16x48xf32>
    %94 = vector.shape_cast %93 : vector<1x16x48xf32> to vector<16x48xf32>
    %95 = vector.broadcast %61 : vector<1x48xf32> to vector<16x48xf32>
    %96 = arith.mulf %94, %95 : vector<16x48xf32>
    %97 = arith.addf %92, %96 : vector<16x48xf32>
    %c0_75 = arith.constant 0 : index
    %c36 = arith.constant 36 : index
    %c0_76 = arith.constant 0 : index
    %98 = vector.load %arg13[%c0_75, %c36, %c0_76] : memref<1x328x48xf32, #tpu.memory_space<vmem>>, vector<1x16x48xf32>
    %99 = vector.shape_cast %98 : vector<1x16x48xf32> to vector<16x48xf32>
    %100 = vector.broadcast %63 : vector<1x48xf32> to vector<16x48xf32>
    %101 = arith.mulf %99, %100 : vector<16x48xf32>
    %102 = arith.addf %97, %101 : vector<16x48xf32>
    %c0_77 = arith.constant 0 : index
    %c37 = arith.constant 37 : index
    %c0_78 = arith.constant 0 : index
    %103 = vector.load %arg13[%c0_77, %c37, %c0_78] : memref<1x328x48xf32, #tpu.memory_space<vmem>>, vector<1x16x48xf32>
    %104 = vector.shape_cast %103 : vector<1x16x48xf32> to vector<16x48xf32>
    %105 = vector.broadcast %65 : vector<1x48xf32> to vector<16x48xf32>
    %106 = arith.mulf %104, %105 : vector<16x48xf32>
    %107 = arith.addf %102, %106 : vector<16x48xf32>
    %c0_79 = arith.constant 0 : index
    %c38 = arith.constant 38 : index
    %c0_80 = arith.constant 0 : index
    %108 = vector.load %arg13[%c0_79, %c38, %c0_80] : memref<1x328x48xf32, #tpu.memory_space<vmem>>, vector<1x16x48xf32>
    %109 = vector.shape_cast %108 : vector<1x16x48xf32> to vector<16x48xf32>
    %110 = vector.broadcast %67 : vector<1x48xf32> to vector<16x48xf32>
    %111 = arith.mulf %109, %110 : vector<16x48xf32>
    %112 = arith.addf %107, %111 : vector<16x48xf32>
    %113 = vector.broadcast %68 : vector<1x48xf32> to vector<16x48xf32>
    %114 = arith.addf %112, %113 : vector<16x48xf32>
    %cst_81 = arith.constant 0.000000e+00 : f32
    %cst_82 = arith.constant 6.000000e+00 : f32
    %115 = vector.broadcast %cst_81 : f32 to vector<16x48xf32>
    %116 = arith.maximumf %115, %114 : vector<16x48xf32>
    %117 = vector.broadcast %cst_82 : f32 to vector<16x48xf32>
    %118 = arith.minimumf %117, %116 : vector<16x48xf32>
    %c0_83 = arith.constant 0 : index
    %c0_84 = arith.constant 0 : index
    %119 = vector.load %arg14[%c0_83, %c0_84] : memref<256x48xf32, #tpu.memory_space<vmem>>, vector<16x48xf32>
    tpu.vector_store %arg14[%c0_83, %c0_84], %118 {strides = array<i32>} : memref<256x48xf32, #tpu.memory_space<vmem>>, vector<16x48xf32>,
    %c0_85 = arith.constant 0 : index
    %c18_86 = arith.constant 18 : index
    %c0_87 = arith.constant 0 : index
    %120 = vector.load %arg13[%c0_85, %c18_86, %c0_87] : memref<1x328x48xf32, #tpu.memory_space<vmem>>, vector<1x16x48xf32>
    %121 = vector.shape_cast %120 : vector<1x16x48xf32> to vector<16x48xf32>
    %122 = vector.broadcast %51 : vector<1x48xf32> to vector<16x48xf32>
    %123 = arith.mulf %121, %122 : vector<16x48xf32>
    %c0_88 = arith.constant 0 : index
    %c19_89 = arith.constant 19 : index
    %c0_90 = arith.constant 0 : index
    %124 = vector.load %arg13[%c0_88, %c19_89, %c0_90] : memref<1x328x48xf32, #tpu.memory_space<vmem>>, vector<1x16x48xf32>
    %125 = vector.shape_cast %124 : vector<1x16x48xf32> to vector<16x48xf32>
    %126 = vector.broadcast %53 : vector<1x48xf32> to vector<16x48xf32>
    %127 = arith.mulf %125, %126 : vector<16x48xf32>
    %128 = arith.addf %123, %127 : vector<16x48xf32>
    %c0_91 = arith.constant 0 : index
    %c20_92 = arith.constant 20 : index
    %c0_93 = arith.constant 0 : index
    %129 = vector.load %arg13[%c0_91, %c20_92, %c0_93] : memref<1x328x48xf32, #tpu.memory_space<vmem>>, vector<1x16x48xf32>
    %130 = vector.shape_cast %129 : vector<1x16x48xf32> to vector<16x48xf32>
    %131 = vector.broadcast %55 : vector<1x48xf32> to vector<16x48xf32>
    %132 = arith.mulf %130, %131 : vector<16x48xf32>
    %133 = arith.addf %128, %132 : vector<16x48xf32>
    %c0_94 = arith.constant 0 : index
    %c36_95 = arith.constant 36 : index
    %c0_96 = arith.constant 0 : index
    %134 = vector.load %arg13[%c0_94, %c36_95, %c0_96] : memref<1x328x48xf32, #tpu.memory_space<vmem>>, vector<1x16x48xf32>
    %135 = vector.shape_cast %134 : vector<1x16x48xf32> to vector<16x48xf32>
    %136 = vector.broadcast %57 : vector<1x48xf32> to vector<16x48xf32>
    %137 = arith.mulf %135, %136 : vector<16x48xf32>
    %138 = arith.addf %133, %137 : vector<16x48xf32>
    %c0_97 = arith.constant 0 : index
    %c37_98 = arith.constant 37 : index
    %c0_99 = arith.constant 0 : index
    %139 = vector.load %arg13[%c0_97, %c37_98, %c0_99] : memref<1x328x48xf32, #tpu.memory_space<vmem>>, vector<1x16x48xf32>
    %140 = vector.shape_cast %139 : vector<1x16x48xf32> to vector<16x48xf32>
    %141 = vector.broadcast %59 : vector<1x48xf32> to vector<16x48xf32>
    %142 = arith.mulf %140, %141 : vector<16x48xf32>
    %143 = arith.addf %138, %142 : vector<16x48xf32>
    %c0_100 = arith.constant 0 : index
    %c38_101 = arith.constant 38 : index
    %c0_102 = arith.constant 0 : index
    %144 = vector.load %arg13[%c0_100, %c38_101, %c0_102] : memref<1x328x48xf32, #tpu.memory_space<vmem>>, vector<1x16x48xf32>
    %145 = vector.shape_cast %144 : vector<1x16x48xf32> to vector<16x48xf32>
    %146 = vector.broadcast %61 : vector<1x48xf32> to vector<16x48xf32>
    %147 = arith.mulf %145, %146 : vector<16x48xf32>
    %148 = arith.addf %143, %147 : vector<16x48xf32>
    %c0_103 = arith.constant 0 : index
    %c54 = arith.constant 54 : index
    %c0_104 = arith.constant 0 : index
    %149 = vector.load %arg13[%c0_103, %c54, %c0_104] : memref<1x328x48xf32, #tpu.memory_space<vmem>>, vector<1x16x48xf32>
    %150 = vector.shape_cast %149 : vector<1x16x48xf32> to vector<16x48xf32>
    %151 = vector.broadcast %63 : vector<1x48xf32> to vector<16x48xf32>
    %152 = arith.mulf %150, %151 : vector<16x48xf32>
    %153 = arith.addf %148, %152 : vector<16x48xf32>
    %c0_105 = arith.constant 0 : index
    %c55 = arith.constant 55 : index
    %c0_106 = arith.constant 0 : index
    %154 = vector.load %arg13[%c0_105, %c55, %c0_106] : memref<1x328x48xf32, #tpu.memory_space<vmem>>, vector<1x16x48xf32>
    %155 = vector.shape_cast %154 : vector<1x16x48xf32> to vector<16x48xf32>
    %156 = vector.broadcast %65 : vector<1x48xf32> to vector<16x48xf32>
    %157 = arith.mulf %155, %156 : vector<16x48xf32>
    %158 = arith.addf %153, %157 : vector<16x48xf32>
    %c0_107 = arith.constant 0 : index
    %c56 = arith.constant 56 : index
    %c0_108 = arith.constant 0 : index
    %159 = vector.load %arg13[%c0_107, %c56, %c0_108] : memref<1x328x48xf32, #tpu.memory_space<vmem>>, vector<1x16x48xf32>
    %160 = vector.shape_cast %159 : vector<1x16x48xf32> to vector<16x48xf32>
    %161 = vector.broadcast %67 : vector<1x48xf32> to vector<16x48xf32>
    %162 = arith.mulf %160, %161 : vector<16x48xf32>
    %163 = arith.addf %158, %162 : vector<16x48xf32>
    %164 = vector.broadcast %68 : vector<1x48xf32> to vector<16x48xf32>
    %165 = arith.addf %163, %164 : vector<16x48xf32>
    %cst_109 = arith.constant 0.000000e+00 : f32
    %cst_110 = arith.constant 6.000000e+00 : f32
    %166 = vector.broadcast %cst_109 : f32 to vector<16x48xf32>
    %167 = arith.maximumf %166, %165 : vector<16x48xf32>
    %168 = vector.broadcast %cst_110 : f32 to vector<16x48xf32>
    %169 = arith.minimumf %168, %167 : vector<16x48xf32>
    %c16 = arith.constant 16 : index
    %c0_111 = arith.constant 0 : index
    %170 = vector.load %arg14[%c16, %c0_111] : memref<256x48xf32, #tpu.memory_space<vmem>>, vector<16x48xf32>
    tpu.vector_store %arg14[%c16, %c0_111], %169 {strides = array<i32>} : memref<256x48xf32, #tpu.memory_space<vmem>>, vector<16x48xf32>,
    %c0_112 = arith.constant 0 : index
    %c36_113 = arith.constant 36 : index
    %c0_114 = arith.constant 0 : index
    %171 = vector.load %arg13[%c0_112, %c36_113, %c0_114] : memref<1x328x48xf32, #tpu.memory_space<vmem>>, vector<1x16x48xf32>
    %172 = vector.shape_cast %171 : vector<1x16x48xf32> to vector<16x48xf32>
    %173 = vector.broadcast %51 : vector<1x48xf32> to vector<16x48xf32>
    %174 = arith.mulf %172, %173 : vector<16x48xf32>
    %c0_115 = arith.constant 0 : index
    %c37_116 = arith.constant 37 : index
    %c0_117 = arith.constant 0 : index
    %175 = vector.load %arg13[%c0_115, %c37_116, %c0_117] : memref<1x328x48xf32, #tpu.memory_space<vmem>>, vector<1x16x48xf32>
    %176 = vector.shape_cast %175 : vector<1x16x48xf32> to vector<16x48xf32>
    %177 = vector.broadcast %53 : vector<1x48xf32> to vector<16x48xf32>
    %178 = arith.mulf %176, %177 : vector<16x48xf32>
    %179 = arith.addf %174, %178 : vector<16x48xf32>
    %c0_118 = arith.constant 0 : index
    %c38_119 = arith.constant 38 : index
    %c0_120 = arith.constant 0 : index
    %180 = vector.load %arg13[%c0_118, %c38_119, %c0_120] : memref<1x328x48xf32, #tpu.memory_space<vmem>>, vector<1x16x48xf32>
    %181 = vector.shape_cast %180 : vector<1x16x48xf32> to vector<16x48xf32>
    %182 = vector.broadcast %55 : vector<1x48xf32> to vector<16x48xf32>
    %183 = arith.mulf %181, %182 : vector<16x48xf32>
    %184 = arith.addf %179, %183 : vector<16x48xf32>
    %c0_121 = arith.constant 0 : index
    %c54_122 = arith.constant 54 : index
    %c0_123 = arith.constant 0 : index
    %185 = vector.load %arg13[%c0_121, %c54_122, %c0_123] : memref<1x328x48xf32, #tpu.memory_space<vmem>>, vector<1x16x48xf32>
    %186 = vector.shape_cast %185 : vector<1x16x48xf32> to vector<16x48xf32>
    %187 = vector.broadcast %57 : vector<1x48xf32> to vector<16x48xf32>
    %188 = arith.mulf %186, %187 : vector<16x48xf32>
    %189 = arith.addf %184, %188 : vector<16x48xf32>
    %c0_124 = arith.constant 0 : index
    %c55_125 = arith.constant 55 : index
    %c0_126 = arith.constant 0 : index
    %190 = vector.load %arg13[%c0_124, %c55_125, %c0_126] : memref<1x328x48xf32, #tpu.memory_space<vmem>>, vector<1x16x48xf32>
    %191 = vector.shape_cast %190 : vector<1x16x48xf32> to vector<16x48xf32>
    %192 = vector.broadcast %59 : vector<1x48xf32> to vector<16x48xf32>
    %193 = arith.mulf %191, %192 : vector<16x48xf32>
    %194 = arith.addf %189, %193 : vector<16x48xf32>
    %c0_127 = arith.constant 0 : index
    %c56_128 = arith.constant 56 : index
    %c0_129 = arith.constant 0 : index
    %195 = vector.load %arg13[%c0_127, %c56_128, %c0_129] : memref<1x328x48xf32, #tpu.memory_space<vmem>>, vector<1x16x48xf32>
    %196 = vector.shape_cast %195 : vector<1x16x48xf32> to vector<16x48xf32>
    %197 = vector.broadcast %61 : vector<1x48xf32> to vector<16x48xf32>
    %198 = arith.mulf %196, %197 : vector<16x48xf32>
    %199 = arith.addf %194, %198 : vector<16x48xf32>
    %c0_130 = arith.constant 0 : index
    %c72 = arith.constant 72 : index
    %c0_131 = arith.constant 0 : index
    %200 = vector.load %arg13[%c0_130, %c72, %c0_131] : memref<1x328x48xf32, #tpu.memory_space<vmem>>, vector<1x16x48xf32>
    %201 = vector.shape_cast %200 : vector<1x16x48xf32> to vector<16x48xf32>
    %202 = vector.broadcast %63 : vector<1x48xf32> to vector<16x48xf32>
    %203 = arith.mulf %201, %202 : vector<16x48xf32>
    %204 = arith.addf %199, %203 : vector<16x48xf32>
    %c0_132 = arith.constant 0 : index
    %c73 = arith.constant 73 : index
    %c0_133 = arith.constant 0 : index
    %205 = vector.load %arg13[%c0_132, %c73, %c0_133] : memref<1x328x48xf32, #tpu.memory_space<vmem>>, vector<1x16x48xf32>
    %206 = vector.shape_cast %205 : vector<1x16x48xf32> to vector<16x48xf32>
    %207 = vector.broadcast %65 : vector<1x48xf32> to vector<16x48xf32>
    %208 = arith.mulf %206, %207 : vector<16x48xf32>
    %209 = arith.addf %204, %208 : vector<16x48xf32>
    %c0_134 = arith.constant 0 : index
    %c74 = arith.constant 74 : index
    %c0_135 = arith.constant 0 : index
    %210 = vector.load %arg13[%c0_134, %c74, %c0_135] : memref<1x328x48xf32, #tpu.memory_space<vmem>>, vector<1x16x48xf32>
    %211 = vector.shape_cast %210 : vector<1x16x48xf32> to vector<16x48xf32>
    %212 = vector.broadcast %67 : vector<1x48xf32> to vector<16x48xf32>
    %213 = arith.mulf %211, %212 : vector<16x48xf32>
    %214 = arith.addf %209, %213 : vector<16x48xf32>
    %215 = vector.broadcast %68 : vector<1x48xf32> to vector<16x48xf32>
    %216 = arith.addf %214, %215 : vector<16x48xf32>
    %cst_136 = arith.constant 0.000000e+00 : f32
    %cst_137 = arith.constant 6.000000e+00 : f32
    %217 = vector.broadcast %cst_136 : f32 to vector<16x48xf32>
    %218 = arith.maximumf %217, %216 : vector<16x48xf32>
    %219 = vector.broadcast %cst_137 : f32 to vector<16x48xf32>
    %220 = arith.minimumf %219, %218 : vector<16x48xf32>
    %c32 = arith.constant 32 : index
    %c0_138 = arith.constant 0 : index
    %221 = vector.load %arg14[%c32, %c0_138] : memref<256x48xf32, #tpu.memory_space<vmem>>, vector<16x48xf32>
    tpu.vector_store %arg14[%c32, %c0_138], %220 {strides = array<i32>} : memref<256x48xf32, #tpu.memory_space<vmem>>, vector<16x48xf32>,
    %c0_139 = arith.constant 0 : index
    %c54_140 = arith.constant 54 : index
    %c0_141 = arith.constant 0 : index
    %222 = vector.load %arg13[%c0_139, %c54_140, %c0_141] : memref<1x328x48xf32, #tpu.memory_space<vmem>>, vector<1x16x48xf32>
    %223 = vector.shape_cast %222 : vector<1x16x48xf32> to vector<16x48xf32>
    %224 = vector.broadcast %51 : vector<1x48xf32> to vector<16x48xf32>
    %225 = arith.mulf %223, %224 : vector<16x48xf32>
    %c0_142 = arith.constant 0 : index
    %c55_143 = arith.constant 55 : index
    %c0_144 = arith.constant 0 : index
    %226 = vector.load %arg13[%c0_142, %c55_143, %c0_144] : memref<1x328x48xf32, #tpu.memory_space<vmem>>, vector<1x16x48xf32>
    %227 = vector.shape_cast %226 : vector<1x16x48xf32> to vector<16x48xf32>
    %228 = vector.broadcast %53 : vector<1x48xf32> to vector<16x48xf32>
    %229 = arith.mulf %227, %228 : vector<16x48xf32>
    %230 = arith.addf %225, %229 : vector<16x48xf32>
    %c0_145 = arith.constant 0 : index
    %c56_146 = arith.constant 56 : index
    %c0_147 = arith.constant 0 : index
    %231 = vector.load %arg13[%c0_145, %c56_146, %c0_147] : memref<1x328x48xf32, #tpu.memory_space<vmem>>, vector<1x16x48xf32>
    %232 = vector.shape_cast %231 : vector<1x16x48xf32> to vector<16x48xf32>
    %233 = vector.broadcast %55 : vector<1x48xf32> to vector<16x48xf32>
    %234 = arith.mulf %232, %233 : vector<16x48xf32>
    %235 = arith.addf %230, %234 : vector<16x48xf32>
    %c0_148 = arith.constant 0 : index
    %c72_149 = arith.constant 72 : index
    %c0_150 = arith.constant 0 : index
    %236 = vector.load %arg13[%c0_148, %c72_149, %c0_150] : memref<1x328x48xf32, #tpu.memory_space<vmem>>, vector<1x16x48xf32>
    %237 = vector.shape_cast %236 : vector<1x16x48xf32> to vector<16x48xf32>
    %238 = vector.broadcast %57 : vector<1x48xf32> to vector<16x48xf32>
    %239 = arith.mulf %237, %238 : vector<16x48xf32>
    %240 = arith.addf %235, %239 : vector<16x48xf32>
    %c0_151 = arith.constant 0 : index
    %c73_152 = arith.constant 73 : index
    %c0_153 = arith.constant 0 : index
    %241 = vector.load %arg13[%c0_151, %c73_152, %c0_153] : memref<1x328x48xf32, #tpu.memory_space<vmem>>, vector<1x16x48xf32>
    %242 = vector.shape_cast %241 : vector<1x16x48xf32> to vector<16x48xf32>
    %243 = vector.broadcast %59 : vector<1x48xf32> to vector<16x48xf32>
    %244 = arith.mulf %242, %243 : vector<16x48xf32>
    %245 = arith.addf %240, %244 : vector<16x48xf32>
    %c0_154 = arith.constant 0 : index
    %c74_155 = arith.constant 74 : index
    %c0_156 = arith.constant 0 : index
    %246 = vector.load %arg13[%c0_154, %c74_155, %c0_156] : memref<1x328x48xf32, #tpu.memory_space<vmem>>, vector<1x16x48xf32>
    %247 = vector.shape_cast %246 : vector<1x16x48xf32> to vector<16x48xf32>
    %248 = vector.broadcast %61 : vector<1x48xf32> to vector<16x48xf32>
    %249 = arith.mulf %247, %248 : vector<16x48xf32>
    %250 = arith.addf %245, %249 : vector<16x48xf32>
    %c0_157 = arith.constant 0 : index
    %c90 = arith.constant 90 : index
    %c0_158 = arith.constant 0 : index
    %251 = vector.load %arg13[%c0_157, %c90, %c0_158] : memref<1x328x48xf32, #tpu.memory_space<vmem>>, vector<1x16x48xf32>
    %252 = vector.shape_cast %251 : vector<1x16x48xf32> to vector<16x48xf32>
    %253 = vector.broadcast %63 : vector<1x48xf32> to vector<16x48xf32>
    %254 = arith.mulf %252, %253 : vector<16x48xf32>
    %255 = arith.addf %250, %254 : vector<16x48xf32>
    %c0_159 = arith.constant 0 : index
    %c91 = arith.constant 91 : index
    %c0_160 = arith.constant 0 : index
    %256 = vector.load %arg13[%c0_159, %c91, %c0_160] : memref<1x328x48xf32, #tpu.memory_space<vmem>>, vector<1x16x48xf32>
    %257 = vector.shape_cast %256 : vector<1x16x48xf32> to vector<16x48xf32>
    %258 = vector.broadcast %65 : vector<1x48xf32> to vector<16x48xf32>
    %259 = arith.mulf %257, %258 : vector<16x48xf32>
    %260 = arith.addf %255, %259 : vector<16x48xf32>
    %c0_161 = arith.constant 0 : index
    %c92 = arith.constant 92 : index
    %c0_162 = arith.constant 0 : index
    %261 = vector.load %arg13[%c0_161, %c92, %c0_162] : memref<1x328x48xf32, #tpu.memory_space<vmem>>, vector<1x16x48xf32>
    %262 = vector.shape_cast %261 : vector<1x16x48xf32> to vector<16x48xf32>
    %263 = vector.broadcast %67 : vector<1x48xf32> to vector<16x48xf32>
    %264 = arith.mulf %262, %263 : vector<16x48xf32>
    %265 = arith.addf %260, %264 : vector<16x48xf32>
    %266 = vector.broadcast %68 : vector<1x48xf32> to vector<16x48xf32>
    %267 = arith.addf %265, %266 : vector<16x48xf32>
    %cst_163 = arith.constant 0.000000e+00 : f32
    %cst_164 = arith.constant 6.000000e+00 : f32
    %268 = vector.broadcast %cst_163 : f32 to vector<16x48xf32>
    %269 = arith.maximumf %268, %267 : vector<16x48xf32>
    %270 = vector.broadcast %cst_164 : f32 to vector<16x48xf32>
    %271 = arith.minimumf %270, %269 : vector<16x48xf32>
    %c48 = arith.constant 48 : index
    %c0_165 = arith.constant 0 : index
    %272 = vector.load %arg14[%c48, %c0_165] : memref<256x48xf32, #tpu.memory_space<vmem>>, vector<16x48xf32>
    tpu.vector_store %arg14[%c48, %c0_165], %271 {strides = array<i32>} : memref<256x48xf32, #tpu.memory_space<vmem>>, vector<16x48xf32>,
    %c0_166 = arith.constant 0 : index
    %c72_167 = arith.constant 72 : index
    %c0_168 = arith.constant 0 : index
    %273 = vector.load %arg13[%c0_166, %c72_167, %c0_168] : memref<1x328x48xf32, #tpu.memory_space<vmem>>, vector<1x16x48xf32>
    %274 = vector.shape_cast %273 : vector<1x16x48xf32> to vector<16x48xf32>
    %275 = vector.broadcast %51 : vector<1x48xf32> to vector<16x48xf32>
    %276 = arith.mulf %274, %275 : vector<16x48xf32>
    %c0_169 = arith.constant 0 : index
    %c73_170 = arith.constant 73 : index
    %c0_171 = arith.constant 0 : index
    %277 = vector.load %arg13[%c0_169, %c73_170, %c0_171] : memref<1x328x48xf32, #tpu.memory_space<vmem>>, vector<1x16x48xf32>
    %278 = vector.shape_cast %277 : vector<1x16x48xf32> to vector<16x48xf32>
    %279 = vector.broadcast %53 : vector<1x48xf32> to vector<16x48xf32>
    %280 = arith.mulf %278, %279 : vector<16x48xf32>
    %281 = arith.addf %276, %280 : vector<16x48xf32>
    %c0_172 = arith.constant 0 : index
    %c74_173 = arith.constant 74 : index
    %c0_174 = arith.constant 0 : index
    %282 = vector.load %arg13[%c0_172, %c74_173, %c0_174] : memref<1x328x48xf32, #tpu.memory_space<vmem>>, vector<1x16x48xf32>
    %283 = vector.shape_cast %282 : vector<1x16x48xf32> to vector<16x48xf32>
    %284 = vector.broadcast %55 : vector<1x48xf32> to vector<16x48xf32>
    %285 = arith.mulf %283, %284 : vector<16x48xf32>
    %286 = arith.addf %281, %285 : vector<16x48xf32>
    %c0_175 = arith.constant 0 : index
    %c90_176 = arith.constant 90 : index
    %c0_177 = arith.constant 0 : index
    %287 = vector.load %arg13[%c0_175, %c90_176, %c0_177] : memref<1x328x48xf32, #tpu.memory_space<vmem>>, vector<1x16x48xf32>
    %288 = vector.shape_cast %287 : vector<1x16x48xf32> to vector<16x48xf32>
    %289 = vector.broadcast %57 : vector<1x48xf32> to vector<16x48xf32>
    %290 = arith.mulf %288, %289 : vector<16x48xf32>
    %291 = arith.addf %286, %290 : vector<16x48xf32>
    %c0_178 = arith.constant 0 : index
    %c91_179 = arith.constant 91 : index
    %c0_180 = arith.constant 0 : index
    %292 = vector.load %arg13[%c0_178, %c91_179, %c0_180] : memref<1x328x48xf32, #tpu.memory_space<vmem>>, vector<1x16x48xf32>
    %293 = vector.shape_cast %292 : vector<1x16x48xf32> to vector<16x48xf32>
    %294 = vector.broadcast %59 : vector<1x48xf32> to vector<16x48xf32>
    %295 = arith.mulf %293, %294 : vector<16x48xf32>
    %296 = arith.addf %291, %295 : vector<16x48xf32>
    %c0_181 = arith.constant 0 : index
    %c92_182 = arith.constant 92 : index
    %c0_183 = arith.constant 0 : index
    %297 = vector.load %arg13[%c0_181, %c92_182, %c0_183] : memref<1x328x48xf32, #tpu.memory_space<vmem>>, vector<1x16x48xf32>
    %298 = vector.shape_cast %297 : vector<1x16x48xf32> to vector<16x48xf32>
    %299 = vector.broadcast %61 : vector<1x48xf32> to vector<16x48xf32>
    %300 = arith.mulf %298, %299 : vector<16x48xf32>
    %301 = arith.addf %296, %300 : vector<16x48xf32>
    %c0_184 = arith.constant 0 : index
    %c108 = arith.constant 108 : index
    %c0_185 = arith.constant 0 : index
    %302 = vector.load %arg13[%c0_184, %c108, %c0_185] : memref<1x328x48xf32, #tpu.memory_space<vmem>>, vector<1x16x48xf32>
    %303 = vector.shape_cast %302 : vector<1x16x48xf32> to vector<16x48xf32>
    %304 = vector.broadcast %63 : vector<1x48xf32> to vector<16x48xf32>
    %305 = arith.mulf %303, %304 : vector<16x48xf32>
    %306 = arith.addf %301, %305 : vector<16x48xf32>
    %c0_186 = arith.constant 0 : index
    %c109 = arith.constant 109 : index
    %c0_187 = arith.constant 0 : index
    %307 = vector.load %arg13[%c0_186, %c109, %c0_187] : memref<1x328x48xf32, #tpu.memory_space<vmem>>, vector<1x16x48xf32>
    %308 = vector.shape_cast %307 : vector<1x16x48xf32> to vector<16x48xf32>
    %309 = vector.broadcast %65 : vector<1x48xf32> to vector<16x48xf32>
    %310 = arith.mulf %308, %309 : vector<16x48xf32>
    %311 = arith.addf %306, %310 : vector<16x48xf32>
    %c0_188 = arith.constant 0 : index
    %c110 = arith.constant 110 : index
    %c0_189 = arith.constant 0 : index
    %312 = vector.load %arg13[%c0_188, %c110, %c0_189] : memref<1x328x48xf32, #tpu.memory_space<vmem>>, vector<1x16x48xf32>
    %313 = vector.shape_cast %312 : vector<1x16x48xf32> to vector<16x48xf32>
    %314 = vector.broadcast %67 : vector<1x48xf32> to vector<16x48xf32>
    %315 = arith.mulf %313, %314 : vector<16x48xf32>
    %316 = arith.addf %311, %315 : vector<16x48xf32>
    %317 = vector.broadcast %68 : vector<1x48xf32> to vector<16x48xf32>
    %318 = arith.addf %316, %317 : vector<16x48xf32>
    %cst_190 = arith.constant 0.000000e+00 : f32
    %cst_191 = arith.constant 6.000000e+00 : f32
    %319 = vector.broadcast %cst_190 : f32 to vector<16x48xf32>
    %320 = arith.maximumf %319, %318 : vector<16x48xf32>
    %321 = vector.broadcast %cst_191 : f32 to vector<16x48xf32>
    %322 = arith.minimumf %321, %320 : vector<16x48xf32>
    %c64 = arith.constant 64 : index
    %c0_192 = arith.constant 0 : index
    %323 = vector.load %arg14[%c64, %c0_192] : memref<256x48xf32, #tpu.memory_space<vmem>>, vector<16x48xf32>
    tpu.vector_store %arg14[%c64, %c0_192], %322 {strides = array<i32>} : memref<256x48xf32, #tpu.memory_space<vmem>>, vector<16x48xf32>,
    %c0_193 = arith.constant 0 : index
    %c90_194 = arith.constant 90 : index
    %c0_195 = arith.constant 0 : index
    %324 = vector.load %arg13[%c0_193, %c90_194, %c0_195] : memref<1x328x48xf32, #tpu.memory_space<vmem>>, vector<1x16x48xf32>
    %325 = vector.shape_cast %324 : vector<1x16x48xf32> to vector<16x48xf32>
    %326 = vector.broadcast %51 : vector<1x48xf32> to vector<16x48xf32>
    %327 = arith.mulf %325, %326 : vector<16x48xf32>
    %c0_196 = arith.constant 0 : index
    %c91_197 = arith.constant 91 : index
    %c0_198 = arith.constant 0 : index
    %328 = vector.load %arg13[%c0_196, %c91_197, %c0_198] : memref<1x328x48xf32, #tpu.memory_space<vmem>>, vector<1x16x48xf32>
    %329 = vector.shape_cast %328 : vector<1x16x48xf32> to vector<16x48xf32>
    %330 = vector.broadcast %53 : vector<1x48xf32> to vector<16x48xf32>
    %331 = arith.mulf %329, %330 : vector<16x48xf32>
    %332 = arith.addf %327, %331 : vector<16x48xf32>
    %c0_199 = arith.constant 0 : index
    %c92_200 = arith.constant 92 : index
    %c0_201 = arith.constant 0 : index
    %333 = vector.load %arg13[%c0_199, %c92_200, %c0_201] : memref<1x328x48xf32, #tpu.memory_space<vmem>>, vector<1x16x48xf32>
    %334 = vector.shape_cast %333 : vector<1x16x48xf32> to vector<16x48xf32>
    %335 = vector.broadcast %55 : vector<1x48xf32> to vector<16x48xf32>
    %336 = arith.mulf %334, %335 : vector<16x48xf32>
    %337 = arith.addf %332, %336 : vector<16x48xf32>
    %c0_202 = arith.constant 0 : index
    %c108_203 = arith.constant 108 : index
    %c0_204 = arith.constant 0 : index
    %338 = vector.load %arg13[%c0_202, %c108_203, %c0_204] : memref<1x328x48xf32, #tpu.memory_space<vmem>>, vector<1x16x48xf32>
    %339 = vector.shape_cast %338 : vector<1x16x48xf32> to vector<16x48xf32>
    %340 = vector.broadcast %57 : vector<1x48xf32> to vector<16x48xf32>
    %341 = arith.mulf %339, %340 : vector<16x48xf32>
    %342 = arith.addf %337, %341 : vector<16x48xf32>
    %c0_205 = arith.constant 0 : index
    %c109_206 = arith.constant 109 : index
    %c0_207 = arith.constant 0 : index
    %343 = vector.load %arg13[%c0_205, %c109_206, %c0_207] : memref<1x328x48xf32, #tpu.memory_space<vmem>>, vector<1x16x48xf32>
    %344 = vector.shape_cast %343 : vector<1x16x48xf32> to vector<16x48xf32>
    %345 = vector.broadcast %59 : vector<1x48xf32> to vector<16x48xf32>
    %346 = arith.mulf %344, %345 : vector<16x48xf32>
    %347 = arith.addf %342, %346 : vector<16x48xf32>
    %c0_208 = arith.constant 0 : index
    %c110_209 = arith.constant 110 : index
    %c0_210 = arith.constant 0 : index
    %348 = vector.load %arg13[%c0_208, %c110_209, %c0_210] : memref<1x328x48xf32, #tpu.memory_space<vmem>>, vector<1x16x48xf32>
    %349 = vector.shape_cast %348 : vector<1x16x48xf32> to vector<16x48xf32>
    %350 = vector.broadcast %61 : vector<1x48xf32> to vector<16x48xf32>
    %351 = arith.mulf %349, %350 : vector<16x48xf32>
    %352 = arith.addf %347, %351 : vector<16x48xf32>
    %c0_211 = arith.constant 0 : index
    %c126 = arith.constant 126 : index
    %c0_212 = arith.constant 0 : index
    %353 = vector.load %arg13[%c0_211, %c126, %c0_212] : memref<1x328x48xf32, #tpu.memory_space<vmem>>, vector<1x16x48xf32>
    %354 = vector.shape_cast %353 : vector<1x16x48xf32> to vector<16x48xf32>
    %355 = vector.broadcast %63 : vector<1x48xf32> to vector<16x48xf32>
    %356 = arith.mulf %354, %355 : vector<16x48xf32>
    %357 = arith.addf %352, %356 : vector<16x48xf32>
    %c0_213 = arith.constant 0 : index
    %c127 = arith.constant 127 : index
    %c0_214 = arith.constant 0 : index
    %358 = vector.load %arg13[%c0_213, %c127, %c0_214] : memref<1x328x48xf32, #tpu.memory_space<vmem>>, vector<1x16x48xf32>
    %359 = vector.shape_cast %358 : vector<1x16x48xf32> to vector<16x48xf32>
    %360 = vector.broadcast %65 : vector<1x48xf32> to vector<16x48xf32>
    %361 = arith.mulf %359, %360 : vector<16x48xf32>
    %362 = arith.addf %357, %361 : vector<16x48xf32>
    %c0_215 = arith.constant 0 : index
    %c128_216 = arith.constant 128 : index
    %c0_217 = arith.constant 0 : index
    %363 = vector.load %arg13[%c0_215, %c128_216, %c0_217] : memref<1x328x48xf32, #tpu.memory_space<vmem>>, vector<1x16x48xf32>
    %364 = vector.shape_cast %363 : vector<1x16x48xf32> to vector<16x48xf32>
    %365 = vector.broadcast %67 : vector<1x48xf32> to vector<16x48xf32>
    %366 = arith.mulf %364, %365 : vector<16x48xf32>
    %367 = arith.addf %362, %366 : vector<16x48xf32>
    %368 = vector.broadcast %68 : vector<1x48xf32> to vector<16x48xf32>
    %369 = arith.addf %367, %368 : vector<16x48xf32>
    %cst_218 = arith.constant 0.000000e+00 : f32
    %cst_219 = arith.constant 6.000000e+00 : f32
    %370 = vector.broadcast %cst_218 : f32 to vector<16x48xf32>
    %371 = arith.maximumf %370, %369 : vector<16x48xf32>
    %372 = vector.broadcast %cst_219 : f32 to vector<16x48xf32>
    %373 = arith.minimumf %372, %371 : vector<16x48xf32>
    %c80 = arith.constant 80 : index
    %c0_220 = arith.constant 0 : index
    %374 = vector.load %arg14[%c80, %c0_220] : memref<256x48xf32, #tpu.memory_space<vmem>>, vector<16x48xf32>
    tpu.vector_store %arg14[%c80, %c0_220], %373 {strides = array<i32>} : memref<256x48xf32, #tpu.memory_space<vmem>>, vector<16x48xf32>,
    %c0_221 = arith.constant 0 : index
    %c108_222 = arith.constant 108 : index
    %c0_223 = arith.constant 0 : index
    %375 = vector.load %arg13[%c0_221, %c108_222, %c0_223] : memref<1x328x48xf32, #tpu.memory_space<vmem>>, vector<1x16x48xf32>
    %376 = vector.shape_cast %375 : vector<1x16x48xf32> to vector<16x48xf32>
    %377 = vector.broadcast %51 : vector<1x48xf32> to vector<16x48xf32>
    %378 = arith.mulf %376, %377 : vector<16x48xf32>
    %c0_224 = arith.constant 0 : index
    %c109_225 = arith.constant 109 : index
    %c0_226 = arith.constant 0 : index
    %379 = vector.load %arg13[%c0_224, %c109_225, %c0_226] : memref<1x328x48xf32, #tpu.memory_space<vmem>>, vector<1x16x48xf32>
    %380 = vector.shape_cast %379 : vector<1x16x48xf32> to vector<16x48xf32>
    %381 = vector.broadcast %53 : vector<1x48xf32> to vector<16x48xf32>
    %382 = arith.mulf %380, %381 : vector<16x48xf32>
    %383 = arith.addf %378, %382 : vector<16x48xf32>
    %c0_227 = arith.constant 0 : index
    %c110_228 = arith.constant 110 : index
    %c0_229 = arith.constant 0 : index
    %384 = vector.load %arg13[%c0_227, %c110_228, %c0_229] : memref<1x328x48xf32, #tpu.memory_space<vmem>>, vector<1x16x48xf32>
    %385 = vector.shape_cast %384 : vector<1x16x48xf32> to vector<16x48xf32>
    %386 = vector.broadcast %55 : vector<1x48xf32> to vector<16x48xf32>
    %387 = arith.mulf %385, %386 : vector<16x48xf32>
    %388 = arith.addf %383, %387 : vector<16x48xf32>
    %c0_230 = arith.constant 0 : index
    %c126_231 = arith.constant 126 : index
    %c0_232 = arith.constant 0 : index
    %389 = vector.load %arg13[%c0_230, %c126_231, %c0_232] : memref<1x328x48xf32, #tpu.memory_space<vmem>>, vector<1x16x48xf32>
    %390 = vector.shape_cast %389 : vector<1x16x48xf32> to vector<16x48xf32>
    %391 = vector.broadcast %57 : vector<1x48xf32> to vector<16x48xf32>
    %392 = arith.mulf %390, %391 : vector<16x48xf32>
    %393 = arith.addf %388, %392 : vector<16x48xf32>
    %c0_233 = arith.constant 0 : index
    %c127_234 = arith.constant 127 : index
    %c0_235 = arith.constant 0 : index
    %394 = vector.load %arg13[%c0_233, %c127_234, %c0_235] : memref<1x328x48xf32, #tpu.memory_space<vmem>>, vector<1x16x48xf32>
    %395 = vector.shape_cast %394 : vector<1x16x48xf32> to vector<16x48xf32>
    %396 = vector.broadcast %59 : vector<1x48xf32> to vector<16x48xf32>
    %397 = arith.mulf %395, %396 : vector<16x48xf32>
    %398 = arith.addf %393, %397 : vector<16x48xf32>
    %c0_236 = arith.constant 0 : index
    %c128_237 = arith.constant 128 : index
    %c0_238 = arith.constant 0 : index
    %399 = vector.load %arg13[%c0_236, %c128_237, %c0_238] : memref<1x328x48xf32, #tpu.memory_space<vmem>>, vector<1x16x48xf32>
    %400 = vector.shape_cast %399 : vector<1x16x48xf32> to vector<16x48xf32>
    %401 = vector.broadcast %61 : vector<1x48xf32> to vector<16x48xf32>
    %402 = arith.mulf %400, %401 : vector<16x48xf32>
    %403 = arith.addf %398, %402 : vector<16x48xf32>
    %c0_239 = arith.constant 0 : index
    %c144 = arith.constant 144 : index
    %c0_240 = arith.constant 0 : index
    %404 = vector.load %arg13[%c0_239, %c144, %c0_240] : memref<1x328x48xf32, #tpu.memory_space<vmem>>, vector<1x16x48xf32>
    %405 = vector.shape_cast %404 : vector<1x16x48xf32> to vector<16x48xf32>
    %406 = vector.broadcast %63 : vector<1x48xf32> to vector<16x48xf32>
    %407 = arith.mulf %405, %406 : vector<16x48xf32>
    %408 = arith.addf %403, %407 : vector<16x48xf32>
    %c0_241 = arith.constant 0 : index
    %c145 = arith.constant 145 : index
    %c0_242 = arith.constant 0 : index
    %409 = vector.load %arg13[%c0_241, %c145, %c0_242] : memref<1x328x48xf32, #tpu.memory_space<vmem>>, vector<1x16x48xf32>
    %410 = vector.shape_cast %409 : vector<1x16x48xf32> to vector<16x48xf32>
    %411 = vector.broadcast %65 : vector<1x48xf32> to vector<16x48xf32>
    %412 = arith.mulf %410, %411 : vector<16x48xf32>
    %413 = arith.addf %408, %412 : vector<16x48xf32>
    %c0_243 = arith.constant 0 : index
    %c146 = arith.constant 146 : index
    %c0_244 = arith.constant 0 : index
    %414 = vector.load %arg13[%c0_243, %c146, %c0_244] : memref<1x328x48xf32, #tpu.memory_space<vmem>>, vector<1x16x48xf32>
    %415 = vector.shape_cast %414 : vector<1x16x48xf32> to vector<16x48xf32>
    %416 = vector.broadcast %67 : vector<1x48xf32> to vector<16x48xf32>
    %417 = arith.mulf %415, %416 : vector<16x48xf32>
    %418 = arith.addf %413, %417 : vector<16x48xf32>
    %419 = vector.broadcast %68 : vector<1x48xf32> to vector<16x48xf32>
    %420 = arith.addf %418, %419 : vector<16x48xf32>
    %cst_245 = arith.constant 0.000000e+00 : f32
    %cst_246 = arith.constant 6.000000e+00 : f32
    %421 = vector.broadcast %cst_245 : f32 to vector<16x48xf32>
    %422 = arith.maximumf %421, %420 : vector<16x48xf32>
    %423 = vector.broadcast %cst_246 : f32 to vector<16x48xf32>
    %424 = arith.minimumf %423, %422 : vector<16x48xf32>
    %c96 = arith.constant 96 : index
    %c0_247 = arith.constant 0 : index
    %425 = vector.load %arg14[%c96, %c0_247] : memref<256x48xf32, #tpu.memory_space<vmem>>, vector<16x48xf32>
    tpu.vector_store %arg14[%c96, %c0_247], %424 {strides = array<i32>} : memref<256x48xf32, #tpu.memory_space<vmem>>, vector<16x48xf32>,
    %c0_248 = arith.constant 0 : index
    %c126_249 = arith.constant 126 : index
    %c0_250 = arith.constant 0 : index
    %426 = vector.load %arg13[%c0_248, %c126_249, %c0_250] : memref<1x328x48xf32, #tpu.memory_space<vmem>>, vector<1x16x48xf32>
    %427 = vector.shape_cast %426 : vector<1x16x48xf32> to vector<16x48xf32>
    %428 = vector.broadcast %51 : vector<1x48xf32> to vector<16x48xf32>
    %429 = arith.mulf %427, %428 : vector<16x48xf32>
    %c0_251 = arith.constant 0 : index
    %c127_252 = arith.constant 127 : index
    %c0_253 = arith.constant 0 : index
    %430 = vector.load %arg13[%c0_251, %c127_252, %c0_253] : memref<1x328x48xf32, #tpu.memory_space<vmem>>, vector<1x16x48xf32>
    %431 = vector.shape_cast %430 : vector<1x16x48xf32> to vector<16x48xf32>
    %432 = vector.broadcast %53 : vector<1x48xf32> to vector<16x48xf32>
    %433 = arith.mulf %431, %432 : vector<16x48xf32>
    %434 = arith.addf %429, %433 : vector<16x48xf32>
    %c0_254 = arith.constant 0 : index
    %c128_255 = arith.constant 128 : index
    %c0_256 = arith.constant 0 : index
    %435 = vector.load %arg13[%c0_254, %c128_255, %c0_256] : memref<1x328x48xf32, #tpu.memory_space<vmem>>, vector<1x16x48xf32>
    %436 = vector.shape_cast %435 : vector<1x16x48xf32> to vector<16x48xf32>
    %437 = vector.broadcast %55 : vector<1x48xf32> to vector<16x48xf32>
    %438 = arith.mulf %436, %437 : vector<16x48xf32>
    %439 = arith.addf %434, %438 : vector<16x48xf32>
    %c0_257 = arith.constant 0 : index
    %c144_258 = arith.constant 144 : index
    %c0_259 = arith.constant 0 : index
    %440 = vector.load %arg13[%c0_257, %c144_258, %c0_259] : memref<1x328x48xf32, #tpu.memory_space<vmem>>, vector<1x16x48xf32>
    %441 = vector.shape_cast %440 : vector<1x16x48xf32> to vector<16x48xf32>
    %442 = vector.broadcast %57 : vector<1x48xf32> to vector<16x48xf32>
    %443 = arith.mulf %441, %442 : vector<16x48xf32>
    %444 = arith.addf %439, %443 : vector<16x48xf32>
    %c0_260 = arith.constant 0 : index
    %c145_261 = arith.constant 145 : index
    %c0_262 = arith.constant 0 : index
    %445 = vector.load %arg13[%c0_260, %c145_261, %c0_262] : memref<1x328x48xf32, #tpu.memory_space<vmem>>, vector<1x16x48xf32>
    %446 = vector.shape_cast %445 : vector<1x16x48xf32> to vector<16x48xf32>
    %447 = vector.broadcast %59 : vector<1x48xf32> to vector<16x48xf32>
    %448 = arith.mulf %446, %447 : vector<16x48xf32>
    %449 = arith.addf %444, %448 : vector<16x48xf32>
    %c0_263 = arith.constant 0 : index
    %c146_264 = arith.constant 146 : index
    %c0_265 = arith.constant 0 : index
    %450 = vector.load %arg13[%c0_263, %c146_264, %c0_265] : memref<1x328x48xf32, #tpu.memory_space<vmem>>, vector<1x16x48xf32>
    %451 = vector.shape_cast %450 : vector<1x16x48xf32> to vector<16x48xf32>
    %452 = vector.broadcast %61 : vector<1x48xf32> to vector<16x48xf32>
    %453 = arith.mulf %451, %452 : vector<16x48xf32>
    %454 = arith.addf %449, %453 : vector<16x48xf32>
    %c0_266 = arith.constant 0 : index
    %c162 = arith.constant 162 : index
    %c0_267 = arith.constant 0 : index
    %455 = vector.load %arg13[%c0_266, %c162, %c0_267] : memref<1x328x48xf32, #tpu.memory_space<vmem>>, vector<1x16x48xf32>
    %456 = vector.shape_cast %455 : vector<1x16x48xf32> to vector<16x48xf32>
    %457 = vector.broadcast %63 : vector<1x48xf32> to vector<16x48xf32>
    %458 = arith.mulf %456, %457 : vector<16x48xf32>
    %459 = arith.addf %454, %458 : vector<16x48xf32>
    %c0_268 = arith.constant 0 : index
    %c163 = arith.constant 163 : index
    %c0_269 = arith.constant 0 : index
    %460 = vector.load %arg13[%c0_268, %c163, %c0_269] : memref<1x328x48xf32, #tpu.memory_space<vmem>>, vector<1x16x48xf32>
    %461 = vector.shape_cast %460 : vector<1x16x48xf32> to vector<16x48xf32>
    %462 = vector.broadcast %65 : vector<1x48xf32> to vector<16x48xf32>
    %463 = arith.mulf %461, %462 : vector<16x48xf32>
    %464 = arith.addf %459, %463 : vector<16x48xf32>
    %c0_270 = arith.constant 0 : index
    %c164 = arith.constant 164 : index
    %c0_271 = arith.constant 0 : index
    %465 = vector.load %arg13[%c0_270, %c164, %c0_271] : memref<1x328x48xf32, #tpu.memory_space<vmem>>, vector<1x16x48xf32>
    %466 = vector.shape_cast %465 : vector<1x16x48xf32> to vector<16x48xf32>
    %467 = vector.broadcast %67 : vector<1x48xf32> to vector<16x48xf32>
    %468 = arith.mulf %466, %467 : vector<16x48xf32>
    %469 = arith.addf %464, %468 : vector<16x48xf32>
    %470 = vector.broadcast %68 : vector<1x48xf32> to vector<16x48xf32>
    %471 = arith.addf %469, %470 : vector<16x48xf32>
    %cst_272 = arith.constant 0.000000e+00 : f32
    %cst_273 = arith.constant 6.000000e+00 : f32
    %472 = vector.broadcast %cst_272 : f32 to vector<16x48xf32>
    %473 = arith.maximumf %472, %471 : vector<16x48xf32>
    %474 = vector.broadcast %cst_273 : f32 to vector<16x48xf32>
    %475 = arith.minimumf %474, %473 : vector<16x48xf32>
    %c112 = arith.constant 112 : index
    %c0_274 = arith.constant 0 : index
    %476 = vector.load %arg14[%c112, %c0_274] : memref<256x48xf32, #tpu.memory_space<vmem>>, vector<16x48xf32>
    tpu.vector_store %arg14[%c112, %c0_274], %475 {strides = array<i32>} : memref<256x48xf32, #tpu.memory_space<vmem>>, vector<16x48xf32>,
    %c0_275 = arith.constant 0 : index
    %c144_276 = arith.constant 144 : index
    %c0_277 = arith.constant 0 : index
    %477 = vector.load %arg13[%c0_275, %c144_276, %c0_277] : memref<1x328x48xf32, #tpu.memory_space<vmem>>, vector<1x16x48xf32>
    %478 = vector.shape_cast %477 : vector<1x16x48xf32> to vector<16x48xf32>
    %479 = vector.broadcast %51 : vector<1x48xf32> to vector<16x48xf32>
    %480 = arith.mulf %478, %479 : vector<16x48xf32>
    %c0_278 = arith.constant 0 : index
    %c145_279 = arith.constant 145 : index
    %c0_280 = arith.constant 0 : index
    %481 = vector.load %arg13[%c0_278, %c145_279, %c0_280] : memref<1x328x48xf32, #tpu.memory_space<vmem>>, vector<1x16x48xf32>
    %482 = vector.shape_cast %481 : vector<1x16x48xf32> to vector<16x48xf32>
    %483 = vector.broadcast %53 : vector<1x48xf32> to vector<16x48xf32>
    %484 = arith.mulf %482, %483 : vector<16x48xf32>
    %485 = arith.addf %480, %484 : vector<16x48xf32>
    %c0_281 = arith.constant 0 : index
    %c146_282 = arith.constant 146 : index
    %c0_283 = arith.constant 0 : index
    %486 = vector.load %arg13[%c0_281, %c146_282, %c0_283] : memref<1x328x48xf32, #tpu.memory_space<vmem>>, vector<1x16x48xf32>
    %487 = vector.shape_cast %486 : vector<1x16x48xf32> to vector<16x48xf32>
    %488 = vector.broadcast %55 : vector<1x48xf32> to vector<16x48xf32>
    %489 = arith.mulf %487, %488 : vector<16x48xf32>
    %490 = arith.addf %485, %489 : vector<16x48xf32>
    %c0_284 = arith.constant 0 : index
    %c162_285 = arith.constant 162 : index
    %c0_286 = arith.constant 0 : index
    %491 = vector.load %arg13[%c0_284, %c162_285, %c0_286] : memref<1x328x48xf32, #tpu.memory_space<vmem>>, vector<1x16x48xf32>
    %492 = vector.shape_cast %491 : vector<1x16x48xf32> to vector<16x48xf32>
    %493 = vector.broadcast %57 : vector<1x48xf32> to vector<16x48xf32>
    %494 = arith.mulf %492, %493 : vector<16x48xf32>
    %495 = arith.addf %490, %494 : vector<16x48xf32>
    %c0_287 = arith.constant 0 : index
    %c163_288 = arith.constant 163 : index
    %c0_289 = arith.constant 0 : index
    %496 = vector.load %arg13[%c0_287, %c163_288, %c0_289] : memref<1x328x48xf32, #tpu.memory_space<vmem>>, vector<1x16x48xf32>
    %497 = vector.shape_cast %496 : vector<1x16x48xf32> to vector<16x48xf32>
    %498 = vector.broadcast %59 : vector<1x48xf32> to vector<16x48xf32>
    %499 = arith.mulf %497, %498 : vector<16x48xf32>
    %500 = arith.addf %495, %499 : vector<16x48xf32>
    %c0_290 = arith.constant 0 : index
    %c164_291 = arith.constant 164 : index
    %c0_292 = arith.constant 0 : index
    %501 = vector.load %arg13[%c0_290, %c164_291, %c0_292] : memref<1x328x48xf32, #tpu.memory_space<vmem>>, vector<1x16x48xf32>
    %502 = vector.shape_cast %501 : vector<1x16x48xf32> to vector<16x48xf32>
    %503 = vector.broadcast %61 : vector<1x48xf32> to vector<16x48xf32>
    %504 = arith.mulf %502, %503 : vector<16x48xf32>
    %505 = arith.addf %500, %504 : vector<16x48xf32>
    %c0_293 = arith.constant 0 : index
    %c180 = arith.constant 180 : index
    %c0_294 = arith.constant 0 : index
    %506 = vector.load %arg13[%c0_293, %c180, %c0_294] : memref<1x328x48xf32, #tpu.memory_space<vmem>>, vector<1x16x48xf32>
    %507 = vector.shape_cast %506 : vector<1x16x48xf32> to vector<16x48xf32>
    %508 = vector.broadcast %63 : vector<1x48xf32> to vector<16x48xf32>
    %509 = arith.mulf %507, %508 : vector<16x48xf32>
    %510 = arith.addf %505, %509 : vector<16x48xf32>
    %c0_295 = arith.constant 0 : index
    %c181 = arith.constant 181 : index
    %c0_296 = arith.constant 0 : index
    %511 = vector.load %arg13[%c0_295, %c181, %c0_296] : memref<1x328x48xf32, #tpu.memory_space<vmem>>, vector<1x16x48xf32>
    %512 = vector.shape_cast %511 : vector<1x16x48xf32> to vector<16x48xf32>
    %513 = vector.broadcast %65 : vector<1x48xf32> to vector<16x48xf32>
    %514 = arith.mulf %512, %513 : vector<16x48xf32>
    %515 = arith.addf %510, %514 : vector<16x48xf32>
    %c0_297 = arith.constant 0 : index
    %c182 = arith.constant 182 : index
    %c0_298 = arith.constant 0 : index
    %516 = vector.load %arg13[%c0_297, %c182, %c0_298] : memref<1x328x48xf32, #tpu.memory_space<vmem>>, vector<1x16x48xf32>
    %517 = vector.shape_cast %516 : vector<1x16x48xf32> to vector<16x48xf32>
    %518 = vector.broadcast %67 : vector<1x48xf32> to vector<16x48xf32>
    %519 = arith.mulf %517, %518 : vector<16x48xf32>
    %520 = arith.addf %515, %519 : vector<16x48xf32>
    %521 = vector.broadcast %68 : vector<1x48xf32> to vector<16x48xf32>
    %522 = arith.addf %520, %521 : vector<16x48xf32>
    %cst_299 = arith.constant 0.000000e+00 : f32
    %cst_300 = arith.constant 6.000000e+00 : f32
    %523 = vector.broadcast %cst_299 : f32 to vector<16x48xf32>
    %524 = arith.maximumf %523, %522 : vector<16x48xf32>
    %525 = vector.broadcast %cst_300 : f32 to vector<16x48xf32>
    %526 = arith.minimumf %525, %524 : vector<16x48xf32>
    %c128_301 = arith.constant 128 : index
    %c0_302 = arith.constant 0 : index
    %527 = vector.load %arg14[%c128_301, %c0_302] : memref<256x48xf32, #tpu.memory_space<vmem>>, vector<16x48xf32>
    tpu.vector_store %arg14[%c128_301, %c0_302], %526 {strides = array<i32>} : memref<256x48xf32, #tpu.memory_space<vmem>>, vector<16x48xf32>,
    %c0_303 = arith.constant 0 : index
    %c162_304 = arith.constant 162 : index
    %c0_305 = arith.constant 0 : index
    %528 = vector.load %arg13[%c0_303, %c162_304, %c0_305] : memref<1x328x48xf32, #tpu.memory_space<vmem>>, vector<1x16x48xf32>
    %529 = vector.shape_cast %528 : vector<1x16x48xf32> to vector<16x48xf32>
    %530 = vector.broadcast %51 : vector<1x48xf32> to vector<16x48xf32>
    %531 = arith.mulf %529, %530 : vector<16x48xf32>
    %c0_306 = arith.constant 0 : index
    %c163_307 = arith.constant 163 : index
    %c0_308 = arith.constant 0 : index
    %532 = vector.load %arg13[%c0_306, %c163_307, %c0_308] : memref<1x328x48xf32, #tpu.memory_space<vmem>>, vector<1x16x48xf32>
    %533 = vector.shape_cast %532 : vector<1x16x48xf32> to vector<16x48xf32>
    %534 = vector.broadcast %53 : vector<1x48xf32> to vector<16x48xf32>
    %535 = arith.mulf %533, %534 : vector<16x48xf32>
    %536 = arith.addf %531, %535 : vector<16x48xf32>
    %c0_309 = arith.constant 0 : index
    %c164_310 = arith.constant 164 : index
    %c0_311 = arith.constant 0 : index
    %537 = vector.load %arg13[%c0_309, %c164_310, %c0_311] : memref<1x328x48xf32, #tpu.memory_space<vmem>>, vector<1x16x48xf32>
    %538 = vector.shape_cast %537 : vector<1x16x48xf32> to vector<16x48xf32>
    %539 = vector.broadcast %55 : vector<1x48xf32> to vector<16x48xf32>
    %540 = arith.mulf %538, %539 : vector<16x48xf32>
    %541 = arith.addf %536, %540 : vector<16x48xf32>
    %c0_312 = arith.constant 0 : index
    %c180_313 = arith.constant 180 : index
    %c0_314 = arith.constant 0 : index
    %542 = vector.load %arg13[%c0_312, %c180_313, %c0_314] : memref<1x328x48xf32, #tpu.memory_space<vmem>>, vector<1x16x48xf32>
    %543 = vector.shape_cast %542 : vector<1x16x48xf32> to vector<16x48xf32>
    %544 = vector.broadcast %57 : vector<1x48xf32> to vector<16x48xf32>
    %545 = arith.mulf %543, %544 : vector<16x48xf32>
    %546 = arith.addf %541, %545 : vector<16x48xf32>
    %c0_315 = arith.constant 0 : index
    %c181_316 = arith.constant 181 : index
    %c0_317 = arith.constant 0 : index
    %547 = vector.load %arg13[%c0_315, %c181_316, %c0_317] : memref<1x328x48xf32, #tpu.memory_space<vmem>>, vector<1x16x48xf32>
    %548 = vector.shape_cast %547 : vector<1x16x48xf32> to vector<16x48xf32>
    %549 = vector.broadcast %59 : vector<1x48xf32> to vector<16x48xf32>
    %550 = arith.mulf %548, %549 : vector<16x48xf32>
    %551 = arith.addf %546, %550 : vector<16x48xf32>
    %c0_318 = arith.constant 0 : index
    %c182_319 = arith.constant 182 : index
    %c0_320 = arith.constant 0 : index
    %552 = vector.load %arg13[%c0_318, %c182_319, %c0_320] : memref<1x328x48xf32, #tpu.memory_space<vmem>>, vector<1x16x48xf32>
    %553 = vector.shape_cast %552 : vector<1x16x48xf32> to vector<16x48xf32>
    %554 = vector.broadcast %61 : vector<1x48xf32> to vector<16x48xf32>
    %555 = arith.mulf %553, %554 : vector<16x48xf32>
    %556 = arith.addf %551, %555 : vector<16x48xf32>
    %c0_321 = arith.constant 0 : index
    %c198 = arith.constant 198 : index
    %c0_322 = arith.constant 0 : index
    %557 = vector.load %arg13[%c0_321, %c198, %c0_322] : memref<1x328x48xf32, #tpu.memory_space<vmem>>, vector<1x16x48xf32>
    %558 = vector.shape_cast %557 : vector<1x16x48xf32> to vector<16x48xf32>
    %559 = vector.broadcast %63 : vector<1x48xf32> to vector<16x48xf32>
    %560 = arith.mulf %558, %559 : vector<16x48xf32>
    %561 = arith.addf %556, %560 : vector<16x48xf32>
    %c0_323 = arith.constant 0 : index
    %c199 = arith.constant 199 : index
    %c0_324 = arith.constant 0 : index
    %562 = vector.load %arg13[%c0_323, %c199, %c0_324] : memref<1x328x48xf32, #tpu.memory_space<vmem>>, vector<1x16x48xf32>
    %563 = vector.shape_cast %562 : vector<1x16x48xf32> to vector<16x48xf32>
    %564 = vector.broadcast %65 : vector<1x48xf32> to vector<16x48xf32>
    %565 = arith.mulf %563, %564 : vector<16x48xf32>
    %566 = arith.addf %561, %565 : vector<16x48xf32>
    %c0_325 = arith.constant 0 : index
    %c200 = arith.constant 200 : index
    %c0_326 = arith.constant 0 : index
    %567 = vector.load %arg13[%c0_325, %c200, %c0_326] : memref<1x328x48xf32, #tpu.memory_space<vmem>>, vector<1x16x48xf32>
    %568 = vector.shape_cast %567 : vector<1x16x48xf32> to vector<16x48xf32>
    %569 = vector.broadcast %67 : vector<1x48xf32> to vector<16x48xf32>
    %570 = arith.mulf %568, %569 : vector<16x48xf32>
    %571 = arith.addf %566, %570 : vector<16x48xf32>
    %572 = vector.broadcast %68 : vector<1x48xf32> to vector<16x48xf32>
    %573 = arith.addf %571, %572 : vector<16x48xf32>
    %cst_327 = arith.constant 0.000000e+00 : f32
    %cst_328 = arith.constant 6.000000e+00 : f32
    %574 = vector.broadcast %cst_327 : f32 to vector<16x48xf32>
    %575 = arith.maximumf %574, %573 : vector<16x48xf32>
    %576 = vector.broadcast %cst_328 : f32 to vector<16x48xf32>
    %577 = arith.minimumf %576, %575 : vector<16x48xf32>
    %c144_329 = arith.constant 144 : index
    %c0_330 = arith.constant 0 : index
    %578 = vector.load %arg14[%c144_329, %c0_330] : memref<256x48xf32, #tpu.memory_space<vmem>>, vector<16x48xf32>
    tpu.vector_store %arg14[%c144_329, %c0_330], %577 {strides = array<i32>} : memref<256x48xf32, #tpu.memory_space<vmem>>, vector<16x48xf32>,
    %c0_331 = arith.constant 0 : index
    %c180_332 = arith.constant 180 : index
    %c0_333 = arith.constant 0 : index
    %579 = vector.load %arg13[%c0_331, %c180_332, %c0_333] : memref<1x328x48xf32, #tpu.memory_space<vmem>>, vector<1x16x48xf32>
    %580 = vector.shape_cast %579 : vector<1x16x48xf32> to vector<16x48xf32>
    %581 = vector.broadcast %51 : vector<1x48xf32> to vector<16x48xf32>
    %582 = arith.mulf %580, %581 : vector<16x48xf32>
    %c0_334 = arith.constant 0 : index
    %c181_335 = arith.constant 181 : index
    %c0_336 = arith.constant 0 : index
    %583 = vector.load %arg13[%c0_334, %c181_335, %c0_336] : memref<1x328x48xf32, #tpu.memory_space<vmem>>, vector<1x16x48xf32>
    %584 = vector.shape_cast %583 : vector<1x16x48xf32> to vector<16x48xf32>
    %585 = vector.broadcast %53 : vector<1x48xf32> to vector<16x48xf32>
    %586 = arith.mulf %584, %585 : vector<16x48xf32>
    %587 = arith.addf %582, %586 : vector<16x48xf32>
    %c0_337 = arith.constant 0 : index
    %c182_338 = arith.constant 182 : index
    %c0_339 = arith.constant 0 : index
    %588 = vector.load %arg13[%c0_337, %c182_338, %c0_339] : memref<1x328x48xf32, #tpu.memory_space<vmem>>, vector<1x16x48xf32>
    %589 = vector.shape_cast %588 : vector<1x16x48xf32> to vector<16x48xf32>
    %590 = vector.broadcast %55 : vector<1x48xf32> to vector<16x48xf32>
    %591 = arith.mulf %589, %590 : vector<16x48xf32>
    %592 = arith.addf %587, %591 : vector<16x48xf32>
    %c0_340 = arith.constant 0 : index
    %c198_341 = arith.constant 198 : index
    %c0_342 = arith.constant 0 : index
    %593 = vector.load %arg13[%c0_340, %c198_341, %c0_342] : memref<1x328x48xf32, #tpu.memory_space<vmem>>, vector<1x16x48xf32>
    %594 = vector.shape_cast %593 : vector<1x16x48xf32> to vector<16x48xf32>
    %595 = vector.broadcast %57 : vector<1x48xf32> to vector<16x48xf32>
    %596 = arith.mulf %594, %595 : vector<16x48xf32>
    %597 = arith.addf %592, %596 : vector<16x48xf32>
    %c0_343 = arith.constant 0 : index
    %c199_344 = arith.constant 199 : index
    %c0_345 = arith.constant 0 : index
    %598 = vector.load %arg13[%c0_343, %c199_344, %c0_345] : memref<1x328x48xf32, #tpu.memory_space<vmem>>, vector<1x16x48xf32>
    %599 = vector.shape_cast %598 : vector<1x16x48xf32> to vector<16x48xf32>
    %600 = vector.broadcast %59 : vector<1x48xf32> to vector<16x48xf32>
    %601 = arith.mulf %599, %600 : vector<16x48xf32>
    %602 = arith.addf %597, %601 : vector<16x48xf32>
    %c0_346 = arith.constant 0 : index
    %c200_347 = arith.constant 200 : index
    %c0_348 = arith.constant 0 : index
    %603 = vector.load %arg13[%c0_346, %c200_347, %c0_348] : memref<1x328x48xf32, #tpu.memory_space<vmem>>, vector<1x16x48xf32>
    %604 = vector.shape_cast %603 : vector<1x16x48xf32> to vector<16x48xf32>
    %605 = vector.broadcast %61 : vector<1x48xf32> to vector<16x48xf32>
    %606 = arith.mulf %604, %605 : vector<16x48xf32>
    %607 = arith.addf %602, %606 : vector<16x48xf32>
    %c0_349 = arith.constant 0 : index
    %c216 = arith.constant 216 : index
    %c0_350 = arith.constant 0 : index
    %608 = vector.load %arg13[%c0_349, %c216, %c0_350] : memref<1x328x48xf32, #tpu.memory_space<vmem>>, vector<1x16x48xf32>
    %609 = vector.shape_cast %608 : vector<1x16x48xf32> to vector<16x48xf32>
    %610 = vector.broadcast %63 : vector<1x48xf32> to vector<16x48xf32>
    %611 = arith.mulf %609, %610 : vector<16x48xf32>
    %612 = arith.addf %607, %611 : vector<16x48xf32>
    %c0_351 = arith.constant 0 : index
    %c217 = arith.constant 217 : index
    %c0_352 = arith.constant 0 : index
    %613 = vector.load %arg13[%c0_351, %c217, %c0_352] : memref<1x328x48xf32, #tpu.memory_space<vmem>>, vector<1x16x48xf32>
    %614 = vector.shape_cast %613 : vector<1x16x48xf32> to vector<16x48xf32>
    %615 = vector.broadcast %65 : vector<1x48xf32> to vector<16x48xf32>
    %616 = arith.mulf %614, %615 : vector<16x48xf32>
    %617 = arith.addf %612, %616 : vector<16x48xf32>
    %c0_353 = arith.constant 0 : index
    %c218 = arith.constant 218 : index
    %c0_354 = arith.constant 0 : index
    %618 = vector.load %arg13[%c0_353, %c218, %c0_354] : memref<1x328x48xf32, #tpu.memory_space<vmem>>, vector<1x16x48xf32>
    %619 = vector.shape_cast %618 : vector<1x16x48xf32> to vector<16x48xf32>
    %620 = vector.broadcast %67 : vector<1x48xf32> to vector<16x48xf32>
    %621 = arith.mulf %619, %620 : vector<16x48xf32>
    %622 = arith.addf %617, %621 : vector<16x48xf32>
    %623 = vector.broadcast %68 : vector<1x48xf32> to vector<16x48xf32>
    %624 = arith.addf %622, %623 : vector<16x48xf32>
    %cst_355 = arith.constant 0.000000e+00 : f32
    %cst_356 = arith.constant 6.000000e+00 : f32
    %625 = vector.broadcast %cst_355 : f32 to vector<16x48xf32>
    %626 = arith.maximumf %625, %624 : vector<16x48xf32>
    %627 = vector.broadcast %cst_356 : f32 to vector<16x48xf32>
    %628 = arith.minimumf %627, %626 : vector<16x48xf32>
    %c160 = arith.constant 160 : index
    %c0_357 = arith.constant 0 : index
    %629 = vector.load %arg14[%c160, %c0_357] : memref<256x48xf32, #tpu.memory_space<vmem>>, vector<16x48xf32>
    tpu.vector_store %arg14[%c160, %c0_357], %628 {strides = array<i32>} : memref<256x48xf32, #tpu.memory_space<vmem>>, vector<16x48xf32>,
    %c0_358 = arith.constant 0 : index
    %c198_359 = arith.constant 198 : index
    %c0_360 = arith.constant 0 : index
    %630 = vector.load %arg13[%c0_358, %c198_359, %c0_360] : memref<1x328x48xf32, #tpu.memory_space<vmem>>, vector<1x16x48xf32>
    %631 = vector.shape_cast %630 : vector<1x16x48xf32> to vector<16x48xf32>
    %632 = vector.broadcast %51 : vector<1x48xf32> to vector<16x48xf32>
    %633 = arith.mulf %631, %632 : vector<16x48xf32>
    %c0_361 = arith.constant 0 : index
    %c199_362 = arith.constant 199 : index
    %c0_363 = arith.constant 0 : index
    %634 = vector.load %arg13[%c0_361, %c199_362, %c0_363] : memref<1x328x48xf32, #tpu.memory_space<vmem>>, vector<1x16x48xf32>
    %635 = vector.shape_cast %634 : vector<1x16x48xf32> to vector<16x48xf32>
    %636 = vector.broadcast %53 : vector<1x48xf32> to vector<16x48xf32>
    %637 = arith.mulf %635, %636 : vector<16x48xf32>
    %638 = arith.addf %633, %637 : vector<16x48xf32>
    %c0_364 = arith.constant 0 : index
    %c200_365 = arith.constant 200 : index
    %c0_366 = arith.constant 0 : index
    %639 = vector.load %arg13[%c0_364, %c200_365, %c0_366] : memref<1x328x48xf32, #tpu.memory_space<vmem>>, vector<1x16x48xf32>
    %640 = vector.shape_cast %639 : vector<1x16x48xf32> to vector<16x48xf32>
    %641 = vector.broadcast %55 : vector<1x48xf32> to vector<16x48xf32>
    %642 = arith.mulf %640, %641 : vector<16x48xf32>
    %643 = arith.addf %638, %642 : vector<16x48xf32>
    %c0_367 = arith.constant 0 : index
    %c216_368 = arith.constant 216 : index
    %c0_369 = arith.constant 0 : index
    %644 = vector.load %arg13[%c0_367, %c216_368, %c0_369] : memref<1x328x48xf32, #tpu.memory_space<vmem>>, vector<1x16x48xf32>
    %645 = vector.shape_cast %644 : vector<1x16x48xf32> to vector<16x48xf32>
    %646 = vector.broadcast %57 : vector<1x48xf32> to vector<16x48xf32>
    %647 = arith.mulf %645, %646 : vector<16x48xf32>
    %648 = arith.addf %643, %647 : vector<16x48xf32>
    %c0_370 = arith.constant 0 : index
    %c217_371 = arith.constant 217 : index
    %c0_372 = arith.constant 0 : index
    %649 = vector.load %arg13[%c0_370, %c217_371, %c0_372] : memref<1x328x48xf32, #tpu.memory_space<vmem>>, vector<1x16x48xf32>
    %650 = vector.shape_cast %649 : vector<1x16x48xf32> to vector<16x48xf32>
    %651 = vector.broadcast %59 : vector<1x48xf32> to vector<16x48xf32>
    %652 = arith.mulf %650, %651 : vector<16x48xf32>
    %653 = arith.addf %648, %652 : vector<16x48xf32>
    %c0_373 = arith.constant 0 : index
    %c218_374 = arith.constant 218 : index
    %c0_375 = arith.constant 0 : index
    %654 = vector.load %arg13[%c0_373, %c218_374, %c0_375] : memref<1x328x48xf32, #tpu.memory_space<vmem>>, vector<1x16x48xf32>
    %655 = vector.shape_cast %654 : vector<1x16x48xf32> to vector<16x48xf32>
    %656 = vector.broadcast %61 : vector<1x48xf32> to vector<16x48xf32>
    %657 = arith.mulf %655, %656 : vector<16x48xf32>
    %658 = arith.addf %653, %657 : vector<16x48xf32>
    %c0_376 = arith.constant 0 : index
    %c234 = arith.constant 234 : index
    %c0_377 = arith.constant 0 : index
    %659 = vector.load %arg13[%c0_376, %c234, %c0_377] : memref<1x328x48xf32, #tpu.memory_space<vmem>>, vector<1x16x48xf32>
    %660 = vector.shape_cast %659 : vector<1x16x48xf32> to vector<16x48xf32>
    %661 = vector.broadcast %63 : vector<1x48xf32> to vector<16x48xf32>
    %662 = arith.mulf %660, %661 : vector<16x48xf32>
    %663 = arith.addf %658, %662 : vector<16x48xf32>
    %c0_378 = arith.constant 0 : index
    %c235 = arith.constant 235 : index
    %c0_379 = arith.constant 0 : index
    %664 = vector.load %arg13[%c0_378, %c235, %c0_379] : memref<1x328x48xf32, #tpu.memory_space<vmem>>, vector<1x16x48xf32>
    %665 = vector.shape_cast %664 : vector<1x16x48xf32> to vector<16x48xf32>
    %666 = vector.broadcast %65 : vector<1x48xf32> to vector<16x48xf32>
    %667 = arith.mulf %665, %666 : vector<16x48xf32>
    %668 = arith.addf %663, %667 : vector<16x48xf32>
    %c0_380 = arith.constant 0 : index
    %c236 = arith.constant 236 : index
    %c0_381 = arith.constant 0 : index
    %669 = vector.load %arg13[%c0_380, %c236, %c0_381] : memref<1x328x48xf32, #tpu.memory_space<vmem>>, vector<1x16x48xf32>
    %670 = vector.shape_cast %669 : vector<1x16x48xf32> to vector<16x48xf32>
    %671 = vector.broadcast %67 : vector<1x48xf32> to vector<16x48xf32>
    %672 = arith.mulf %670, %671 : vector<16x48xf32>
    %673 = arith.addf %668, %672 : vector<16x48xf32>
    %674 = vector.broadcast %68 : vector<1x48xf32> to vector<16x48xf32>
    %675 = arith.addf %673, %674 : vector<16x48xf32>
    %cst_382 = arith.constant 0.000000e+00 : f32
    %cst_383 = arith.constant 6.000000e+00 : f32
    %676 = vector.broadcast %cst_382 : f32 to vector<16x48xf32>
    %677 = arith.maximumf %676, %675 : vector<16x48xf32>
    %678 = vector.broadcast %cst_383 : f32 to vector<16x48xf32>
    %679 = arith.minimumf %678, %677 : vector<16x48xf32>
    %c176 = arith.constant 176 : index
    %c0_384 = arith.constant 0 : index
    %680 = vector.load %arg14[%c176, %c0_384] : memref<256x48xf32, #tpu.memory_space<vmem>>, vector<16x48xf32>
    tpu.vector_store %arg14[%c176, %c0_384], %679 {strides = array<i32>} : memref<256x48xf32, #tpu.memory_space<vmem>>, vector<16x48xf32>,
    %c0_385 = arith.constant 0 : index
    %c216_386 = arith.constant 216 : index
    %c0_387 = arith.constant 0 : index
    %681 = vector.load %arg13[%c0_385, %c216_386, %c0_387] : memref<1x328x48xf32, #tpu.memory_space<vmem>>, vector<1x16x48xf32>
    %682 = vector.shape_cast %681 : vector<1x16x48xf32> to vector<16x48xf32>
    %683 = vector.broadcast %51 : vector<1x48xf32> to vector<16x48xf32>
    %684 = arith.mulf %682, %683 : vector<16x48xf32>
    %c0_388 = arith.constant 0 : index
    %c217_389 = arith.constant 217 : index
    %c0_390 = arith.constant 0 : index
    %685 = vector.load %arg13[%c0_388, %c217_389, %c0_390] : memref<1x328x48xf32, #tpu.memory_space<vmem>>, vector<1x16x48xf32>
    %686 = vector.shape_cast %685 : vector<1x16x48xf32> to vector<16x48xf32>
    %687 = vector.broadcast %53 : vector<1x48xf32> to vector<16x48xf32>
    %688 = arith.mulf %686, %687 : vector<16x48xf32>
    %689 = arith.addf %684, %688 : vector<16x48xf32>
    %c0_391 = arith.constant 0 : index
    %c218_392 = arith.constant 218 : index
    %c0_393 = arith.constant 0 : index
    %690 = vector.load %arg13[%c0_391, %c218_392, %c0_393] : memref<1x328x48xf32, #tpu.memory_space<vmem>>, vector<1x16x48xf32>
    %691 = vector.shape_cast %690 : vector<1x16x48xf32> to vector<16x48xf32>
    %692 = vector.broadcast %55 : vector<1x48xf32> to vector<16x48xf32>
    %693 = arith.mulf %691, %692 : vector<16x48xf32>
    %694 = arith.addf %689, %693 : vector<16x48xf32>
    %c0_394 = arith.constant 0 : index
    %c234_395 = arith.constant 234 : index
    %c0_396 = arith.constant 0 : index
    %695 = vector.load %arg13[%c0_394, %c234_395, %c0_396] : memref<1x328x48xf32, #tpu.memory_space<vmem>>, vector<1x16x48xf32>
    %696 = vector.shape_cast %695 : vector<1x16x48xf32> to vector<16x48xf32>
    %697 = vector.broadcast %57 : vector<1x48xf32> to vector<16x48xf32>
    %698 = arith.mulf %696, %697 : vector<16x48xf32>
    %699 = arith.addf %694, %698 : vector<16x48xf32>
    %c0_397 = arith.constant 0 : index
    %c235_398 = arith.constant 235 : index
    %c0_399 = arith.constant 0 : index
    %700 = vector.load %arg13[%c0_397, %c235_398, %c0_399] : memref<1x328x48xf32, #tpu.memory_space<vmem>>, vector<1x16x48xf32>
    %701 = vector.shape_cast %700 : vector<1x16x48xf32> to vector<16x48xf32>
    %702 = vector.broadcast %59 : vector<1x48xf32> to vector<16x48xf32>
    %703 = arith.mulf %701, %702 : vector<16x48xf32>
    %704 = arith.addf %699, %703 : vector<16x48xf32>
    %c0_400 = arith.constant 0 : index
    %c236_401 = arith.constant 236 : index
    %c0_402 = arith.constant 0 : index
    %705 = vector.load %arg13[%c0_400, %c236_401, %c0_402] : memref<1x328x48xf32, #tpu.memory_space<vmem>>, vector<1x16x48xf32>
    %706 = vector.shape_cast %705 : vector<1x16x48xf32> to vector<16x48xf32>
    %707 = vector.broadcast %61 : vector<1x48xf32> to vector<16x48xf32>
    %708 = arith.mulf %706, %707 : vector<16x48xf32>
    %709 = arith.addf %704, %708 : vector<16x48xf32>
    %c0_403 = arith.constant 0 : index
    %c252 = arith.constant 252 : index
    %c0_404 = arith.constant 0 : index
    %710 = vector.load %arg13[%c0_403, %c252, %c0_404] : memref<1x328x48xf32, #tpu.memory_space<vmem>>, vector<1x16x48xf32>
    %711 = vector.shape_cast %710 : vector<1x16x48xf32> to vector<16x48xf32>
    %712 = vector.broadcast %63 : vector<1x48xf32> to vector<16x48xf32>
    %713 = arith.mulf %711, %712 : vector<16x48xf32>
    %714 = arith.addf %709, %713 : vector<16x48xf32>
    %c0_405 = arith.constant 0 : index
    %c253 = arith.constant 253 : index
    %c0_406 = arith.constant 0 : index
    %715 = vector.load %arg13[%c0_405, %c253, %c0_406] : memref<1x328x48xf32, #tpu.memory_space<vmem>>, vector<1x16x48xf32>
    %716 = vector.shape_cast %715 : vector<1x16x48xf32> to vector<16x48xf32>
    %717 = vector.broadcast %65 : vector<1x48xf32> to vector<16x48xf32>
    %718 = arith.mulf %716, %717 : vector<16x48xf32>
    %719 = arith.addf %714, %718 : vector<16x48xf32>
    %c0_407 = arith.constant 0 : index
    %c254 = arith.constant 254 : index
    %c0_408 = arith.constant 0 : index
    %720 = vector.load %arg13[%c0_407, %c254, %c0_408] : memref<1x328x48xf32, #tpu.memory_space<vmem>>, vector<1x16x48xf32>
    %721 = vector.shape_cast %720 : vector<1x16x48xf32> to vector<16x48xf32>
    %722 = vector.broadcast %67 : vector<1x48xf32> to vector<16x48xf32>
    %723 = arith.mulf %721, %722 : vector<16x48xf32>
    %724 = arith.addf %719, %723 : vector<16x48xf32>
    %725 = vector.broadcast %68 : vector<1x48xf32> to vector<16x48xf32>
    %726 = arith.addf %724, %725 : vector<16x48xf32>
    %cst_409 = arith.constant 0.000000e+00 : f32
    %cst_410 = arith.constant 6.000000e+00 : f32
    %727 = vector.broadcast %cst_409 : f32 to vector<16x48xf32>
    %728 = arith.maximumf %727, %726 : vector<16x48xf32>
    %729 = vector.broadcast %cst_410 : f32 to vector<16x48xf32>
    %730 = arith.minimumf %729, %728 : vector<16x48xf32>
    %c192 = arith.constant 192 : index
    %c0_411 = arith.constant 0 : index
    %731 = vector.load %arg14[%c192, %c0_411] : memref<256x48xf32, #tpu.memory_space<vmem>>, vector<16x48xf32>
    tpu.vector_store %arg14[%c192, %c0_411], %730 {strides = array<i32>} : memref<256x48xf32, #tpu.memory_space<vmem>>, vector<16x48xf32>,
    %c0_412 = arith.constant 0 : index
    %c234_413 = arith.constant 234 : index
    %c0_414 = arith.constant 0 : index
    %732 = vector.load %arg13[%c0_412, %c234_413, %c0_414] : memref<1x328x48xf32, #tpu.memory_space<vmem>>, vector<1x16x48xf32>
    %733 = vector.shape_cast %732 : vector<1x16x48xf32> to vector<16x48xf32>
    %734 = vector.broadcast %51 : vector<1x48xf32> to vector<16x48xf32>
    %735 = arith.mulf %733, %734 : vector<16x48xf32>
    %c0_415 = arith.constant 0 : index
    %c235_416 = arith.constant 235 : index
    %c0_417 = arith.constant 0 : index
    %736 = vector.load %arg13[%c0_415, %c235_416, %c0_417] : memref<1x328x48xf32, #tpu.memory_space<vmem>>, vector<1x16x48xf32>
    %737 = vector.shape_cast %736 : vector<1x16x48xf32> to vector<16x48xf32>
    %738 = vector.broadcast %53 : vector<1x48xf32> to vector<16x48xf32>
    %739 = arith.mulf %737, %738 : vector<16x48xf32>
    %740 = arith.addf %735, %739 : vector<16x48xf32>
    %c0_418 = arith.constant 0 : index
    %c236_419 = arith.constant 236 : index
    %c0_420 = arith.constant 0 : index
    %741 = vector.load %arg13[%c0_418, %c236_419, %c0_420] : memref<1x328x48xf32, #tpu.memory_space<vmem>>, vector<1x16x48xf32>
    %742 = vector.shape_cast %741 : vector<1x16x48xf32> to vector<16x48xf32>
    %743 = vector.broadcast %55 : vector<1x48xf32> to vector<16x48xf32>
    %744 = arith.mulf %742, %743 : vector<16x48xf32>
    %745 = arith.addf %740, %744 : vector<16x48xf32>
    %c0_421 = arith.constant 0 : index
    %c252_422 = arith.constant 252 : index
    %c0_423 = arith.constant 0 : index
    %746 = vector.load %arg13[%c0_421, %c252_422, %c0_423] : memref<1x328x48xf32, #tpu.memory_space<vmem>>, vector<1x16x48xf32>
    %747 = vector.shape_cast %746 : vector<1x16x48xf32> to vector<16x48xf32>
    %748 = vector.broadcast %57 : vector<1x48xf32> to vector<16x48xf32>
    %749 = arith.mulf %747, %748 : vector<16x48xf32>
    %750 = arith.addf %745, %749 : vector<16x48xf32>
    %c0_424 = arith.constant 0 : index
    %c253_425 = arith.constant 253 : index
    %c0_426 = arith.constant 0 : index
    %751 = vector.load %arg13[%c0_424, %c253_425, %c0_426] : memref<1x328x48xf32, #tpu.memory_space<vmem>>, vector<1x16x48xf32>
    %752 = vector.shape_cast %751 : vector<1x16x48xf32> to vector<16x48xf32>
    %753 = vector.broadcast %59 : vector<1x48xf32> to vector<16x48xf32>
    %754 = arith.mulf %752, %753 : vector<16x48xf32>
    %755 = arith.addf %750, %754 : vector<16x48xf32>
    %c0_427 = arith.constant 0 : index
    %c254_428 = arith.constant 254 : index
    %c0_429 = arith.constant 0 : index
    %756 = vector.load %arg13[%c0_427, %c254_428, %c0_429] : memref<1x328x48xf32, #tpu.memory_space<vmem>>, vector<1x16x48xf32>
    %757 = vector.shape_cast %756 : vector<1x16x48xf32> to vector<16x48xf32>
    %758 = vector.broadcast %61 : vector<1x48xf32> to vector<16x48xf32>
    %759 = arith.mulf %757, %758 : vector<16x48xf32>
    %760 = arith.addf %755, %759 : vector<16x48xf32>
    %c0_430 = arith.constant 0 : index
    %c270 = arith.constant 270 : index
    %c0_431 = arith.constant 0 : index
    %761 = vector.load %arg13[%c0_430, %c270, %c0_431] : memref<1x328x48xf32, #tpu.memory_space<vmem>>, vector<1x16x48xf32>
    %762 = vector.shape_cast %761 : vector<1x16x48xf32> to vector<16x48xf32>
    %763 = vector.broadcast %63 : vector<1x48xf32> to vector<16x48xf32>
    %764 = arith.mulf %762, %763 : vector<16x48xf32>
    %765 = arith.addf %760, %764 : vector<16x48xf32>
    %c0_432 = arith.constant 0 : index
    %c271 = arith.constant 271 : index
    %c0_433 = arith.constant 0 : index
    %766 = vector.load %arg13[%c0_432, %c271, %c0_433] : memref<1x328x48xf32, #tpu.memory_space<vmem>>, vector<1x16x48xf32>
    %767 = vector.shape_cast %766 : vector<1x16x48xf32> to vector<16x48xf32>
    %768 = vector.broadcast %65 : vector<1x48xf32> to vector<16x48xf32>
    %769 = arith.mulf %767, %768 : vector<16x48xf32>
    %770 = arith.addf %765, %769 : vector<16x48xf32>
    %c0_434 = arith.constant 0 : index
    %c272 = arith.constant 272 : index
    %c0_435 = arith.constant 0 : index
    %771 = vector.load %arg13[%c0_434, %c272, %c0_435] : memref<1x328x48xf32, #tpu.memory_space<vmem>>, vector<1x16x48xf32>
    %772 = vector.shape_cast %771 : vector<1x16x48xf32> to vector<16x48xf32>
    %773 = vector.broadcast %67 : vector<1x48xf32> to vector<16x48xf32>
    %774 = arith.mulf %772, %773 : vector<16x48xf32>
    %775 = arith.addf %770, %774 : vector<16x48xf32>
    %776 = vector.broadcast %68 : vector<1x48xf32> to vector<16x48xf32>
    %777 = arith.addf %775, %776 : vector<16x48xf32>
    %cst_436 = arith.constant 0.000000e+00 : f32
    %cst_437 = arith.constant 6.000000e+00 : f32
    %778 = vector.broadcast %cst_436 : f32 to vector<16x48xf32>
    %779 = arith.maximumf %778, %777 : vector<16x48xf32>
    %780 = vector.broadcast %cst_437 : f32 to vector<16x48xf32>
    %781 = arith.minimumf %780, %779 : vector<16x48xf32>
    %c208 = arith.constant 208 : index
    %c0_438 = arith.constant 0 : index
    %782 = vector.load %arg14[%c208, %c0_438] : memref<256x48xf32, #tpu.memory_space<vmem>>, vector<16x48xf32>
    tpu.vector_store %arg14[%c208, %c0_438], %781 {strides = array<i32>} : memref<256x48xf32, #tpu.memory_space<vmem>>, vector<16x48xf32>,
    %c0_439 = arith.constant 0 : index
    %c252_440 = arith.constant 252 : index
    %c0_441 = arith.constant 0 : index
    %783 = vector.load %arg13[%c0_439, %c252_440, %c0_441] : memref<1x328x48xf32, #tpu.memory_space<vmem>>, vector<1x16x48xf32>
    %784 = vector.shape_cast %783 : vector<1x16x48xf32> to vector<16x48xf32>
    %785 = vector.broadcast %51 : vector<1x48xf32> to vector<16x48xf32>
    %786 = arith.mulf %784, %785 : vector<16x48xf32>
    %c0_442 = arith.constant 0 : index
    %c253_443 = arith.constant 253 : index
    %c0_444 = arith.constant 0 : index
    %787 = vector.load %arg13[%c0_442, %c253_443, %c0_444] : memref<1x328x48xf32, #tpu.memory_space<vmem>>, vector<1x16x48xf32>
    %788 = vector.shape_cast %787 : vector<1x16x48xf32> to vector<16x48xf32>
    %789 = vector.broadcast %53 : vector<1x48xf32> to vector<16x48xf32>
    %790 = arith.mulf %788, %789 : vector<16x48xf32>
    %791 = arith.addf %786, %790 : vector<16x48xf32>
    %c0_445 = arith.constant 0 : index
    %c254_446 = arith.constant 254 : index
    %c0_447 = arith.constant 0 : index
    %792 = vector.load %arg13[%c0_445, %c254_446, %c0_447] : memref<1x328x48xf32, #tpu.memory_space<vmem>>, vector<1x16x48xf32>
    %793 = vector.shape_cast %792 : vector<1x16x48xf32> to vector<16x48xf32>
    %794 = vector.broadcast %55 : vector<1x48xf32> to vector<16x48xf32>
    %795 = arith.mulf %793, %794 : vector<16x48xf32>
    %796 = arith.addf %791, %795 : vector<16x48xf32>
    %c0_448 = arith.constant 0 : index
    %c270_449 = arith.constant 270 : index
    %c0_450 = arith.constant 0 : index
    %797 = vector.load %arg13[%c0_448, %c270_449, %c0_450] : memref<1x328x48xf32, #tpu.memory_space<vmem>>, vector<1x16x48xf32>
    %798 = vector.shape_cast %797 : vector<1x16x48xf32> to vector<16x48xf32>
    %799 = vector.broadcast %57 : vector<1x48xf32> to vector<16x48xf32>
    %800 = arith.mulf %798, %799 : vector<16x48xf32>
    %801 = arith.addf %796, %800 : vector<16x48xf32>
    %c0_451 = arith.constant 0 : index
    %c271_452 = arith.constant 271 : index
    %c0_453 = arith.constant 0 : index
    %802 = vector.load %arg13[%c0_451, %c271_452, %c0_453] : memref<1x328x48xf32, #tpu.memory_space<vmem>>, vector<1x16x48xf32>
    %803 = vector.shape_cast %802 : vector<1x16x48xf32> to vector<16x48xf32>
    %804 = vector.broadcast %59 : vector<1x48xf32> to vector<16x48xf32>
    %805 = arith.mulf %803, %804 : vector<16x48xf32>
    %806 = arith.addf %801, %805 : vector<16x48xf32>
    %c0_454 = arith.constant 0 : index
    %c272_455 = arith.constant 272 : index
    %c0_456 = arith.constant 0 : index
    %807 = vector.load %arg13[%c0_454, %c272_455, %c0_456] : memref<1x328x48xf32, #tpu.memory_space<vmem>>, vector<1x16x48xf32>
    %808 = vector.shape_cast %807 : vector<1x16x48xf32> to vector<16x48xf32>
    %809 = vector.broadcast %61 : vector<1x48xf32> to vector<16x48xf32>
    %810 = arith.mulf %808, %809 : vector<16x48xf32>
    %811 = arith.addf %806, %810 : vector<16x48xf32>
    %c0_457 = arith.constant 0 : index
    %c288 = arith.constant 288 : index
    %c0_458 = arith.constant 0 : index
    %812 = vector.load %arg13[%c0_457, %c288, %c0_458] : memref<1x328x48xf32, #tpu.memory_space<vmem>>, vector<1x16x48xf32>
    %813 = vector.shape_cast %812 : vector<1x16x48xf32> to vector<16x48xf32>
    %814 = vector.broadcast %63 : vector<1x48xf32> to vector<16x48xf32>
    %815 = arith.mulf %813, %814 : vector<16x48xf32>
    %816 = arith.addf %811, %815 : vector<16x48xf32>
    %c0_459 = arith.constant 0 : index
    %c289 = arith.constant 289 : index
    %c0_460 = arith.constant 0 : index
    %817 = vector.load %arg13[%c0_459, %c289, %c0_460] : memref<1x328x48xf32, #tpu.memory_space<vmem>>, vector<1x16x48xf32>
    %818 = vector.shape_cast %817 : vector<1x16x48xf32> to vector<16x48xf32>
    %819 = vector.broadcast %65 : vector<1x48xf32> to vector<16x48xf32>
    %820 = arith.mulf %818, %819 : vector<16x48xf32>
    %821 = arith.addf %816, %820 : vector<16x48xf32>
    %c0_461 = arith.constant 0 : index
    %c290 = arith.constant 290 : index
    %c0_462 = arith.constant 0 : index
    %822 = vector.load %arg13[%c0_461, %c290, %c0_462] : memref<1x328x48xf32, #tpu.memory_space<vmem>>, vector<1x16x48xf32>
    %823 = vector.shape_cast %822 : vector<1x16x48xf32> to vector<16x48xf32>
    %824 = vector.broadcast %67 : vector<1x48xf32> to vector<16x48xf32>
    %825 = arith.mulf %823, %824 : vector<16x48xf32>
    %826 = arith.addf %821, %825 : vector<16x48xf32>
    %827 = vector.broadcast %68 : vector<1x48xf32> to vector<16x48xf32>
    %828 = arith.addf %826, %827 : vector<16x48xf32>
    %cst_463 = arith.constant 0.000000e+00 : f32
    %cst_464 = arith.constant 6.000000e+00 : f32
    %829 = vector.broadcast %cst_463 : f32 to vector<16x48xf32>
    %830 = arith.maximumf %829, %828 : vector<16x48xf32>
    %831 = vector.broadcast %cst_464 : f32 to vector<16x48xf32>
    %832 = arith.minimumf %831, %830 : vector<16x48xf32>
    %c224 = arith.constant 224 : index
    %c0_465 = arith.constant 0 : index
    %833 = vector.load %arg14[%c224, %c0_465] : memref<256x48xf32, #tpu.memory_space<vmem>>, vector<16x48xf32>
    tpu.vector_store %arg14[%c224, %c0_465], %832 {strides = array<i32>} : memref<256x48xf32, #tpu.memory_space<vmem>>, vector<16x48xf32>,
    %c0_466 = arith.constant 0 : index
    %c270_467 = arith.constant 270 : index
    %c0_468 = arith.constant 0 : index
    %834 = vector.load %arg13[%c0_466, %c270_467, %c0_468] : memref<1x328x48xf32, #tpu.memory_space<vmem>>, vector<1x16x48xf32>
    %835 = vector.shape_cast %834 : vector<1x16x48xf32> to vector<16x48xf32>
    %836 = vector.broadcast %51 : vector<1x48xf32> to vector<16x48xf32>
    %837 = arith.mulf %835, %836 : vector<16x48xf32>
    %c0_469 = arith.constant 0 : index
    %c271_470 = arith.constant 271 : index
    %c0_471 = arith.constant 0 : index
    %838 = vector.load %arg13[%c0_469, %c271_470, %c0_471] : memref<1x328x48xf32, #tpu.memory_space<vmem>>, vector<1x16x48xf32>
    %839 = vector.shape_cast %838 : vector<1x16x48xf32> to vector<16x48xf32>
    %840 = vector.broadcast %53 : vector<1x48xf32> to vector<16x48xf32>
    %841 = arith.mulf %839, %840 : vector<16x48xf32>
    %842 = arith.addf %837, %841 : vector<16x48xf32>
    %c0_472 = arith.constant 0 : index
    %c272_473 = arith.constant 272 : index
    %c0_474 = arith.constant 0 : index
    %843 = vector.load %arg13[%c0_472, %c272_473, %c0_474] : memref<1x328x48xf32, #tpu.memory_space<vmem>>, vector<1x16x48xf32>
    %844 = vector.shape_cast %843 : vector<1x16x48xf32> to vector<16x48xf32>
    %845 = vector.broadcast %55 : vector<1x48xf32> to vector<16x48xf32>
    %846 = arith.mulf %844, %845 : vector<16x48xf32>
    %847 = arith.addf %842, %846 : vector<16x48xf32>
    %c0_475 = arith.constant 0 : index
    %c288_476 = arith.constant 288 : index
    %c0_477 = arith.constant 0 : index
    %848 = vector.load %arg13[%c0_475, %c288_476, %c0_477] : memref<1x328x48xf32, #tpu.memory_space<vmem>>, vector<1x16x48xf32>
    %849 = vector.shape_cast %848 : vector<1x16x48xf32> to vector<16x48xf32>
    %850 = vector.broadcast %57 : vector<1x48xf32> to vector<16x48xf32>
    %851 = arith.mulf %849, %850 : vector<16x48xf32>
    %852 = arith.addf %847, %851 : vector<16x48xf32>
    %c0_478 = arith.constant 0 : index
    %c289_479 = arith.constant 289 : index
    %c0_480 = arith.constant 0 : index
    %853 = vector.load %arg13[%c0_478, %c289_479, %c0_480] : memref<1x328x48xf32, #tpu.memory_space<vmem>>, vector<1x16x48xf32>
    %854 = vector.shape_cast %853 : vector<1x16x48xf32> to vector<16x48xf32>
    %855 = vector.broadcast %59 : vector<1x48xf32> to vector<16x48xf32>
    %856 = arith.mulf %854, %855 : vector<16x48xf32>
    %857 = arith.addf %852, %856 : vector<16x48xf32>
    %c0_481 = arith.constant 0 : index
    %c290_482 = arith.constant 290 : index
    %c0_483 = arith.constant 0 : index
    %858 = vector.load %arg13[%c0_481, %c290_482, %c0_483] : memref<1x328x48xf32, #tpu.memory_space<vmem>>, vector<1x16x48xf32>
    %859 = vector.shape_cast %858 : vector<1x16x48xf32> to vector<16x48xf32>
    %860 = vector.broadcast %61 : vector<1x48xf32> to vector<16x48xf32>
    %861 = arith.mulf %859, %860 : vector<16x48xf32>
    %862 = arith.addf %857, %861 : vector<16x48xf32>
    %c0_484 = arith.constant 0 : index
    %c306 = arith.constant 306 : index
    %c0_485 = arith.constant 0 : index
    %863 = vector.load %arg13[%c0_484, %c306, %c0_485] : memref<1x328x48xf32, #tpu.memory_space<vmem>>, vector<1x16x48xf32>
    %864 = vector.shape_cast %863 : vector<1x16x48xf32> to vector<16x48xf32>
    %865 = vector.broadcast %63 : vector<1x48xf32> to vector<16x48xf32>
    %866 = arith.mulf %864, %865 : vector<16x48xf32>
    %867 = arith.addf %862, %866 : vector<16x48xf32>
    %c0_486 = arith.constant 0 : index
    %c307 = arith.constant 307 : index
    %c0_487 = arith.constant 0 : index
    %868 = vector.load %arg13[%c0_486, %c307, %c0_487] : memref<1x328x48xf32, #tpu.memory_space<vmem>>, vector<1x16x48xf32>
    %869 = vector.shape_cast %868 : vector<1x16x48xf32> to vector<16x48xf32>
    %870 = vector.broadcast %65 : vector<1x48xf32> to vector<16x48xf32>
    %871 = arith.mulf %869, %870 : vector<16x48xf32>
    %872 = arith.addf %867, %871 : vector<16x48xf32>
    %c0_488 = arith.constant 0 : index
    %c308 = arith.constant 308 : index
    %c0_489 = arith.constant 0 : index
    %873 = vector.load %arg13[%c0_488, %c308, %c0_489] : memref<1x328x48xf32, #tpu.memory_space<vmem>>, vector<1x16x48xf32>
    %874 = vector.shape_cast %873 : vector<1x16x48xf32> to vector<16x48xf32>
    %875 = vector.broadcast %67 : vector<1x48xf32> to vector<16x48xf32>
    %876 = arith.mulf %874, %875 : vector<16x48xf32>
    %877 = arith.addf %872, %876 : vector<16x48xf32>
    %878 = vector.broadcast %68 : vector<1x48xf32> to vector<16x48xf32>
    %879 = arith.addf %877, %878 : vector<16x48xf32>
    %cst_490 = arith.constant 0.000000e+00 : f32
    %cst_491 = arith.constant 6.000000e+00 : f32
    %880 = vector.broadcast %cst_490 : f32 to vector<16x48xf32>
    %881 = arith.maximumf %880, %879 : vector<16x48xf32>
    %882 = vector.broadcast %cst_491 : f32 to vector<16x48xf32>
    %883 = arith.minimumf %882, %881 : vector<16x48xf32>
    %c240 = arith.constant 240 : index
    %c0_492 = arith.constant 0 : index
    %884 = vector.load %arg14[%c240, %c0_492] : memref<256x48xf32, #tpu.memory_space<vmem>>, vector<16x48xf32>
    tpu.vector_store %arg14[%c240, %c0_492], %883 {strides = array<i32>} : memref<256x48xf32, #tpu.memory_space<vmem>>, vector<16x48xf32>,
    %c0_493 = arith.constant 0 : index
    %c0_494 = arith.constant 0 : index
    %885 = vector.load %arg7[%c0_493, %c0_494] : memref<48x16xf32, #tpu.memory_space<vmem>>, vector<48x16xf32>
    %c0_495 = arith.constant 0 : index
    %c0_496 = arith.constant 0 : index
    %886 = vector.load %arg8[%c0_495, %c0_496] : memref<1x16xf32, #tpu.memory_space<vmem>>, vector<1x16xf32>
    %c0_497 = arith.constant 0 : index
    %c0_498 = arith.constant 0 : index
    %887 = vector.load %arg10[%c0_497, %c0_498] : memref<8x16xf32, #tpu.memory_space<vmem>>, vector<8x16xf32>
    %c0_499 = arith.constant 0 : index
    %c0_500 = arith.constant 0 : index
    %888 = vector.load %arg11[%c0_499, %c0_500] : memref<1x16xf32, #tpu.memory_space<vmem>>, vector<1x16xf32>
    %c0_501 = arith.constant 0 : index
    %c0_502 = arith.constant 0 : index
    %889 = vector.load %arg14[%c0_501, %c0_502] : memref<256x48xf32, #tpu.memory_space<vmem>>, vector<128x48xf32>
    %cst_503 = arith.constant dense<0.000000e+00> : vector<128x16xf32>
    %890 = tpu.matmul %889, %885, %cst_503 {dimension_numbers = #tpu.dot_dimension_numbers<[1], [0], [0], [1], [0, 0, 1, 1], [], []>} : vector<128x48xf32>, vector<48x16xf32>, vector<128x16xf32> -> vector<128x16xf32>
    %891 = vector.broadcast %886 : vector<1x16xf32> to vector<128x16xf32>
    %892 = arith.addf %890, %891 : vector<128x16xf32>
    %cst_504 = arith.constant 0.000000e+00 : f32
    %cst_505 = arith.constant 6.000000e+00 : f32
    %893 = vector.broadcast %cst_504 : f32 to vector<128x16xf32>
    %894 = arith.maximumf %893, %892 : vector<128x16xf32>
    %895 = vector.broadcast %cst_505 : f32 to vector<128x16xf32>
    %896 = arith.minimumf %895, %894 : vector<128x16xf32>
    %c0_506 = arith.constant 0 : index
    %c0_507 = arith.constant 0 : index
    %c0_508 = arith.constant 0 : index
    %897 = vector.load %arg9[%c0_506, %c0_507, %c0_508] : memref<1x256x8xf32, #tpu.memory_space<vmem>>, vector<1x128x8xf32>
    %898 = vector.shape_cast %897 : vector<1x128x8xf32> to vector<128x8xf32>
    %cst_509 = arith.constant dense<0.000000e+00> : vector<128x16xf32>
    %899 = tpu.matmul %898, %887, %cst_509 {dimension_numbers = #tpu.dot_dimension_numbers<[1], [0], [0], [1], [0, 0, 1, 1], [], []>} : vector<128x8xf32>, vector<8x16xf32>, vector<128x16xf32> -> vector<128x16xf32>
    %900 = vector.broadcast %888 : vector<1x16xf32> to vector<128x16xf32>
    %901 = arith.addf %899, %900 : vector<128x16xf32>
    %902 = arith.addf %896, %901 : vector<128x16xf32>
    %c0_510 = arith.constant 0 : index
    %c0_511 = arith.constant 0 : index
    %c0_512 = arith.constant 0 : index
    %903 = vector.load %arg12[%c0_510, %c0_511, %c0_512] : memref<1x256x16xf32, #tpu.memory_space<vmem>>, vector<1x128x16xf32>
    %904 = vector.shape_cast %903 : vector<1x128x16xf32> to vector<128x16xf32>
    %905 = vector.shape_cast %902 : vector<128x16xf32> to vector<1x128x16xf32>
    tpu.vector_store %arg12[%c0_510, %c0_511, %c0_512], %905 {strides = array<i32>} : memref<1x256x16xf32, #tpu.memory_space<vmem>>, vector<1x128x16xf32>,
    %c128_513 = arith.constant 128 : index
    %c0_514 = arith.constant 0 : index
    %906 = vector.load %arg14[%c128_513, %c0_514] : memref<256x48xf32, #tpu.memory_space<vmem>>, vector<128x48xf32>
    %cst_515 = arith.constant dense<0.000000e+00> : vector<128x16xf32>
    %907 = tpu.matmul %906, %885, %cst_515 {dimension_numbers = #tpu.dot_dimension_numbers<[1], [0], [0], [1], [0, 0, 1, 1], [], []>} : vector<128x48xf32>, vector<48x16xf32>, vector<128x16xf32> -> vector<128x16xf32>
    %908 = vector.broadcast %886 : vector<1x16xf32> to vector<128x16xf32>
    %909 = arith.addf %907, %908 : vector<128x16xf32>
    %cst_516 = arith.constant 0.000000e+00 : f32
    %cst_517 = arith.constant 6.000000e+00 : f32
    %910 = vector.broadcast %cst_516 : f32 to vector<128x16xf32>
    %911 = arith.maximumf %910, %909 : vector<128x16xf32>
    %912 = vector.broadcast %cst_517 : f32 to vector<128x16xf32>
    %913 = arith.minimumf %912, %911 : vector<128x16xf32>
    %c0_518 = arith.constant 0 : index
    %c128_519 = arith.constant 128 : index
    %c0_520 = arith.constant 0 : index
    %914 = vector.load %arg9[%c0_518, %c128_519, %c0_520] : memref<1x256x8xf32, #tpu.memory_space<vmem>>, vector<1x128x8xf32>
    %915 = vector.shape_cast %914 : vector<1x128x8xf32> to vector<128x8xf32>
    %cst_521 = arith.constant dense<0.000000e+00> : vector<128x16xf32>
    %916 = tpu.matmul %915, %887, %cst_521 {dimension_numbers = #tpu.dot_dimension_numbers<[1], [0], [0], [1], [0, 0, 1, 1], [], []>} : vector<128x8xf32>, vector<8x16xf32>, vector<128x16xf32> -> vector<128x16xf32>
    %917 = vector.broadcast %888 : vector<1x16xf32> to vector<128x16xf32>
    %918 = arith.addf %916, %917 : vector<128x16xf32>
    %919 = arith.addf %913, %918 : vector<128x16xf32>
    %c0_522 = arith.constant 0 : index
    %c128_523 = arith.constant 128 : index
    %c0_524 = arith.constant 0 : index
    %920 = vector.load %arg12[%c0_522, %c128_523, %c0_524] : memref<1x256x16xf32, #tpu.memory_space<vmem>>, vector<1x128x16xf32>
    %921 = vector.shape_cast %920 : vector<1x128x16xf32> to vector<128x16xf32>
    %922 = vector.shape_cast %919 : vector<128x16xf32> to vector<1x128x16xf32>
    tpu.vector_store %arg12[%c0_522, %c128_523, %c0_524], %922 {strides = array<i32>} : memref<1x256x16xf32, #tpu.memory_space<vmem>>, vector<1x128x16xf32>,
    return
  }
  func.func @transform_0(%arg0: i32) -> (i32, i32, i32, i32) {
    %c0_i32 = arith.constant 0 : i32
    %c0_i32_0 = arith.constant 0 : i32
    %c0_i32_1 = arith.constant 0 : i32
    %c0_i32_2 = arith.constant 0 : i32
    return %arg0, %c0_i32, %c0_i32_0, %c0_i32_1 : i32, i32, i32, i32
  }
  func.func @transform_1(%arg0: i32) -> (i32, i32, i32) {
    %c0_i32 = arith.constant 0 : i32
    %c0_i32_0 = arith.constant 0 : i32
    %c0_i32_1 = arith.constant 0 : i32
    %c0_i32_2 = arith.constant 0 : i32
    return %c0_i32, %c0_i32_0, %c0_i32_1 : i32, i32, i32
  }
  func.func @transform_2(%arg0: i32) -> (i32, i32) {
    %c0_i32 = arith.constant 0 : i32
    %c0_i32_0 = arith.constant 0 : i32
    %c0_i32_1 = arith.constant 0 : i32
    return %c0_i32, %c0_i32_0 : i32, i32
  }
  func.func @transform_3(%arg0: i32) -> (i32, i32) {
    %c0_i32 = arith.constant 0 : i32
    %c0_i32_0 = arith.constant 0 : i32
    %c0_i32_1 = arith.constant 0 : i32
    return %c0_i32, %c0_i32_0 : i32, i32
  }
  func.func @transform_4(%arg0: i32) -> (i32, i32, i32) {
    %c0_i32 = arith.constant 0 : i32
    %c0_i32_0 = arith.constant 0 : i32
    %c0_i32_1 = arith.constant 0 : i32
    %c0_i32_2 = arith.constant 0 : i32
    return %c0_i32, %c0_i32_0, %c0_i32_1 : i32, i32, i32
  }
  func.func @transform_5(%arg0: i32) -> (i32, i32) {
    %c0_i32 = arith.constant 0 : i32
    %c0_i32_0 = arith.constant 0 : i32
    %c0_i32_1 = arith.constant 0 : i32
    return %c0_i32, %c0_i32_0 : i32, i32
  }
  func.func @transform_6(%arg0: i32) -> (i32, i32) {
    %c0_i32 = arith.constant 0 : i32
    %c0_i32_0 = arith.constant 0 : i32
    %c0_i32_1 = arith.constant 0 : i32
    return %c0_i32, %c0_i32_0 : i32, i32
  }
  func.func @transform_7(%arg0: i32) -> (i32, i32) {
    %c0_i32 = arith.constant 0 : i32
    %c0_i32_0 = arith.constant 0 : i32
    %c0_i32_1 = arith.constant 0 : i32
    return %c0_i32, %c0_i32_0 : i32, i32
  }
  func.func @transform_8(%arg0: i32) -> (i32, i32, i32) {
    %c0_i32 = arith.constant 0 : i32
    %c0_i32_0 = arith.constant 0 : i32
    %c0_i32_1 = arith.constant 0 : i32
    return %arg0, %c0_i32, %c0_i32_0 : i32, i32, i32
  }
  func.func @transform_9(%arg0: i32) -> (i32, i32) {
    %c0_i32 = arith.constant 0 : i32
    %c0_i32_0 = arith.constant 0 : i32
    %c0_i32_1 = arith.constant 0 : i32
    return %c0_i32, %c0_i32_0 : i32, i32
  }
  func.func @transform_10(%arg0: i32) -> (i32, i32) {
    %c0_i32 = arith.constant 0 : i32
    %c0_i32_0 = arith.constant 0 : i32
    %c0_i32_1 = arith.constant 0 : i32
    return %c0_i32, %c0_i32_0 : i32, i32
  }
  func.func @transform_11(%arg0: i32) -> (i32, i32, i32) {
    %c0_i32 = arith.constant 0 : i32
    %c0_i32_0 = arith.constant 0 : i32
    %c0_i32_1 = arith.constant 0 : i32
    return %arg0, %c0_i32, %c0_i32_0 : i32, i32, i32
  }
}

</mosaic_0001>

<bundles_post_ra>
// kernel: tpu_custom_call.1
= control target key start
LH: loop header
LB: loop body
LE: loop exit
PB: predicated region body
PF: predicated region fallthrough
CT: control target
= control target key end

     0   :  { %s4071_s17 = smov 0   ;;  %s5746_s0 = inlined_call_operand.vmem [shape: f32[2,1,328,8], index: 0, kind: input, shape index: {}]   ;;  %s5747_s1 = inlined_call_operand.vmem [shape: f32[1,328,1], index: 1, kind: input, shape index: {}]   ;;  %s5748_s2 = inlined_call_operand.vmem [shape: f32[8,48], index: 2, kind: input, shape index: {}]   ;;  %s5749_s3 = inlined_call_operand.vmem [shape: f32[1,48], index: 3, kind: input, shape index: {}]   ;;  %s5750_s4 = inlined_call_operand.vmem [shape: f32[9,1,48], index: 4, kind: input, shape index: {}]   ;;  %s5751_s5 = inlined_call_operand.vmem [shape: f32[1,48], index: 5, kind: input, shape index: {}]   ;;  %s5752_s6 = inlined_call_operand.vmem [shape: f32[48,16], index: 6, kind: input, shape index: {}]   ;;  %s5753_s7 = inlined_call_operand.vmem [shape: f32[1,16], index: 7, kind: input, shape index: {}]   ;;  %s5754_s8 = inlined_call_operand.vmem [shape: f32[2,256,8], index: 8, kind: input, shape index: {}]   ;;  %s5755_s9 = inlined_call_operand.vmem [shape: f32[8,16], index: 9, kind: input, shape index: {}]   ;;  %s5756_s10 = inlined_call_operand.vmem [shape: f32[1,16], index: 10, kind: input, shape index: {}]   ;;  %s5757_s11 = inlined_call_operand.vmem [shape: f32[2,256,16], index: 11, kind: output, shape index: {}]  }
   0x1 LB: > { %s3482_s18 = sadd.s32 4294967295, %s4006_s17   ;;  %p3486_p0 = scmp.ge.s32.totalorder %s4006_s17, 1  ;;  %s4006_s17 = sphi %s4071_s17, %s21_s17  }
   0x2   : > { %p347_p1 = scmp.lt.s32.totalorder %s4006_s17, 3 }
   0x4   : > { %p348_p2 = pnand %p3486_p0, %p347_p1 }
   0x6   : > { %351 = sbr.rel (%p348_p2) target bundleno = 717 (0x2cd), region = 64 }
   0xd   : > { %v4082_v0 = vld [vmem:[%s5748_s2] sm:$0xff]  ;;  %p392_p3 = scmp.lt.s32.totalorder %s3482_s18, 1  ;;  %v659_v2 = vld [vmem:[%s5747_s1 + $0x10] sm:$0xff]  ;;  %v4008_v3 = vmov 0   ;;  %vm431_vm0 = vcmask 64512   ;;  %v658_v4 = vld [vmem:[%s5747_s1 + $0x8] sm:$0xff] }
   0xe   : > { %3744 = vmatprep.subr.mxu0 %v4082_v0  ;;  %3973 = vmatprep.subr.mxu1 %v4082_v0  ;;  %v657_v1 = vld [vmem:[%s5747_s1] sm:$0xff]  ;;  %v660_v11 = vld [vmem:[%s5747_s1 + $0x18] sm:$0xff]  ;;  %v4009_v17 = vmov 0.0   ;;  %v662_v18 = vld [vmem:[%s5747_s1 + $0x28] sm:$0xff]  ;;  %vm4010_vm1 = vmmov 0   ;;  %vm769_vm2 = vcmask 392192  }
   0xf   : > { %3745 = vmatpush3.msra.mxu0 %v4082_v0  ;;  %s5875_s18 = smov (!%p392_p3, %s3482_s18), 1  ;;  %3974 = vmatpush3.msra.mxu1 %v4082_v0  ;;  %v661_v16 = vld [vmem:[%s5747_s1 + $0x20] sm:$0xff]  ;;  %v663_v23 = vld [vmem:[%s5747_s1 + $0x30] sm:$0xff]  ;;  %v664_v24 = vld [vmem:[%s5747_s1 + $0x38] sm:$0xff]  ;;  %vm2916_vm3 = vcmask 130048  }
  0x10   : > { %3770 = vmatprep.subr.mxu0 %v4082_v0  ;;  %3987 = vset.pattern.permute.xlu0 %v4008_v3  ;;  %s3975_s25 = smul.u32 328, %s5875_s18  ;;  %v665_v29 = vld [vmem:[%s5747_s1 + $0x40] sm:$0xff]  ;;  %v666_v30 = vld [vmem:[%s5747_s1 + $0x48] sm:$0xff]  ;;  %v667_v34 = vld [vmem:[%s5747_s1 + $0x50] sm:$0xff]  ;;  %s3620_s14 = sshll.u32 %s5875_s18, 8 }
  0x11   : > { %675 = vperm.xlu0 %3987, %v657_v1   ;;  %3988 = vset.pattern.permute.xlu1 %v4008_v3  ;;  %v668_v35 = vld [vmem:[%s5747_s1 + $0x58] sm:$0xff]  ;;  %v669_v38 = vld [vmem:[%s5747_s1 + $0x60] sm:$0xff]  ;;  %v670_v39 = vld [vmem:[%s5747_s1 + $0x68] sm:$0xff]  ;;  %s5405_s19 = scalar_lea.vmem %s5754_s8, %s3620_s14 }
  0x12   : > { %685 = vperm.xlu1 %3988, %v659_v2   ;;  %s4101_s28 = scalar_lea.vmem %s5746_s0, %s3975_s25  ;;  %v671_v42 = vld [vmem:[%s5747_s1 + $0x70] sm:$0xff]  ;;  %v672_v43 = vld [vmem:[%s5747_s1 + $0x78] sm:$0xff]  ;;  %v1027_v46 = vld [vmem:[%s5747_s1 + $0x80] sm:$0xff] }
  0x13   : > { %v409_v5 = vld [vmem:[%s4101_s28] sm:$0xff]  ;;  %v792_v6 = vld [vmem:[%s4101_s28 + $0xb0] sm:$0xff]  ;;  %v410_v7 = vld [vmem:[%s4101_s28 + $0x8] sm:$0xff] }
  0x14   : > { %3746 = vmatprep.mubr.msk.f32.mxu0 %vm431_vm0, %v409_v5  ;;  %3781 = vmatprep.mubr.msk.f32.mxu1 %vm431_vm0, %v792_v6  ;;  %v793_v8 = vld [vmem:[%s4101_s28 + $0xb8] sm:$0xff]  ;;  %v411_v9 = vld [vmem:[%s4101_s28 + $0x10] sm:$0xff]  ;;  %v794_v10 = vld [vmem:[%s4101_s28 + $0xc0] sm:$0xff] }
  0x15   : > { %3747 = vmatmul.mubr.msk.f32.vlgmr.msra.gmra.mrb[0].mxu0 %vm431_vm0, %v410_v7  ;;  %3782 = vmatmul.mubr.msk.f32.vlgmr.msra.gmra.mrb[0].mxu1 %vm431_vm0, %v793_v8  ;;  %v412_v12 = vld [vmem:[%s4101_s28 + $0x18] sm:$0xff]  ;;  %v795_v13 = vld [vmem:[%s4101_s28 + $0xc8] sm:$0xff]  ;;  %v413_v14 = vld [vmem:[%s4101_s28 + $0x20] sm:$0xff] }
  0x16   : > { %3771 = vmatpush3.msra.mxu0 %v4082_v0  ;;  %3749 = vmatprep.mubr.msk.f32.mxu0 %vm431_vm0, %v411_v9  ;;  %v796_v15 = vld [vmem:[%s4101_s28 + $0xd0] sm:$0xff]  ;;  %v414_v19 = vld [vmem:[%s4101_s28 + $0x28] sm:$0xff]  ;;  %v797_v20 = vld [vmem:[%s4101_s28 + $0xd8] sm:$0xff] }
  0x17   : > { %3784 = vmatprep.mubr.msk.f32.mxu1 %vm431_vm0, %v794_v10  ;;  %680 = vperm.xlu0 %3987, %v658_v4   ;;  %v415_v21 = vld [vmem:[%s4101_s28 + $0x30] sm:$0xff]  ;;  %v798_v22 = vld [vmem:[%s4101_s28 + $0xe0] sm:$0xff]  ;;  %v416_v25 = vld [vmem:[%s4101_s28 + $0x38] sm:$0xff] }
  0x18   : > { %690 = vperm.xlu1 %3988, %v660_v11   ;;  %3796 = vmatprep.subr.mxu0 %v4009_v17  ;;  %v799_v26 = vld [vmem:[%s4101_s28 + $0xe8] sm:$0xff]  ;;  %v417_v27 = vld [vmem:[%s4101_s28 + $0x40] sm:$0xff]  ;;  %v800_v28 = vld [vmem:[%s4101_s28 + $0xf0] sm:$0xff] }
  0x19   : > { %3750 = vmatmul.mubr.msk.f32.gmra.mrb[2].mxu0 %vm431_vm0, %v412_v12  ;;  %3785 = vmatmul.mubr.msk.f32.gmra.mrb[2].mxu1 %vm431_vm0, %v795_v13  ;;  %v418_v31 = vld [vmem:[%s4101_s28 + $0x48] sm:$0xff]  ;;  %v801_v32 = vld [vmem:[%s4101_s28 + $0xf8] sm:$0xff]  ;;  %v419_v33 = vld [vmem:[%s4101_s28 + $0x50] sm:$0xff] }
  0x1a   : > { %3752 = vmatprep.mubr.msk.f32.mxu0 %vm431_vm0, %v413_v14  ;;  %3787 = vmatprep.mubr.msk.f32.mxu1 %vm431_vm0, %v796_v15  ;;  %v420_v36 = vld [vmem:[%s4101_s28 + $0x58] sm:$0xff]  ;;  %v421_v37 = vld [vmem:[%s4101_s28 + $0x60] sm:$0xff]  ;;  %v422_v40 = vld [vmem:[%s4101_s28 + $0x68] sm:$0xff] }
  0x1b   : > { %695 = vperm.xlu0 %3987, %v661_v16   ;;  %v423_v41 = vld [vmem:[%s4101_s28 + $0x70] sm:$0xff]  ;;  %v424_v44 = vld [vmem:[%s4101_s28 + $0x78] sm:$0xff]  ;;  %v786_v45 = vld [vmem:[%s4101_s28 + $0x80] sm:$0xff] }
  0x1c   : > { %700 = vperm.xlu1 %3988, %v662_v18   ;;  %v1028_v47 = vld [vmem:[%s5747_s1 + $0x88] sm:$0xff]  ;;  %v788_v49 = vld [vmem:[%s4101_s28 + $0x90] sm:$0xff]  ;;  %v1030_v51 = vld [vmem:[%s5747_s1 + $0x98] sm:$0xff] }
  0x1d   : > { %3753 = vmatmul.mubr.msk.f32.gmra.mrb[4].mxu0 %vm431_vm0, %v414_v19  ;;  %3788 = vmatmul.mubr.msk.f32.gmra.mrb[4].mxu1 %vm431_vm0, %v797_v20  ;;  %v787_v48 = vld [vmem:[%s4101_s28 + $0x88] sm:$0xff]  ;;  %v1029_v50 = vld [vmem:[%s5747_s1 + $0x90] sm:$0xff]  ;;  %v789_v52 = vld [vmem:[%s4101_s28 + $0x98] sm:$0xff] }
  0x1e   : > { %3755 = vmatprep.mubr.msk.f32.mxu0 %vm431_vm0, %v415_v21  ;;  %3790 = vmatprep.mubr.msk.f32.mxu1 %vm431_vm0, %v798_v22  ;;  %v790_v53 = vld [vmem:[%s4101_s28 + $0xa0] sm:$0xff]  ;;  %v1032_v55 = vld [vmem:[%s5747_s1 + $0xa8] sm:$0xff]  ;;  %v1033_v57 = vld [vmem:[%s5747_s1 + $0xb0] sm:$0xff] }
  0x1f   : > { %705 = vperm.xlu0 %3987, %v663_v23   ;;  %v1031_v54 = vld [vmem:[%s5747_s1 + $0xa0] sm:$0xff]  ;;  %v791_v56 = vld [vmem:[%s4101_s28 + $0xa8] sm:$0xff]  ;;  %v1034_v58 = vld [vmem:[%s5747_s1 + $0xb8] sm:$0xff] }
  0x20   : > { %710 = vperm.xlu1 %3988, %v664_v24   ;;  %v1155_v59 = vld [vmem:[%s4101_s28 + $0x100] sm:$0xff]  ;;  %v1036_v61 = vld [vmem:[%s5747_s1 + $0xc8] sm:$0xff]  ;;  %v1037_v63 = vld [vmem:[%s5747_s1 + $0xd0] sm:$0xff] }
  0x21   : > { %3756 = vmatmul.mubr.msk.f32.gmra.mrb[6].mxu0 %vm431_vm0, %v416_v25  ;;  %3791 = vmatmul.mubr.msk.f32.gmra.mrb[6].mxu1 %vm431_vm0, %v799_v26  ;;  %v1035_v60 = vld [vmem:[%s5747_s1 + $0xc0] sm:$0xff]  ;;  %v1156_v62 = vld [vmem:[%s4101_s28 + $0x108] sm:$0xff]  ;;  %v1157_v1 = vld [vmem:[%s4101_s28 + $0x110] sm:$0xff] }
  0x22   : > { %3758 = vmatprep.mubr.msk.f32.mxu0 %vm431_vm0, %v417_v27  ;;  %3793 = vmatprep.mubr.msk.f32.mxu1 %vm431_vm0, %v800_v28  ;;  %v1039_v2 = vld [vmem:[%s5747_s1 + $0xe0] sm:$0xff]  ;;  %v1040_v3 = vld [vmem:[%s5747_s1 + $0xe8] sm:$0xff]  ;;  %v1158_v4 = vld [vmem:[%s4101_s28 + $0x118] sm:$0xff] }
  0x23   : > { %715 = vperm.xlu0 %3987, %v665_v29   ;;  %v1041_v5 = vld [vmem:[%s5747_s1 + $0xf0] sm:$0xff]  ;;  %v1042_v6 = vld [vmem:[%s5747_s1 + $0xf8] sm:$0xff]  ;;  %v1159_v7 = vld [vmem:[%s4101_s28 + $0x120] sm:$0xff] }
  0x24   : > { %720 = vperm.xlu1 %3988, %v666_v30   ;;  %v1319_v8 = vld [vmem:[%s5747_s1 + $0x100] sm:$0xff]  ;;  %v1320_v9 = vld [vmem:[%s5747_s1 + $0x108] sm:$0xff]  ;;  %v1321_v11 = vld [vmem:[%s5747_s1 + $0x110] sm:$0xff] }
  0x25   : > { %3759 = vmatmul.mubr.msk.f32.gmra.mrb[8].mxu0 %vm431_vm0, %v418_v31  ;;  %3794 = vmatmul.mubr.msk.f32.gmra.mrb[8].mxu1 %vm431_vm0, %v801_v32  ;;  %v1160_v10 = vld [vmem:[%s4101_s28 + $0x128] sm:$0xff]  ;;  %v1322_v12 = vld [vmem:[%s5747_s1 + $0x118] sm:$0xff]  ;;  %v1161_v13 = vld [vmem:[%s4101_s28 + $0x130] sm:$0xff] }
  0x26   : > { %3761 = vmatprep.mubr.msk.f32.mxu0 %vm431_vm0, %v419_v33  ;;  %v1323_v14 = vld [vmem:[%s5747_s1 + $0x120] sm:$0xff]  ;;  %v1324_v15 = vld [vmem:[%s5747_s1 + $0x128] sm:$0xff]  ;;  %v1162_v16 = vld [vmem:[%s4101_s28 + $0x138] sm:$0xff] }
  0x27   : > { %725 = vperm.xlu0 %3987, %v667_v34   ;;  %v1325_v18 = vld [vmem:[%s5747_s1 + $0x130] sm:$0xff]  ;;  %v1326_v19 = vld [vmem:[%s5747_s1 + $0x138] sm:$0xff]  ;;  %v1163_v20 = vld [vmem:[%s4101_s28 + $0x140] sm:$0xff]  ;;  %s5569_s28 = scalar_lea.vmem %s5757_s11, %s3620_s14 }
  0x28   : > { %730 = vperm.xlu1 %3988, %v668_v35   ;;  %v1327_v21 = vld [vmem:[%s5747_s1 + $0x140] sm:$0xff] }
  0x29   : > { %3762 = vmatmul.mubr.msk.f32.gmra.mrb[10].mxu0 %vm431_vm0, %v420_v36 }
  0x2a   : > { %3764 = vmatprep.mubr.msk.f32.mxu0 %vm431_vm0, %v421_v37  ;;  %v2429_v37 = vld [vmem:[%s5752_s6] sm:$0xff] }
  0x2b   : > { %735 = vperm.xlu0 %3987, %v669_v38   ;;  %v2430_v38 = vld [vmem:[%s5752_s6 + $0x8] sm:$0xff] }
  0x2c   : > { %740 = vperm.xlu1 %3988, %v670_v39   ;;  %v3949_v39 = vpack.c.bf16 %v2430_v38, %v2429_v37 }
  0x2d   : > { %3765 = vmatmul.mubr.msk.f32.gmra.mrb[12].mxu0 %vm431_vm0, %v422_v40 }
  0x2e   : > { %3767 = vmatprep.mubr.msk.f32.mxu0 %vm431_vm0, %v423_v41  ;;  %3950 = vmatprep.subr.bf16.mxu1 %v3949_v39 }
  0x2f   : > { %745 = vperm.xlu0 %3987, %v671_v42   ;;  %3952 = vmatpush3.bf16.msra.mxu1 %v3949_v39 }
  0x30   : > { %750 = vperm.xlu1 %3988, %v672_v43  }
  0x31   : > { %3768 = vmatmul.mubr.msk.f32.gmra.mrb[14].mxu0 %vm431_vm0, %v424_v44 }
  0x32   : > { %3772 = vmatprep.mubr.msk.f32.mxu0 %vm431_vm0, %v786_v45 }
  0x33   : > { %1045 = vperm.xlu0 %3987, %v1027_v46   ;;  %v4376_v46 = vld [vmem:[%s5749_s3] ss:$0 sm:$0xff] }
  0x34   : > { %1050 = vperm.xlu1 %3988, %v1028_v47  }
  0x35   : > { %3773 = vmatmul.mubr.msk.f32.vlgmr.msra.gmra.mrb[16].mxu0 %vm431_vm0, %v787_v48 }
  0x36   : > { %3775 = vmatprep.mubr.msk.f32.mxu0 %vm431_vm0, %v788_v49  ;;  %3797 = vmatpush3.msra.mxu0 %v4082_v0  ;;  %v1038_v0 = vld [vmem:[%s5747_s1 + $0xd8] sm:$0xff]  ;;  %v2431_v49 = vld [vmem:[%s5752_s6 + $0x10] sm:$0xff] }
  0x37   : > { %1055 = vperm.xlu0 %3987, %v1029_v50   ;;  %3962 = vmatprep.subr.bf16.mxu0 %v3949_v39  ;;  %v2432_v50 = vld [vmem:[%s5752_s6 + $0x18] sm:$0xff] }
  0x38   : > { %1060 = vperm.xlu1 %3988, %v1030_v51  }
  0x39   : > { %3776 = vmatmul.mubr.msk.f32.gmra.mrb[18].mxu0 %vm431_vm0, %v789_v52 }
  0x3a   : > { %3778 = vmatprep.mubr.msk.f32.mxu0 %vm431_vm0, %v790_v53  ;;  %v3953_v53 = vpack.c.bf16 %v2432_v50, %v2431_v49 }
  0x3b   : > { %1065 = vperm.xlu0 %3987, %v1031_v54  }
  0x3c   : > { %1070 = vperm.xlu1 %3988, %v1032_v55   ;;  %3954 = vmatprep.subr.bf16.mxu1 %v3953_v53 }
  0x3d   : > { %3779 = vmatmul.mubr.msk.f32.gmra.mrb[20].mxu0 %vm431_vm0, %v791_v56  ;;  %3956 = vmatpush3.bf16.msra.mxu1 %v3953_v53 }
  0x3e   : > { %3798 = vmatprep.mubr.msk.f32.mxu0 %vm4010_vm1, %v4009_v17 }
  0x3f   : > { %1075 = vperm.xlu0 %3987, %v1033_v57  }
  0x40   : > { %1080 = vperm.xlu1 %3988, %v1034_v58  }
  0x41   : > { %3799 = vmatmul.mubr.msk.f32.vlgmr.msra.gmra.mrb[22].mxu0 %vm431_vm0, %v1155_v59 }
  0x42   : > { %3801 = vmatprep.mubr.msk.f32.mxu0 %vm4010_vm1, %v4009_v17  ;;  %3964 = vmatpush3.bf16.msra.mxu0 %v3949_v39 }
  0x43   : > { %1085 = vperm.xlu0 %3987, %v1035_v60   ;;  %3966 = vmatprep.subr.bf16.mxu0 %v3953_v53 }
  0x44   : > { %1090 = vperm.xlu1 %3988, %v1036_v61  }
  0x45   : > { %3802 = vmatmul.mubr.msk.f32.gmra.mrb[24].mxu0 %vm431_vm0, %v1156_v62 }
  0x46   : > { %3804 = vmatprep.mubr.msk.f32.mxu0 %vm4010_vm1, %v4009_v17  ;;  %3968 = vmatpush3.bf16.msra.mxu0 %v3953_v53 }
  0x47   : > { %1095 = vperm.xlu0 %3987, %v1037_v63  }
  0x48   : > { %1100 = vperm.xlu1 %3988, %v1038_v0  }
  0x49   : > { %3805 = vmatmul.mubr.msk.f32.gmra.mrb[26].mxu0 %vm431_vm0, %v1157_v1 }
  0x4a   : > { %3807 = vmatprep.mubr.msk.f32.mxu0 %vm4010_vm1, %v4009_v17 }
  0x4b   : > { %1105 = vperm.xlu0 %3987, %v1039_v2  }
  0x4c   : > { %1110 = vperm.xlu1 %3988, %v1040_v3  }
  0x4d   : > { %3808 = vmatmul.mubr.msk.f32.gmra.mrb[28].mxu0 %vm431_vm0, %v1158_v4 }
  0x4e   : > { %3810 = vmatprep.mubr.msk.f32.mxu0 %vm4010_vm1, %v4009_v17 }
  0x4f   : > { %1115 = vperm.xlu0 %3987, %v1041_v5  }
  0x50   : > { %1120 = vperm.xlu1 %3988, %v1042_v6  }
  0x51   : > { %3811 = vmatmul.mubr.msk.f32.gmra.mrb[30].mxu0 %vm431_vm0, %v1159_v7 }
  0x52   : > { %3813 = vmatprep.mubr.msk.f32.mxu0 %vm4010_vm1, %v4009_v17 }
  0x53   : > { %1330 = vperm.xlu0 %3987, %v1319_v8  }
  0x54   : > { %1335 = vperm.xlu1 %3988, %v1320_v9  }
  0x55   : > { %3814 = vmatmul.mubr.msk.f32.gmra.mrb[32].mxu0 %vm431_vm0, %v1160_v10 }
  0x56   : > { %3816 = vmatprep.mubr.msk.f32.mxu0 %vm4010_vm1, %v4009_v17 }
  0x57   : > { %1340 = vperm.xlu0 %3987, %v1321_v11  }
  0x58   : > { %1345 = vperm.xlu1 %3988, %v1322_v12  }
  0x59   : > { %3817 = vmatmul.mubr.msk.f32.gmra.mrb[34].mxu0 %vm431_vm0, %v1161_v13 }
  0x5a   : > { %3819 = vmatprep.mubr.msk.f32.mxu0 %vm4010_vm1, %v4009_v17 }
  0x5b   : > { %1350 = vperm.xlu0 %3987, %v1323_v14  }
  0x5c   : > { %1355 = vperm.xlu1 %3988, %v1324_v15  }
  0x5d   : > { %3820 = vmatmul.mubr.msk.f32.gmra.mrb[36].mxu0 %vm431_vm0, %v1162_v16 }
  0x5e   : > { %3822 = vmatprep.mubr.msk.f32.mxu0 %vm4010_vm1, %v4009_v17 }
  0x5f   : > { %1360 = vperm.xlu0 %3987, %v1325_v18  }
  0x60   : > { %1365 = vperm.xlu1 %3988, %v1326_v19  }
  0x61   : > { %3823 = vmatmul.mubr.msk.f32.gmra.mrb[38].mxu0 %vm431_vm0, %v1163_v20 }
  0x63   : > { %1370 = vperm.xlu0 %3987, %v1327_v21  }
  0x90   : > { %v4323_v22 = vpop.permute.xlu0 %675 }
  0x91   : > { %v4325_v23 = vpop.permute.xlu1 %685 }
  0x96   : > { %v4327_v24 = vpop.permute.xlu0 %680 }
  0x97   : > { %v4329_v25 = vpop.permute.xlu1 %690 }
  0x9a   : > { %v4331_v26 = vpop.permute.xlu0 %695 }
  0x9b   : > { %v4333_v17 = vpop.permute.xlu1 %700 }
  0x9e   : > { %v4335_v27 = vpop.permute.xlu0 %705 }
  0x9f   : > { %v4337_v28 = vpop.permute.xlu1 %710 }
  0xa2   : > { %v4339_v29 = vpop.permute.xlu0 %715 }
  0xa3   : > { %v4341_v30 = vpop.permute.xlu1 %720 }
  0xa6   : > { %v4343_v31 = vpop.permute.xlu0 %725 }
  0xa7   : > { %v4345_v32 = vpop.permute.xlu1 %730 }
  0xaa   : > { %v4347_v33 = vpop.permute.xlu0 %735 }
  0xab   : > { %5759 = vst [vmem:[#allocation4_spill] sm:$0xff] %v4347_v33  ;;  %v4349_v34 = vpop.permute.xlu1 %740 }
  0xae   : > { %v4351_v35 = vpop.permute.xlu0 %745 }
  0xaf   : > { %5760 = vst [vmem:[#allocation5_spill] sm:$0xff] %v4351_v35  ;;  %v4353_v36 = vpop.permute.xlu1 %750 }
  0xb0   : > { %5761 = vst [vmem:[#allocation6_spill] sm:$0xff] %v4353_v36 }
  0xb2   : > { %v4361_v40 = vpop.permute.xlu0 %1045 }
  0xb3   : > { %5762 = vst [vmem:[#allocation7_spill] sm:$0xff] %v4361_v40  ;;  %v4363_v41 = vpop.permute.xlu1 %1050 }
  0xb4   : > { %5763 = vst [vmem:[#allocation8_spill] sm:$0xff] %v4363_v41 }
  0xb6   : > { %v4365_v42 = vpop.permute.xlu0 %1055 }
  0xb7   : > { %5764 = vst [vmem:[#allocation9_spill] sm:$0xff] %v4365_v42  ;;  %v4367_v43 = vpop.permute.xlu1 %1060 }
  0xb8   : > { %5765 = vst [vmem:[#allocation10_spill] sm:$0xff] %v4367_v43 }
  0xba   : > { %v4369_v44 = vpop.permute.xlu0 %1065 }
  0xbb   : > { %5766 = vst [vmem:[#allocation11_spill] sm:$0xff] %v4369_v44  ;;  %v4371_v45 = vpop.permute.xlu1 %1070 }
  0xbc   : > { %5767 = vst [vmem:[#allocation12_spill] sm:$0xff] %v4371_v45 }
  0xbe   : > { %v1076_v47 = vpop.permute.xlu0 %1075 }
  0xbf   : > { %v1081_v48 = vpop.permute.xlu1 %1080 }
  0xc2   : > { %v1086_v12 = vpop.permute.xlu0 %1085 }
  0xc3   : > { %v1091_v13 = vpop.permute.xlu1 %1090 }
  0xe8   : > { %v3748_v51 = vpop.f32.mrb[0].mxu0  ;;  %v3783_v52 = vpop.f32.mrb[0].mxu1 }
  0xe9   : > { %v552_v54 = vadd.f32 %v3748_v51, %v4376_v46  ;;  %v952_v55 = vadd.f32 %v3783_v52, %v4376_v46  ;;  %v546_v56 = vpop.f32.mrb[1].mxu0  ;;  %v946_v57 = vpop.f32.mrb[1].mxu1 }
  0xea   : > { %v547_v58 = vadd.f32 %v4376_v46, %v546_v56  ;;  %v947_v59 = vadd.f32 %v4376_v46, %v946_v57 }
  0xeb   : > { %v626_v60 = vmax.f32 %v552_v54, 0.0  ;;  %v1002_v61 = vmax.f32 %v952_v55, 0.0 }
  0xec   : > { %v625_v62 = vmax.f32 %v547_v58, 0.0  ;;  %v1001_v63 = vmax.f32 %v947_v59, 0.0  ;;  %v3751_v0 = vpop.f32.mrb[2].mxu0  ;;  %v3786_v1 = vpop.f32.mrb[2].mxu1  ;;  %v4406_v59 = vld [vmem:[%s5750_s4] ss:$0 sm:$0xff] }
  0xed   : > { %v642_v2 = vmin.f32 %v626_v60, 6.0  ;;  %v1018_v3 = vmin.f32 %v1002_v61, 6.0  ;;  %v562_v4 = vadd.f32 %v3751_v0, %v4376_v46  ;;  %v962_v5 = vadd.f32 %v3786_v1, %v4376_v46  ;;  %v556_v6 = vpop.f32.mrb[3].mxu0  ;;  %v956_v7 = vpop.f32.mrb[3].mxu1 }
  0xee   : > { %v641_v8 = vmin.f32 %v625_v62, 6.0  ;;  %v1017_v9 = vmin.f32 %v1001_v63, 6.0  ;;  %v557_v10 = vadd.f32 %v4376_v46, %v556_v6  ;;  %v957_v11 = vadd.f32 %v4376_v46, %v956_v7 }
  0xef   : > { %v754_v14 = vmul.f32 %v4327_v24, %v642_v2  ;;  %v1130_v15 = vmul.f32 %v1081_v48, %v1018_v3  ;;  %v628_v16 = vmax.f32 %v562_v4, 0.0  ;;  %v1004_v18 = vmax.f32 %v962_v5, 0.0  ;;  %v4412_v2 = vld [vmem:[%s5750_s4 + $0x1] ss:$0 sm:$0xff] }
  0xf0   : > { %v753_v19 = vmul.f32 %v4323_v22, %v641_v8  ;;  %v1129_v20 = vmul.f32 %v1076_v47, %v1017_v9  ;;  %v627_v21 = vmax.f32 %v557_v10, 0.0  ;;  %v1003_v37 = vmax.f32 %v957_v11, 0.0  ;;  %v3754_v38 = vpop.f32.mrb[4].mxu0  ;;  %v3789_v39 = vpop.f32.mrb[4].mxu1  ;;  %v4426_v9 = vld [vmem:[%s5750_s4 + $0x3] ss:$0 sm:$0xff] }
  0xf1   : > { %771 = vst.msk [vmem:[#allocation2 + $0x8] sm:$0xff] %vm769_vm2, %v754_v14  ;;  %1146 = vst.msk [vmem:[#allocation2 + $0xb8] sm:$0xff] %vm769_vm2, %v1130_v15  ;;  %v644_v49 = vmin.f32 %v628_v16, 6.0  ;;  %v1020_v50 = vmin.f32 %v1004_v18, 6.0  ;;  %v572_v51 = vadd.f32 %v3754_v38, %v4376_v46  ;;  %v972_v24 = vadd.f32 %v3789_v39, %v4376_v46  ;;  %v566_v48 = vpop.f32.mrb[5].mxu0  ;;  %v966_v52 = vpop.f32.mrb[5].mxu1 }
  0xf2   : > { %770 = vst.msk [vmem:[#allocation2] sm:$0xff] %vm769_vm2, %v753_v19  ;;  %1145 = vst.msk [vmem:[#allocation2 + $0xb0] sm:$0xff] %vm769_vm2, %v1129_v20  ;;  %v643_v22 = vmin.f32 %v627_v21, 6.0  ;;  %v1019_v47 = vmin.f32 %v1003_v37, 6.0  ;;  %v567_v53 = vadd.f32 %v4376_v46, %v566_v48  ;;  %v967_v54 = vadd.f32 %v4376_v46, %v966_v52  ;;  %v1101_v8 = vpop.permute.xlu1 %1100  ;;  %v4431_v10 = vld [vmem:[%s5750_s4 + $0x6] ss:$0 sm:$0xff]  ;;  %v1096_v15 = vpop.permute.xlu0 %1095 }
  0xf3   : > { %v756_v55 = vmul.f32 %v4329_v25, %v644_v49  ;;  %v1132_v56 = vmul.f32 %v1091_v13, %v1020_v50  ;;  %v630_v57 = vmax.f32 %v572_v51, 0.0  ;;  %v1006_v58 = vmax.f32 %v972_v24, 0.0  ;;  %v4417_v25 = vld [vmem:[%s5750_s4 + $0x2] ss:$0 sm:$0xff]  ;;  %v4442_v16 = vld [vmem:[%s5750_s4 + $0x4] ss:$0 sm:$0xff] }
  0xf4   : > { %v755_v60 = vmul.f32 %v4325_v23, %v643_v22  ;;  %v1131_v61 = vmul.f32 %v1086_v12, %v1019_v47  ;;  %v629_v62 = vmax.f32 %v567_v53, 0.0  ;;  %v1005_v63 = vmax.f32 %v967_v54, 0.0  ;;  %v3757_v0 = vpop.f32.mrb[6].mxu0  ;;  %v3792_v1 = vpop.f32.mrb[6].mxu1  ;;  %v4447_v18 = vld [vmem:[%s5750_s4 + $0x5] ss:$0 sm:$0xff] }
  0xf5   : > { %773 = vst.msk [vmem:[#allocation2 + $0x18] sm:$0xff] %vm769_vm2, %v756_v55  ;;  %1148 = vst.msk [vmem:[#allocation2 + $0xc8] sm:$0xff] %vm769_vm2, %v1132_v56  ;;  %v646_v23 = vmin.f32 %v630_v57, 6.0  ;;  %v1022_v3 = vmin.f32 %v1006_v58, 6.0  ;;  %v582_v4 = vadd.f32 %v3757_v0, %v4376_v46  ;;  %v982_v5 = vadd.f32 %v3792_v1, %v4376_v46  ;;  %v576_v6 = vpop.f32.mrb[7].mxu0  ;;  %v976_v7 = vpop.f32.mrb[7].mxu1 }
  0xf6   : > { %772 = vst.msk [vmem:[#allocation2 + $0x10] sm:$0xff] %vm769_vm2, %v755_v60  ;;  %1147 = vst.msk [vmem:[#allocation2 + $0xc0] sm:$0xff] %vm769_vm2, %v1131_v61  ;;  %v645_v11 = vmin.f32 %v629_v62, 6.0  ;;  %v1021_v12 = vmin.f32 %v1005_v63, 6.0  ;;  %v577_v13 = vadd.f32 %v4376_v46, %v576_v6  ;;  %v4437_v14 = vadd.f32 %v4376_v46, %v976_v7  ;;  %v4452_v19 = vld [vmem:[%s5750_s4 + $0x7] ss:$0 sm:$0xff] }
  0xf7   : > { %v4457_v20 = vld [vmem:[%s5750_s4 + $0x8] ss:$0 sm:$0xff]  ;;  %v758_v21 = vmul.f32 %v4333_v17, %v646_v23  ;;  %v1134_v37 = vmul.f32 %v1101_v8, %v1022_v3  ;;  %v632_v38 = vmax.f32 %v582_v4, 0.0  ;;  %v1008_v39 = vmax.f32 %v982_v5, 0.0 }
  0xf8   : > { %v1410_v49 = vld [vmem:[#allocation2 + $0x8] sm:$0xff]  ;;  %v757_v50 = vmul.f32 %v4331_v26, %v645_v11  ;;  %v1133_v51 = vmul.f32 %v1096_v15, %v1021_v12  ;;  %v631_v24 = vmax.f32 %v577_v13, 0.0  ;;  %v3760_v52 = vpop.f32.mrb[8].mxu0  ;;  %v4462_v22 = vpop.f32.mrb[8].mxu1 }
  0xf9   : > { %v1418_v47 = vmul.f32 %v4406_v59, %v1410_v49  ;;  %v1409_v53 = vld [vmem:[#allocation2] sm:$0xff]  ;;  %775 = vst.msk [vmem:[#allocation2 + $0x28] sm:$0xff] %vm769_vm2, %v758_v21  ;;  %1150 = vst.msk [vmem:[#allocation2 + $0xd8] sm:$0xff] %vm769_vm2, %v1134_v37  ;;  %v4467_v17 = vmin.f32 %v632_v38, 6.0  ;;  %v4469_v56 = vmin.f32 %v1008_v39, 6.0  ;;  %v4472_v26 = vadd.f32 %v3760_v52, %v4376_v46  ;;  %v4474_v57 = vpop.f32.mrb[9].mxu0 }
  0xfa   : > { %v1419_v54 = vld [vmem:[#allocation2 + $0x1] sm:$0xff]  ;;  %v1417_v58 = vmul.f32 %v4406_v59, %v1409_v53  ;;  %v1983_v62 = vld [vmem:[#allocation2 + $0xb4] sm:$0xff]  ;;  %774 = vst.msk [vmem:[#allocation2 + $0x20] sm:$0xff] %vm769_vm2, %v757_v50  ;;  %1149 = vst.msk [vmem:[#allocation2 + $0xd0] sm:$0xff] %vm769_vm2, %v1133_v51  ;;  %v4481_v1 = vmin.f32 %v631_v24, 6.0  ;;  %v4483_v23 = vpop.f32.mrb[9].mxu1 }
  0xfb   : > { %v1431_v55 = vld [vmem:[#allocation2 + $0x2] sm:$0xff]  ;;  %v1427_v60 = vmul.f32 %v4412_v2, %v1419_v54  ;;  %v1989_v63 = vld [vmem:[#allocation2 + $0xb5] sm:$0xff]  ;;  %v4486_v3 = vmul.f32 %v4431_v10, %v1983_v62  ;;  %v4495_v6 = vmul.f32 %v4426_v9, %v1983_v62  ;;  %v2071_v12 = vmul.f32 %v4406_v59, %v1983_v62 }
  0xfc   : > { %v1439_v61 = vmul.f32 %v4417_v25, %v1431_v55  ;;  %v1995_v0 = vld [vmem:[#allocation2 + $0xb6] sm:$0xff]  ;;  %v4489_v4 = vmul.f32 %v4452_v19, %v1989_v63  ;;  %v4498_v8 = vmul.f32 %v4442_v16, %v1989_v63  ;;  %v2055_v13 = vld [vmem:[#allocation2 + $0xc8] sm:$0xff]  ;;  %v4504_v15 = vpop.f32.mrb[10].mxu0  ;;  %v2075_v21 = vmul.f32 %v4412_v2, %v1989_v63 }
  0xfd   : > { %5768 = vst [vmem:[#allocation13_spill] sm:$0xff] %v4486_v3  ;;  %v4492_v5 = vmul.f32 %v4457_v20, %v1995_v0  ;;  %5771 = vst [vmem:[#allocation16_spill] sm:$0xff] %v4495_v6  ;;  %v1429_v7 = vadd.f32 %v1427_v60, %v1417_v58  ;;  %v4501_v11 = vmul.f32 %v4447_v18, %v1995_v0  ;;  %v1420_v49 = vld [vmem:[#allocation2 + $0x9] sm:$0xff]  ;;  %v1443_v51 = vld [vmem:[#allocation2 + $0x12] sm:$0xff]  ;;  %v4514_v24 = vpop.f32.mrb[11].mxu0 }
  0xfe   : > { %5769 = vst [vmem:[#allocation14_spill] sm:$0xff] %v4489_v4  ;;  %5772 = vst [vmem:[#allocation17_spill] sm:$0xff] %v4498_v8  ;;  %v2081_v37 = vmul.f32 %v4417_v25, %v1995_v0  ;;  %v4509_v38 = vmul.f32 %v4457_v20, %v2055_v13  ;;  %v4512_v39 = vmul.f32 %v4447_v18, %v2055_v13  ;;  %v1432_v50 = vld [vmem:[#allocation2 + $0xa] sm:$0xff]  ;;  %v1455_v58 = vld [vmem:[#allocation2 + $0x13] sm:$0xff] }
  0xff   : > { %5770 = vst [vmem:[#allocation15_spill] sm:$0xff] %v4492_v5  ;;  %5773 = vst [vmem:[#allocation18_spill] sm:$0xff] %v4501_v11  ;;  %v1441_v52 = vadd.f32 %v1439_v61, %v1429_v7  ;;  %v4517_v53 = vmul.f32 %v4417_v25, %v2055_v13  ;;  %v1428_v54 = vmul.f32 %v4412_v2, %v1420_v49  ;;  %v1467_v60 = vld [vmem:[#allocation2 + $0x14] sm:$0xff]  ;;  %v1984_v62 = vld [vmem:[#allocation2 + $0xbc] sm:$0xff] }
 0x100   : > { %5774 = vst [vmem:[#allocation19_spill] sm:$0xff] %v4509_v38  ;;  %v1440_v55 = vmul.f32 %v4417_v25, %v1432_v50  ;;  %v2077_v63 = vadd.f32 %v2075_v21, %v2071_v12  ;;  %v1451_v0 = vmul.f32 %v4426_v9, %v1443_v51  ;;  %v1463_v48 = vmul.f32 %v4442_v16, %v1455_v58  ;;  %v1990_v11 = vld [vmem:[#allocation2 + $0xbd] sm:$0xff]  ;;  %v2043_v50 = vld [vmem:[#allocation2 + $0xc6] sm:$0xff]  ;;  %v4527_v4 = vpop.f32.mrb[12].mxu0 }
 0x101   : > { %v1475_v38 = vmul.f32 %v4447_v18, %v1467_v60  ;;  %v1996_v5 = vld [vmem:[#allocation2 + $0xbe] sm:$0xff]  ;;  %v1430_v61 = vadd.f32 %v1428_v54, %v1418_v47  ;;  %v1531_v7 = vmul.f32 %v4406_v59, %v1443_v51  ;;  %v1535_v13 = vmul.f32 %v4412_v2, %v1455_v58  ;;  %v2049_v3 = vld [vmem:[#allocation2 + $0xc7] sm:$0xff]  ;;  %v4535_v44 = vpop.f32.mrb[13].mxu0 }
 0x102   : > { %v1541_v49 = vmul.f32 %v4417_v25, %v1467_v60  ;;  %v2083_v8 = vadd.f32 %v2081_v37, %v2077_v63  ;;  %v1453_v12 = vadd.f32 %v1451_v0, %v1441_v52  ;;  %v4530_v21 = vmul.f32 %v4431_v10, %v1984_v62  ;;  %v2103_v0 = vld [vmem:[#allocation2 + $0xd8] sm:$0xff]  ;;  %v1491_v45 = vld [vmem:[#allocation2 + $0x25] sm:$0xff] }
 0x103   : > { %v4533_v6 = vmul.f32 %v4452_v19, %v1990_v11  ;;  %v1442_v47 = vadd.f32 %v1440_v55, %v1430_v61  ;;  %v1537_v51 = vadd.f32 %v1535_v13, %v1531_v7  ;;  %v4538_v54 = vmul.f32 %v4457_v20, %v1996_v5  ;;  %v1444_v13 = vld [vmem:[#allocation2 + $0x1a] sm:$0xff]  ;;  %v1503_v43 = vld [vmem:[#allocation2 + $0x26] sm:$0xff] }
 0x104   : > { %5775 = vst [vmem:[#allocation20_spill] sm:$0xff] %v4530_v21  ;;  %v4541_v58 = vmul.f32 %v4426_v9, %v1984_v62  ;;  %v1465_v60 = vadd.f32 %v1463_v48, %v1453_v12  ;;  %v4544_v37 = vmul.f32 %v4442_v16, %v1990_v11  ;;  %v4547_v52 = vmul.f32 %v4447_v18, %v1996_v5  ;;  %v4557_v48 = vpop.f32.mrb[14].mxu0 }
 0x105   : > { %5776 = vst [vmem:[#allocation21_spill] sm:$0xff] %v4533_v6  ;;  %5777 = vst [vmem:[#allocation22_spill] sm:$0xff] %v4538_v54  ;;  %v4550_v63 = vmul.f32 %v4431_v10, %v2043_v50  ;;  %v1543_v6 = vadd.f32 %v1541_v49, %v1537_v51  ;;  %v4553_v55 = vmul.f32 %v4452_v19, %v2049_v3  ;;  %v4562_v49 = vpop.f32.mrb[15].mxu0 }
 0x106   : > { %5778 = vst [vmem:[#allocation23_spill] sm:$0xff] %v4541_v58  ;;  %5779 = vst [vmem:[#allocation24_spill] sm:$0xff] %v4544_v37  ;;  %v2072_v61 = vmul.f32 %v4406_v59, %v1984_v62  ;;  %v2076_v7 = vmul.f32 %v4412_v2, %v1990_v11  ;;  %v1477_v12 = vadd.f32 %v1475_v38, %v1465_v60  ;;  %v1468_v37 = vld [vmem:[#allocation2 + $0x1c] sm:$0xff]  ;;  %v1479_v58 = vld [vmem:[#allocation2 + $0x24] sm:$0xff] }
 0x107   : > { %5780 = vst [vmem:[#allocation25_spill] sm:$0xff] %v4547_v52  ;;  %5781 = vst [vmem:[#allocation26_spill] sm:$0xff] %v4550_v63  ;;  %v2082_v54 = vmul.f32 %v4417_v25, %v1996_v5  ;;  %v2087_v52 = vmul.f32 %v4426_v9, %v2043_v50  ;;  %v2093_v21 = vmul.f32 %v4442_v16, %v2049_v3  ;;  %v1456_v63 = vld [vmem:[#allocation2 + $0x1b] sm:$0xff] }
 0x108   : > { %5782 = vst [vmem:[#allocation27_spill] sm:$0xff] %v4553_v55  ;;  %5783 = vst [vmem:[#allocation28_spill] sm:$0xff] %v4562_v49  ;;  %v2078_v51 = vadd.f32 %v2076_v7, %v2072_v61  ;;  %v2131_v55 = vmul.f32 %v4406_v59, %v2043_v50  ;;  %v2135_v62 = vmul.f32 %v4412_v2, %v2049_v3  ;;  %v4574_v3 = vpop.f32.mrb[16].mxu0 }
 0x109   : > { %v2105_v11 = vmul.f32 %v4431_v10, %v2103_v0  ;;  %v2089_v38 = vadd.f32 %v2087_v52, %v2083_v8  ;;  %v2147_v5 = vmul.f32 %v4426_v9, %v2103_v0  ;;  %v4569_v60 = vmul.f32 %v4406_v59, %v2103_v0  ;;  %5784 = vst [vmem:[#allocation29_spill] sm:$0xff] %v4574_v3  ;;  %v4578_v36 = vpop.f32.mrb[17].mxu0  ;;  %v2050_v3 = vld [vmem:[#allocation2 + $0xcf] sm:$0xff] }
 0x10a   : > { %v1452_v42 = vmul.f32 %v4426_v9, %v1444_v13  ;;  %v2084_v40 = vadd.f32 %v2082_v54, %v2078_v51  ;;  %v2137_v41 = vadd.f32 %v2135_v62, %v2131_v55  ;;  %v1464_v61 = vmul.f32 %v4442_v16, %v1456_v63  ;;  %5785 = vst [vmem:[#allocation30_spill] sm:$0xff] %v4578_v36 }
 0x10b   : > { %v1476_v50 = vmul.f32 %v4447_v18, %v1468_v37  ;;  %v2095_v7 = vadd.f32 %v2093_v21, %v2089_v38  ;;  %v1487_v8 = vmul.f32 %v4431_v10, %v1479_v58  ;;  %v1499_v52 = vmul.f32 %v4452_v19, %v1491_v45 }
 0x10c   : > { %v1454_v35 = vadd.f32 %v1452_v42, %v1442_v47  ;;  %v2143_v0 = vadd.f32 %v4517_v53, %v2137_v41  ;;  %v4582_v49 = vmul.f32 %v4457_v20, %v1503_v43  ;;  %v1532_v54 = vmul.f32 %v4406_v59, %v1444_v13  ;;  %v2044_v53 = vld [vmem:[#allocation2 + $0xce] sm:$0xff]  ;;  %v4592_v33 = vpop.f32.mrb[18].mxu0 }
 0x10d   : > { %v1536_v55 = vmul.f32 %v4412_v2, %v1456_v63  ;;  %v2101_v51 = vadd.f32 %v4512_v39, %v2095_v7  ;;  %v1489_v21 = vadd.f32 %v1487_v8, %v1477_v12  ;;  %v1542_v42 = vmul.f32 %v4417_v25, %v1468_v37  ;;  %v4601_v37 = vpop.f32.mrb[19].mxu0 }
 0x10e   : > { %5786 = vst [vmem:[#allocation31_spill] sm:$0xff] %v4582_v49  ;;  %v1466_v62 = vadd.f32 %v1464_v61, %v1454_v35  ;;  %v4588_v47 = vadd.f32 %v2147_v5, %v2143_v0  ;;  %v1547_v36 = vmul.f32 %v4426_v9, %v1479_v58  ;;  %v1553_v41 = vmul.f32 %v4442_v16, %v1491_v45  ;;  %v2056_v49 = vld [vmem:[#allocation2 + $0xd0] sm:$0xff] }
 0x10f   : > { %v1538_v38 = vadd.f32 %v1536_v55, %v1532_v54  ;;  %v4594_v13 = vadd.f32 %v2105_v11, %v2101_v51  ;;  %v4598_v35 = vadd.f32 %v1499_v52, %v1489_v21  ;;  %v1559_v39 = vmul.f32 %v4447_v18, %v1503_v43  ;;  %v1111_v21 = vpop.permute.xlu1 %1110 }
 0x110   : > { %v4596_v63 = vadd.f32 %v1476_v50, %v1466_v62  ;;  %v1549_v5 = vadd.f32 %v1547_v36, %v1543_v6  ;;  %v1591_v61 = vmul.f32 %v4406_v59, %v1479_v58  ;;  %v1595_v7 = vmul.f32 %v4412_v2, %v1491_v45  ;;  %v4619_v6 = vpop.f32.mrb[20].mxu0 }
 0x111   : > { %v4603_v12 = vadd.f32 %v1542_v42, %v1538_v38  ;;  %v1601_v8 = vmul.f32 %v4417_v25, %v1503_v43  ;;  %v4609_v11 = vmul.f32 %v4431_v10, %v2044_v53  ;;  %v4612_v50 = vmul.f32 %v4452_v19, %v2050_v3  ;;  %v4625_v62 = vpop.f32.mrb[21].mxu0 }
 0x112   : > { %v4615_v52 = vmul.f32 %v4457_v20, %v2056_v49  ;;  %v1555_v0 = vadd.f32 %v1553_v41, %v1549_v5  ;;  %v1597_v54 = vadd.f32 %v1595_v7, %v1591_v61  ;;  %v2088_v55 = vmul.f32 %v4426_v9, %v2044_v53 }
 0x113   : > { %5787 = vst [vmem:[#allocation32_spill] sm:$0xff] %v4609_v11  ;;  %5788 = vst [vmem:[#allocation33_spill] sm:$0xff] %v4612_v50  ;;  %v2094_v36 = vmul.f32 %v4442_v16, %v2050_v3  ;;  %v2100_v45 = vmul.f32 %v4447_v18, %v2056_v49  ;;  %v2132_v43 = vmul.f32 %v4406_v59, %v2044_v53 }
 0x114   : > { %5789 = vst [vmem:[#allocation34_spill] sm:$0xff] %v4615_v52  ;;  %v2136_v58 = vmul.f32 %v4412_v2, %v2050_v3  ;;  %v2142_v51 = vmul.f32 %v4417_v25, %v2056_v49  ;;  %v4627_v42 = vadd.f32 %v1559_v39, %v1555_v0  ;;  %v4629_v38 = vadd.f32 %v1601_v8, %v1597_v54  ;;  %v1106_v52 = vpop.permute.xlu0 %1105 }
 0x115   : > { %v2090_v41 = vadd.f32 %v2088_v55, %v2084_v40  ;;  %v760_v5 = vmul.f32 %v4337_v28, %v4467_v17  ;;  %v1136_v7 = vmul.f32 %v1111_v21, %v4469_v56  ;;  %v759_v53 = vmul.f32 %v4335_v27, %v4481_v1  ;;  %v4644_v17 = vpop.f32.mrb[22].mxu0 }
 0x116   : > { %v2138_v61 = vadd.f32 %v2136_v58, %v2132_v43  ;;  %v5790_v3 = vmax.f32 %v4437_v14, 0.0  ;;  %v634_v39 = vmax.f32 %v4472_v26, 0.0  ;;  %v992_v40 = vadd.f32 %v4462_v22, %v4376_v46  ;;  %v3800_v1 = vpop.f32.mrb[23].mxu0  ;;  %v1121_v58 = vpop.permute.xlu1 %1120 }
 0x117   : > { %v2096_v50 = vadd.f32 %v2094_v36, %v2090_v41  ;;  %777 = vst.msk [vmem:[#allocation2 + $0x38] sm:$0xff] %vm769_vm2, %v760_v5  ;;  %v587_v28 = vadd.f32 %v4376_v46, %v4474_v57  ;;  %1152 = vst.msk [vmem:[#allocation2 + $0xe8] sm:$0xff] %vm769_vm2, %v1136_v7  ;;  %v987_v14 = vadd.f32 %v4376_v46, %v4483_v23 }
 0x118   : > { %v1023_v49 = vmin.f32 %v5790_v3, 6.0  ;;  %v4646_v56 = vadd.f32 %v2142_v51, %v2138_v61  ;;  %776 = vst.msk [vmem:[#allocation2 + $0x30] sm:$0xff] %vm769_vm2, %v759_v53  ;;  %v602_v26 = vadd.f32 %v4504_v15, %v4376_v46  ;;  %v650_v8 = vmin.f32 %v634_v39, 6.0  ;;  %v1116_v7 = vpop.permute.xlu0 %1115 }
 0x119   : > { %v4654_v22 = vadd.f32 %v2100_v45, %v2096_v50  ;;  %v1010_v57 = vmax.f32 %v992_v40, 0.0  ;;  %v633_v0 = vmax.f32 %v587_v28, 0.0  ;;  %v1009_v54 = vmax.f32 %v987_v14, 0.0  ;;  %v4664_v45 = vpop.f32.mrb[24].mxu0 }
 0x11a   : > { %v1135_v27 = vmul.f32 %v1106_v52, %v1023_v49  ;;  %v636_v55 = vmax.f32 %v602_v26, 0.0  ;;  %v597_v36 = vadd.f32 %v4376_v46, %v4514_v24  ;;  %v612_v52 = vadd.f32 %v4527_v4, %v4376_v46  ;;  %v3803_v61 = vpop.f32.mrb[25].mxu0 }
 0x11b   : > { %v762_v23 = vmul.f32 %v4341_v30, %v650_v8  ;;  %v1026_v43 = vmin.f32 %v1010_v57, 6.0  ;;  %v649_v15 = vmin.f32 %v633_v0, 6.0  ;;  %v607_v50 = vadd.f32 %v4376_v46, %v4535_v44 }
 0x11c   : > { %1151 = vst.msk [vmem:[#allocation2 + $0xe0] sm:$0xff] %vm769_vm2, %v1135_v27  ;;  %v1025_v51 = vmin.f32 %v1009_v54, 6.0  ;;  %v652_v21 = vmin.f32 %v636_v55, 6.0  ;;  %v635_v41 = vmax.f32 %v597_v36, 0.0  ;;  %v638_v5 = vmax.f32 %v612_v52, 0.0  ;;  %v4690_v1 = vpop.f32.mrb[26].mxu0 }
 0x11d   : > { %779 = vst.msk [vmem:[#allocation2 + $0x48] sm:$0xff] %vm769_vm2, %v762_v23  ;;  %v1138_v24 = vmul.f32 %v1121_v58, %v1026_v43  ;;  %v761_v4 = vmul.f32 %v4339_v29, %v649_v15  ;;  %v637_v30 = vmax.f32 %v607_v50, 0.0  ;;  %v4670_v53 = vadd.f32 %v4557_v48, %v4376_v46  ;;  %v3806_v52 = vpop.f32.mrb[27].mxu0 }
 0x11e   : > { %v1575_v44 = vld [vmem:[#allocation2 + $0x38] sm:$0xff]  ;;  %v1137_v3 = vmul.f32 %v1116_v7, %v1025_v51  ;;  %v764_v49 = vmul.f32 %v4345_v32, %v652_v21  ;;  %v4673_v39 = vmin.f32 %v635_v41, 6.0  ;;  %v4675_v40 = vmin.f32 %v638_v5, 6.0 }
 0x11f   : > { %v4678_v28 = vmul.f32 %v4457_v20, %v1575_v44  ;;  %v4681_v27 = vmul.f32 %v4447_v18, %v1575_v44  ;;  %v4684_v29 = vmul.f32 %v4417_v25, %v1575_v44  ;;  %v1480_v14 = vld [vmem:[#allocation2 + $0x2c] sm:$0xff]  ;;  %1154 = vst.msk [vmem:[#allocation2 + $0xf8] sm:$0xff] %vm769_vm2, %v1138_v24  ;;  %778 = vst.msk [vmem:[#allocation2 + $0x40] sm:$0xff] %vm769_vm2, %v761_v4  ;;  %v4688_v32 = vmin.f32 %v637_v30, 6.0  ;;  %v1563_v55 = vld [vmem:[#allocation2 + $0x36] sm:$0xff] }
 0x120   : > { %v1492_v48 = vld [vmem:[#allocation2 + $0x2d] sm:$0xff]  ;;  %v1488_v8 = vmul.f32 %v4431_v10, %v1480_v14  ;;  %v1548_v54 = vmul.f32 %v4426_v9, %v1480_v14  ;;  %v1569_v36 = vld [vmem:[#allocation2 + $0x37] sm:$0xff]  ;;  %1153 = vst.msk [vmem:[#allocation2 + $0xf0] sm:$0xff] %vm769_vm2, %v1137_v3  ;;  %781 = vst.msk [vmem:[#allocation2 + $0x58] sm:$0xff] %vm769_vm2, %v764_v49  ;;  %v1565_v15 = vmul.f32 %v4431_v10, %v1563_v55  ;;  %v4710_v44 = vpop.f32.mrb[28].mxu0 }
 0x121   : > { %5791 = vst [vmem:[#allocation35_spill] sm:$0xff] %v4678_v28  ;;  %v1504_v26 = vld [vmem:[#allocation2 + $0x2e] sm:$0xff]  ;;  %v1500_v57 = vmul.f32 %v4452_v19, %v1492_v48  ;;  %v1554_v23 = vmul.f32 %v4442_v16, %v1492_v48  ;;  %v1571_v50 = vmul.f32 %v4452_v19, %v1569_v36  ;;  %v1592_v21 = vmul.f32 %v4406_v59, %v1480_v14 }
 0x122   : > { %v1512_v0 = vmul.f32 %v4457_v20, %v1504_v26  ;;  %v1560_v43 = vmul.f32 %v4447_v18, %v1504_v26  ;;  %v1490_v58 = vadd.f32 %v1488_v8, %v4596_v63  ;;  %v1550_v51 = vadd.f32 %v1548_v54, %v4603_v12  ;;  %5792 = vst [vmem:[#allocation36_spill] sm:$0xff] %v4710_v44  ;;  %v3809_v8 = vpop.f32.mrb[29].mxu0 }
 0x123   : > { %v1596_v41 = vmul.f32 %v4412_v2, %v1492_v48  ;;  %v2104_v5 = vld [vmem:[#allocation2 + $0xe0] sm:$0xff]  ;;  %v1567_v61 = vadd.f32 %v1565_v15, %v4627_v42  ;;  %v1602_v7 = vmul.f32 %v4417_v25, %v1504_v26  ;;  %v1607_v24 = vmul.f32 %v4426_v9, %v1563_v55 }
 0x124   : > { %v1613_v4 = vmul.f32 %v4442_v16, %v1569_v36  ;;  %v2109_v30 = vld [vmem:[#allocation2 + $0xd9] sm:$0xff]  ;;  %v1502_v3 = vadd.f32 %v1500_v57, %v1490_v58  ;;  %v1556_v63 = vadd.f32 %v1554_v23, %v1550_v51  ;;  %v1651_v12 = vmul.f32 %v4406_v59, %v1563_v55  ;;  %v2110_v14 = vld [vmem:[#allocation2 + $0xe1] sm:$0xff]  ;;  %v4726_v58 = vpop.f32.mrb[30].mxu0 }
 0x125   : > { %v1598_v49 = vadd.f32 %v1596_v41, %v1592_v21  ;;  %v4713_v48 = vadd.f32 %v1571_v50, %v1567_v61  ;;  %v1609_v42 = vadd.f32 %v1607_v24, %v4629_v38  ;;  %v1655_v26 = vmul.f32 %v4412_v2, %v1569_v36  ;;  %v2115_v52 = vld [vmem:[#allocation2 + $0xda] sm:$0xff]  ;;  %v2116_v15 = vld [vmem:[#allocation2 + $0xe2] sm:$0xff]  ;;  %v3812_v41 = vpop.f32.mrb[31].mxu0 }
 0x126   : > { %v2106_v54 = vmul.f32 %v4431_v10, %v2104_v5  ;;  %v1514_v11 = vadd.f32 %v1512_v0, %v1502_v3  ;;  %v1562_v28 = vadd.f32 %v1560_v43, %v1556_v63  ;;  %v2111_v57 = vmul.f32 %v4452_v19, %v2109_v30  ;;  %v4722_v55 = vld [vmem:[%s5751_s5] ss:$0 sm:$0xff] }
 0x127   : > { %v1604_v44 = vadd.f32 %v1602_v7, %v1598_v49  ;;  %v1615_v23 = vadd.f32 %v1613_v4, %v1609_v42  ;;  %v1657_v50 = vadd.f32 %v1655_v26, %v1651_v12  ;;  %v2112_v36 = vmul.f32 %v4452_v19, %v2110_v14 }
 0x128   : > { %v2108_v38 = vadd.f32 %v2106_v54, %v4654_v22  ;;  %v4729_v51 = vadd.f32 %v4722_v55, %v1514_v11  ;;  %v4732_v0 = vadd.f32 %v2111_v57, %v4594_v13  ;;  %v4735_v43 = vmul.f32 %v4457_v20, %v2115_v52  ;;  %v1623_v11 = vld [vmem:[#allocation2 + $0x48] sm:$0xff]  ;;  %v4753_v26 = vpop.f32.mrb[32].mxu0 }
 0x129   : > { %v4738_v21 = vmul.f32 %v4457_v20, %v2116_v15  ;;  %v2148_v22 = vmul.f32 %v4426_v9, %v2104_v5  ;;  %v2153_v7 = vmul.f32 %v4442_v16, %v2109_v30  ;;  %v2154_v24 = vmul.f32 %v4442_v16, %v2110_v14  ;;  %5797 = vst [vmem:[#allocation41_spill] sm:$0xff] %v4753_v26  ;;  %v3815_v41 = vpop.f32.mrb[33].mxu0 }
 0x12a   : > { %5793 = vst [vmem:[#allocation37_spill] sm:$0xff] %v4732_v0  ;;  %5794 = vst [vmem:[#allocation38_spill] sm:$0xff] %v4735_v43  ;;  %v4740_v61 = vadd.f32 %v2112_v36, %v2108_v38  ;;  %v2159_v4 = vmul.f32 %v4447_v18, %v2115_v52  ;;  %v2160_v13 = vmul.f32 %v4447_v18, %v2116_v15  ;;  %v1564_v36 = vld [vmem:[#allocation2 + $0x3e] sm:$0xff] }
 0x12b   : > { %5795 = vst [vmem:[#allocation39_spill] sm:$0xff] %v4738_v21  ;;  %v2192_v3 = vmul.f32 %v4406_v59, %v2104_v5  ;;  %v2195_v63 = vmul.f32 %v4412_v2, %v2109_v30  ;;  %v2150_v49 = vadd.f32 %v2148_v22, %v4646_v56  ;;  %v2155_v12 = vadd.f32 %v2153_v7, %v4588_v47  ;;  %v1570_v30 = vld [vmem:[#allocation2 + $0x3f] sm:$0xff] }
 0x12c   : > { %5796 = vst [vmem:[#allocation40_spill] sm:$0xff] %v4740_v61  ;;  %v2196_v8 = vmul.f32 %v4412_v2, %v2110_v14  ;;  %v2201_v42 = vmul.f32 %v4417_v25, %v2115_v52  ;;  %v2202_v57 = vmul.f32 %v4417_v25, %v2116_v15  ;;  %v1621_v38 = vadd.f32 %v4681_v27, %v1615_v23  ;;  %v1576_v7 = vld [vmem:[#allocation2 + $0x40] sm:$0xff]  ;;  %v2176_v61 = vld [vmem:[#allocation2 + $0xf4] sm:$0xff] }
 0x12d   : > { %v2197_v54 = vadd.f32 %v2195_v63, %v4569_v60  ;;  %v1625_v5 = vmul.f32 %v4431_v10, %v1623_v11  ;;  %v2156_v56 = vadd.f32 %v2154_v24, %v2150_v49  ;;  %v2161_v22 = vadd.f32 %v2159_v4, %v2155_v12  ;;  %v2163_v24 = vld [vmem:[#allocation2 + $0xea] sm:$0xff]  ;;  %v2164_v4 = vld [vmem:[#allocation2 + $0xf2] sm:$0xff] }
 0x12e   : > { %v2198_v47 = vadd.f32 %v2196_v8, %v2192_v3  ;;  %v1663_v14 = vadd.f32 %v4684_v29, %v1657_v50  ;;  %v1667_v60 = vmul.f32 %v4426_v9, %v1623_v11  ;;  %v4764_v15 = vmul.f32 %v4406_v59, %v1623_v11  ;;  %v4768_v3 = vpop.f32.mrb[34].mxu0  ;;  %v2169_v12 = vld [vmem:[#allocation2 + $0xeb] sm:$0xff] }
 0x12f   : > { %v2203_v52 = vadd.f32 %v2201_v42, %v2197_v54  ;;  %v4760_v21 = vadd.f32 %v1625_v5, %v1621_v38  ;;  %v2162_v27 = vadd.f32 %v2160_v13, %v2156_v56  ;;  %v1566_v63 = vmul.f32 %v4431_v10, %v1564_v36  ;;  %5798 = vst [vmem:[#allocation42_spill] sm:$0xff] %v4768_v3  ;;  %v2170_v13 = vld [vmem:[#allocation2 + $0xf3] sm:$0xff]  ;;  %v3818_v8 = vpop.f32.mrb[35].mxu0 }
 0x130   : > { %v2204_v23 = vadd.f32 %v2202_v57, %v2198_v47  ;;  %v1572_v41 = vmul.f32 %v4452_v19, %v1570_v30  ;;  %v4770_v29 = vadd.f32 %v1667_v60, %v1663_v14  ;;  %v4773_v50 = vmul.f32 %v4457_v20, %v1576_v7  ;;  %v2175_v5 = vld [vmem:[#allocation2 + $0xec] sm:$0xff]  ;;  %v4787_v8 = vpop.f32.mrb[36].mxu0 }
 0x131   : > { %v1608_v49 = vmul.f32 %v4426_v9, %v1564_v36  ;;  %v1614_v11 = vmul.f32 %v4442_v16, %v1570_v30  ;;  %v1568_v42 = vadd.f32 %v1566_v63, %v1562_v28  ;;  %v1620_v54 = vmul.f32 %v4447_v18, %v1576_v7  ;;  %5799 = vst [vmem:[#allocation43_spill] sm:$0xff] %v4787_v8 }
 0x132   : > { %v1652_v57 = vmul.f32 %v4406_v59, %v1564_v36  ;;  %v1656_v38 = vmul.f32 %v4412_v2, %v1570_v30  ;;  %v1662_v47 = vmul.f32 %v4417_v25, %v1576_v7  ;;  %v2165_v14 = vmul.f32 %v4431_v10, %v2163_v24  ;;  %v3821_v7 = vpop.f32.mrb[37].mxu0 }
 0x133   : > { %v1610_v56 = vadd.f32 %v1608_v49, %v1604_v44  ;;  %v2166_v60 = vmul.f32 %v4431_v10, %v2164_v4  ;;  %v4783_v43 = vadd.f32 %v1572_v41, %v1568_v42  ;;  %v2171_v28 = vmul.f32 %v4452_v19, %v2169_v12 }
 0x134   : > { %v1658_v0 = vadd.f32 %v1656_v38, %v1652_v57  ;;  %v2172_v63 = vmul.f32 %v4452_v19, %v2170_v13  ;;  %v2167_v30 = vadd.f32 %v2165_v14, %v2161_v22  ;;  %v4790_v44 = vmul.f32 %v4457_v20, %v2175_v5  ;;  %v4808_v14 = vpop.f32.mrb[38].mxu0 }
 0x135   : > { %v1616_v36 = vadd.f32 %v1614_v11, %v1610_v56  ;;  %v2168_v3 = vadd.f32 %v2166_v60, %v2162_v27  ;;  %v4795_v26 = vmul.f32 %v4457_v20, %v2176_v61  ;;  %v2207_v41 = vmul.f32 %v4426_v9, %v2163_v24  ;;  %5804 = vst [vmem:[#allocation48_spill] sm:$0xff] %v4808_v14 }
 0x136   : > { %5800 = vst [vmem:[#allocation44_spill] sm:$0xff] %v4790_v44  ;;  %v4792_v49 = vadd.f32 %v1662_v47, %v1658_v0  ;;  %v2208_v42 = vmul.f32 %v4426_v9, %v2164_v4  ;;  %v4801_v38 = vadd.f32 %v2171_v28, %v2167_v30  ;;  %v2213_v22 = vmul.f32 %v4442_v16, %v2169_v12 }
 0x137   : > { %5801 = vst [vmem:[#allocation45_spill] sm:$0xff] %v4795_v26  ;;  %v4799_v57 = vadd.f32 %v1620_v54, %v1616_v36  ;;  %v4803_v11 = vadd.f32 %v2172_v63, %v2168_v3  ;;  %v2209_v27 = vadd.f32 %v2207_v41, %v2203_v52  ;;  %v2214_v0 = vmul.f32 %v4442_v16, %v2170_v13  ;;  %v3824_v3 = vpop.f32.mrb[39].mxu0 }
 0x138   : > { %5802 = vst [vmem:[#allocation46_spill] sm:$0xff] %v4801_v38  ;;  %v2210_v56 = vadd.f32 %v2208_v42, %v2204_v23  ;;  %v2219_v47 = vmul.f32 %v4447_v18, %v2175_v5  ;;  %v2220_v60 = vmul.f32 %v4447_v18, %v2176_v61  ;;  %v2251_v7 = vmul.f32 %v4406_v59, %v2163_v24 }
 0x139   : > { %5803 = vst [vmem:[#allocation47_spill] sm:$0xff] %v4803_v11  ;;  %v2252_v54 = vmul.f32 %v4406_v59, %v2164_v4  ;;  %v2255_v28 = vmul.f32 %v4412_v2, %v2169_v12  ;;  %v2215_v63 = vadd.f32 %v2213_v22, %v2209_v27  ;;  %v2256_v52 = vmul.f32 %v4412_v2, %v2170_v13  ;;  %v5805_v22 = vld [vmem:[#allocation4_spill] sm:$0xff] }
 0x13a   : > { %v2216_v36 = vadd.f32 %v2214_v0, %v2210_v56  ;;  %v2261_v23 = vmul.f32 %v4417_v25, %v2175_v5  ;;  %v2262_v41 = vmul.f32 %v4417_v25, %v2176_v61  ;;  %v763_v42 = vmul.f32 %v4343_v31, %v4673_v39  ;;  %v5806_v31 = vld [vmem:[#allocation28_spill] sm:$0xff]  ;;  %v5808_v56 = vld [vmem:[#allocation30_spill] sm:$0xff] }
 0x13b   : > { %v2257_v30 = vadd.f32 %v2255_v28, %v2251_v7  ;;  %v766_v24 = vmul.f32 %v4349_v34, %v4675_v40  ;;  %v4821_v26 = vadd.f32 %v2219_v47, %v2215_v63  ;;  %v2258_v12 = vadd.f32 %v2256_v52, %v2252_v54  ;;  %v5807_v34 = vld [vmem:[#allocation29_spill] sm:$0xff]  ;;  %v5809_v52 = vld [vmem:[#allocation6_spill] sm:$0xff] }
 0x13c   : > { %v4823_v4 = vadd.f32 %v2220_v60, %v2216_v36  ;;  %v765_v27 = vmul.f32 %v5805_v22, %v4688_v32  ;;  %780 = vst.msk [vmem:[#allocation2 + $0x50] sm:$0xff] %vm769_vm2, %v763_v42  ;;  %v640_v61 = vmax.f32 %v4670_v53, 0.0  ;;  %v617_v39 = vadd.f32 %v4376_v46, %v5806_v31  ;;  %v5810_v22 = vld [vmem:[#allocation5_spill] sm:$0xff] }
 0x13d   : > { %v4827_v13 = vadd.f32 %v2261_v23, %v2257_v30  ;;  %783 = vst.msk [vmem:[#allocation2 + $0x68] sm:$0xff] %vm769_vm2, %v766_v24  ;;  %v922_v40 = vadd.f32 %v5807_v34, %v4376_v46  ;;  %v4836_v5 = vadd.f32 %v2262_v41, %v2258_v12  ;;  %v917_v32 = vadd.f32 %v4376_v46, %v5808_v56  ;;  %v5812_v56 = vld [vmem:[#allocation7_spill] sm:$0xff] }
 0x13e   : > { %782 = vst.msk [vmem:[#allocation2 + $0x60] sm:$0xff] %vm769_vm2, %v765_v27  ;;  %v932_v0 = vadd.f32 %v4592_v33, %v4376_v46  ;;  %v927_v47 = vadd.f32 %v4376_v46, %v4601_v37  ;;  %v656_v53 = vmin.f32 %v640_v61, 6.0  ;;  %v639_v60 = vmax.f32 %v617_v39, 0.0 }
 0x13f   : > { %v996_v7 = vmax.f32 %v922_v40, 0.0  ;;  %v942_v54 = vadd.f32 %v4619_v6, %v4376_v46  ;;  %v995_v28 = vmax.f32 %v917_v32, 0.0  ;;  %v937_v36 = vadd.f32 %v4376_v46, %v4625_v62  ;;  %v5811_v6 = vld [vmem:[#allocation8_spill] sm:$0xff] }
 0x140   : > { %v998_v3 = vmax.f32 %v932_v0, 0.0  ;;  %v997_v63 = vmax.f32 %v927_v47, 0.0  ;;  %v768_v23 = vmul.f32 %v5809_v52, %v656_v53  ;;  %v655_v30 = vmin.f32 %v639_v60, 6.0  ;;  %v5813_v0 = vld [vmem:[#allocation10_spill] sm:$0xff]  ;;  %v5814_v53 = vld [vmem:[#allocation9_spill] sm:$0xff] }
 0x141   : > { %v1012_v41 = vmin.f32 %v996_v7, 6.0  ;;  %v1000_v33 = vmax.f32 %v942_v54, 0.0  ;;  %v1011_v42 = vmin.f32 %v995_v28, 6.0  ;;  %v999_v12 = vmax.f32 %v937_v36, 0.0 }
 0x142   : > { %v1014_v24 = vmin.f32 %v998_v3, 6.0  ;;  %v1013_v37 = vmin.f32 %v997_v63, 6.0  ;;  %785 = vst.msk [vmem:[#allocation2 + $0x78] sm:$0xff] %vm769_vm2, %v768_v23  ;;  %v767_v27 = vmul.f32 %v5810_v22, %v655_v30  ;;  %v4857_v62 = vadd.f32 %v4376_v46, %v4644_v17 }
 0x143   : > { %v1124_v61 = vmul.f32 %v5811_v6, %v1012_v41  ;;  %v4853_v31 = vmin.f32 %v1000_v33, 6.0  ;;  %v1624_v39 = vld [vmem:[#allocation2 + $0x50] sm:$0xff]  ;;  %v1123_v32 = vmul.f32 %v5812_v56, %v1011_v42  ;;  %v4862_v7 = vmin.f32 %v999_v12, 6.0 }
 0x144   : > { %v1629_v34 = vld [vmem:[#allocation2 + $0x49] sm:$0xff]  ;;  %v1630_v40 = vld [vmem:[#allocation2 + $0x51] sm:$0xff]  ;;  %v1126_v47 = vmul.f32 %v5813_v0, %v1014_v24  ;;  %v1125_v60 = vmul.f32 %v5814_v53, %v1013_v37  ;;  %v1626_v54 = vmul.f32 %v4431_v10, %v1624_v39  ;;  %v1668_v17 = vmul.f32 %v4426_v9, %v1624_v39  ;;  %784 = vst.msk [vmem:[#allocation2 + $0x70] sm:$0xff] %vm769_vm2, %v767_v27 }
 0x145   : > { %v1631_v28 = vmul.f32 %v4452_v19, %v1629_v34  ;;  %v1632_v3 = vmul.f32 %v4452_v19, %v1630_v40  ;;  %v1635_v63 = vld [vmem:[#allocation2 + $0x4a] sm:$0xff]  ;;  %v1636_v46 = vld [vmem:[#allocation2 + $0x52] sm:$0xff]  ;;  %1140 = vst.msk [vmem:[#allocation2 + $0x88] sm:$0xff] %vm769_vm2, %v1124_v61  ;;  %v1673_v23 = vmul.f32 %v4442_v16, %v1629_v34  ;;  %v1674_v30 = vmul.f32 %v4442_v16, %v1630_v40  ;;  %v1683_v37 = vld [vmem:[#allocation2 + $0x5a] sm:$0xff] }
 0x146   : > { %v4871_v36 = vmul.f32 %v4457_v20, %v1635_v63  ;;  %v4874_v52 = vmul.f32 %v4457_v20, %v1636_v46  ;;  %1139 = vst.msk [vmem:[#allocation2 + $0x80] sm:$0xff] %vm769_vm2, %v1123_v32  ;;  %1142 = vst.msk [vmem:[#allocation2 + $0x98] sm:$0xff] %vm769_vm2, %v1126_v47  ;;  %v1628_v41 = vadd.f32 %v1626_v54, %v4799_v57  ;;  %v1684_v61 = vld [vmem:[#allocation2 + $0x62] sm:$0xff] }
 0x147   : > { %1141 = vst.msk [vmem:[#allocation2 + $0x90] sm:$0xff] %vm769_vm2, %v1125_v60  ;;  %v4883_v33 = vadd.f32 %v1631_v28, %v4760_v21  ;;  %v1670_v42 = vadd.f32 %v1668_v17, %v4792_v49  ;;  %v1679_v24 = vmul.f32 %v4447_v18, %v1635_v63  ;;  %v1675_v12 = vadd.f32 %v1673_v23, %v4770_v29  ;;  %v1689_v56 = vld [vmem:[#allocation2 + $0x5b] sm:$0xff]  ;;  %v1690_v0 = vld [vmem:[#allocation2 + $0x63] sm:$0xff] }
 0x148   : > { %v1680_v22 = vmul.f32 %v4447_v18, %v1636_v46  ;;  %v1712_v27 = vmul.f32 %v4406_v59, %v1624_v39  ;;  %v1715_v6 = vmul.f32 %v4412_v2, %v1629_v34  ;;  %v4891_v32 = vadd.f32 %v1632_v3, %v1628_v41  ;;  %v1695_v47 = vld [vmem:[#allocation2 + $0x5c] sm:$0xff]  ;;  %v1696_v54 = vld [vmem:[#allocation2 + $0x64] sm:$0xff] }
 0x149   : > { %v1676_v57 = vadd.f32 %v1674_v30, %v1670_v42  ;;  %v1716_v21 = vmul.f32 %v4412_v2, %v1630_v40  ;;  %v1721_v49 = vmul.f32 %v4417_v25, %v1635_v63  ;;  %v1681_v53 = vadd.f32 %v1679_v24, %v1675_v12 }
 0x14a   : > { %v1717_v29 = vadd.f32 %v1715_v6, %v4764_v15  ;;  %v1722_v60 = vmul.f32 %v4417_v25, %v1636_v46  ;;  %v1685_v39 = vmul.f32 %v4431_v10, %v1683_v37  ;;  %v1686_v3 = vmul.f32 %v4431_v10, %v1684_v61 }
 0x14b   : > { %v1682_v34 = vadd.f32 %v1680_v22, %v1676_v57  ;;  %v1718_v28 = vadd.f32 %v1716_v21, %v1712_v27  ;;  %v1691_v17 = vmul.f32 %v4452_v19, %v1689_v56  ;;  %v1692_v63 = vmul.f32 %v4452_v19, %v1690_v0  ;;  %v1756_v11 = vld [vmem:[#allocation2 + $0x76] sm:$0xff] }
 0x14c   : > { %v1723_v23 = vadd.f32 %v1721_v49, %v1717_v29  ;;  %v1687_v40 = vadd.f32 %v1685_v39, %v1681_v53  ;;  %v4902_v30 = vmul.f32 %v4457_v20, %v1695_v47  ;;  %v4905_v46 = vmul.f32 %v4457_v20, %v1696_v54  ;;  %v1743_v53 = vld [vmem:[#allocation2 + $0x6c] sm:$0xff]  ;;  %v1744_v29 = vld [vmem:[#allocation2 + $0x74] sm:$0xff] }
 0x14d   : > { %v1724_v41 = vadd.f32 %v1722_v60, %v1718_v28  ;;  %v1688_v15 = vadd.f32 %v1686_v3, %v1682_v34  ;;  %v1727_v42 = vmul.f32 %v4426_v9, %v1683_v37  ;;  %v1728_v12 = vmul.f32 %v4426_v9, %v1684_v61  ;;  %v1749_v3 = vld [vmem:[#allocation2 + $0x6d] sm:$0xff] }
 0x14e   : > { %v4908_v24 = vadd.f32 %v1691_v17, %v1687_v40  ;;  %v1733_v22 = vmul.f32 %v4442_v16, %v1689_v56  ;;  %v1734_v27 = vmul.f32 %v4442_v16, %v1690_v0  ;;  %v1739_v21 = vmul.f32 %v4447_v18, %v1695_v47  ;;  %v1750_v17 = vld [vmem:[#allocation2 + $0x75] sm:$0xff] }
 0x14f   : > { %v4913_v6 = vadd.f32 %v1692_v63, %v1688_v15  ;;  %v1729_v57 = vadd.f32 %v1727_v42, %v1723_v23  ;;  %v1740_v49 = vmul.f32 %v4447_v18, %v1696_v54  ;;  %v1730_v60 = vadd.f32 %v1728_v12, %v1724_v41  ;;  %v1755_v42 = vld [vmem:[#allocation2 + $0x6e] sm:$0xff] }
 0x150   : > { %v1771_v39 = vmul.f32 %v4406_v59, %v1683_v37  ;;  %v1772_v34 = vmul.f32 %v4406_v59, %v1684_v61  ;;  %v1775_v28 = vmul.f32 %v4412_v2, %v1689_v56  ;;  %v1776_v63 = vmul.f32 %v4412_v2, %v1690_v0 }
 0x151   : > { %v1735_v40 = vadd.f32 %v1733_v22, %v1729_v57  ;;  %v1781_v23 = vmul.f32 %v4417_v25, %v1695_v47  ;;  %v1782_v15 = vmul.f32 %v4417_v25, %v1696_v54  ;;  %v1736_v44 = vadd.f32 %v1734_v27, %v1730_v60 }
 0x152   : > { %v1777_v38 = vadd.f32 %v1775_v28, %v1771_v39  ;;  %v1745_v41 = vmul.f32 %v4431_v10, %v1743_v53  ;;  %v1746_v37 = vmul.f32 %v4431_v10, %v1744_v29  ;;  %v1778_v61 = vadd.f32 %v1776_v63, %v1772_v34  ;;  %v1816_v39 = vld [vmem:[#allocation2 + $0x88] sm:$0xff] }
 0x153   : > { %v1741_v59 = vadd.f32 %v1739_v21, %v1735_v40  ;;  %v1751_v56 = vmul.f32 %v4452_v19, %v1749_v3  ;;  %v1752_v12 = vmul.f32 %v4452_v19, %v1750_v17  ;;  %v1742_v22 = vadd.f32 %v1740_v49, %v1736_v44  ;;  %v4953_v40 = vld [vmem:[%s5750_s4 + $0x1] ss:$0 sm:$0xff] }
 0x154   : > { %v1783_v2 = vadd.f32 %v1781_v23, %v1777_v38  ;;  %v4928_v0 = vmul.f32 %v4457_v20, %v1755_v42  ;;  %v4931_v25 = vmul.f32 %v4457_v20, %v1756_v11  ;;  %v1784_v47 = vadd.f32 %v1782_v15, %v1778_v61 }
 0x155   : > { %v1747_v54 = vadd.f32 %v1745_v41, %v1741_v59  ;;  %v1787_v27 = vmul.f32 %v4426_v9, %v1743_v53  ;;  %v1788_v10 = vmul.f32 %v4426_v9, %v1744_v29  ;;  %v1748_v57 = vadd.f32 %v1746_v37, %v1742_v22  ;;  %v4946_v9 = vld [vmem:[%s5750_s4] ss:$0 sm:$0xff]  ;;  %v4960_v41 = vld [vmem:[%s5750_s4 + $0x2] ss:$0 sm:$0xff]  ;;  %v1810_v22 = vld [vmem:[#allocation2 + $0x87] sm:$0xff] }
 0x156   : > { %5815 = vst [vmem:[#allocation4_spill] sm:$0xff] %v4928_v0  ;;  %5816 = vst [vmem:[#allocation28_spill] sm:$0xff] %v4931_v25  ;;  %v1793_v21 = vmul.f32 %v4442_v16, %v1749_v3  ;;  %v1794_v60 = vmul.f32 %v4442_v16, %v1750_v17  ;;  %v1799_v19 = vmul.f32 %v4447_v18, %v1755_v42  ;;  %v1803_v37 = vld [vmem:[#allocation2 + $0x7e] sm:$0xff]  ;;  %v1875_v0 = vld [vmem:[#allocation2 + $0x92] sm:$0xff] }
 0x157   : > { %v4938_v44 = vadd.f32 %v1751_v56, %v1747_v54  ;;  %v1789_v38 = vadd.f32 %v1787_v27, %v1783_v2  ;;  %v1790_v49 = vadd.f32 %v1788_v10, %v1784_v47  ;;  %v1800_v20 = vmul.f32 %v4447_v18, %v1756_v11  ;;  %v1809_v59 = vld [vmem:[#allocation2 + $0x7f] sm:$0xff] }
 0x158   : > { %v4941_v34 = vadd.f32 %v1752_v12, %v1748_v57  ;;  %v1831_v28 = vmul.f32 %v4946_v9, %v1743_v53  ;;  %v1832_v16 = vmul.f32 %v4946_v9, %v1744_v29  ;;  %v1835_v63 = vmul.f32 %v4953_v40, %v1749_v3  ;;  %v1804_v29 = vld [vmem:[#allocation2 + $0x86] sm:$0xff]  ;;  %v4975_v12 = vld [vmem:[%s5750_s4 + $0x5] ss:$0 sm:$0xff] }
 0x159   : > { %5817 = vst [vmem:[#allocation29_spill] sm:$0xff] %v4938_v44  ;;  %v1795_v18 = vadd.f32 %v1793_v21, %v1789_v38  ;;  %v1796_v23 = vadd.f32 %v1794_v60, %v1790_v49  ;;  %v1836_v15 = vmul.f32 %v4953_v40, %v1750_v17  ;;  %v1841_v53 = vmul.f32 %v4960_v41, %v1755_v42  ;;  %v4967_v3 = vld [vmem:[%s5750_s4 + $0x8] ss:$0 sm:$0xff]  ;;  %v1815_v2 = vld [vmem:[#allocation2 + $0x80] sm:$0xff] }
 0x15a   : > { %5818 = vst [vmem:[#allocation30_spill] sm:$0xff] %v4941_v34  ;;  %v1837_v61 = vadd.f32 %v1835_v63, %v1831_v28  ;;  %v1842_v56 = vmul.f32 %v4960_v41, %v1756_v11  ;;  %v4970_v17 = vmul.f32 %v4967_v3, %v1816_v39  ;;  %v1860_v42 = vmul.f32 %v4975_v12, %v1816_v39  ;;  %v4982_v57 = vld [vmem:[%s5750_s4 + $0x6] ss:$0 sm:$0xff]  ;;  %v4989_v38 = vld [vmem:[%s5750_s4 + $0x7] ss:$0 sm:$0xff]  ;;  %v1869_v34 = vld [vmem:[#allocation2 + $0x91] sm:$0xff] }
 0x15b   : > { %v1801_v47 = vadd.f32 %v1799_v19, %v1795_v18  ;;  %v1802_v54 = vadd.f32 %v1800_v20, %v1796_v23  ;;  %v1838_v11 = vadd.f32 %v1836_v15, %v1832_v16  ;;  %v1902_v27 = vmul.f32 %v4960_v41, %v1816_v39  ;;  %v4999_v28 = vld [vmem:[%s5750_s4 + $0x3] ss:$0 sm:$0xff]  ;;  %v5006_v15 = vld [vmem:[%s5750_s4 + $0x4] ss:$0 sm:$0xff] }
 0x15c   : > { %5819 = vst [vmem:[#allocation6_spill] sm:$0xff] %v4970_v17  ;;  %v1843_v10 = vadd.f32 %v1841_v53, %v1837_v61  ;;  %v1805_v21 = vmul.f32 %v4982_v57, %v1803_v37  ;;  %v1806_v60 = vmul.f32 %v4982_v57, %v1804_v29  ;;  %v1811_v19 = vmul.f32 %v4989_v38, %v1809_v59  ;;  %v1864_v17 = vld [vmem:[#allocation2 + $0x98] sm:$0xff] }
 0x15d   : > { %v1844_v49 = vadd.f32 %v1842_v56, %v1838_v11  ;;  %v1812_v20 = vmul.f32 %v4989_v38, %v1810_v22  ;;  %v4994_v39 = vmul.f32 %v4967_v3, %v1815_v2  ;;  %v1847_v16 = vmul.f32 %v4999_v28, %v1803_v37 }
 0x15e   : > { %v1807_v63 = vadd.f32 %v1805_v21, %v1801_v47  ;;  %v1808_v18 = vadd.f32 %v1806_v60, %v1802_v54  ;;  %v1848_v23 = vmul.f32 %v4999_v28, %v1804_v29  ;;  %v1853_v53 = vmul.f32 %v5006_v15, %v1809_v59  ;;  %v1863_v60 = vld [vmem:[#allocation2 + $0x90] sm:$0xff] }
 0x15f   : > { %5820 = vst [vmem:[#allocation5_spill] sm:$0xff] %v4994_v39  ;;  %v1849_v61 = vadd.f32 %v1847_v16, %v1843_v10  ;;  %v1854_v56 = vmul.f32 %v5006_v15, %v1810_v22  ;;  %v1859_v11 = vmul.f32 %v4975_v12, %v1815_v2  ;;  %v1891_v14 = vmul.f32 %v4946_v9, %v1803_v37 }
 0x160   : > { %v5012_v39 = vadd.f32 %v1811_v19, %v1807_v63  ;;  %v5014_v47 = vadd.f32 %v1812_v20, %v1808_v18  ;;  %v1850_v54 = vadd.f32 %v1848_v23, %v1844_v49  ;;  %v1892_v21 = vmul.f32 %v4946_v9, %v1804_v29 }
 0x161   : > { %v1855_v8 = vadd.f32 %v1853_v53, %v1849_v61  ;;  %v1895_v25 = vmul.f32 %v4953_v40, %v1809_v59  ;;  %v1896_v10 = vmul.f32 %v4953_v40, %v1810_v22  ;;  %v1901_v16 = vmul.f32 %v4960_v41, %v1815_v2 }
 0x162   : > { %v1856_v44 = vadd.f32 %v1854_v56, %v1850_v54  ;;  %v1866_v37 = vmul.f32 %v4982_v57, %v1864_v17  ;;  %v1908_v19 = vmul.f32 %v4999_v28, %v1864_v17  ;;  %v5023_v20 = vmul.f32 %v4946_v9, %v1864_v17 }
 0x163   : > { %v1861_v49 = vadd.f32 %v1859_v11, %v1855_v8  ;;  %v1897_v29 = vadd.f32 %v1895_v25, %v1891_v14  ;;  %v1898_v63 = vadd.f32 %v1896_v10, %v1892_v21  ;;  %v1865_v18 = vmul.f32 %v4982_v57, %v1863_v60 }
 0x164   : > { %v1862_v59 = vadd.f32 %v1860_v42, %v1856_v44  ;;  %v1871_v22 = vmul.f32 %v4989_v38, %v1869_v34  ;;  %v5028_v2 = vmul.f32 %v4967_v3, %v1875_v0  ;;  %v1907_v23 = vmul.f32 %v4999_v28, %v1863_v60  ;;  %v2433_v44 = vld [vmem:[%s5752_s6 + $0x20] sm:$0xff]  ;;  %v2434_v42 = vld [vmem:[%s5752_s6 + $0x28] sm:$0xff] }
 0x165   : > { %v1903_v53 = vadd.f32 %v1901_v16, %v1897_v29  ;;  %v1904_v61 = vadd.f32 %v1902_v27, %v1898_v63  ;;  %v1867_v56 = vadd.f32 %v1865_v18, %v1861_v49  ;;  %v1913_v54 = vmul.f32 %v5006_v15, %v1869_v34  ;;  %v1331_v63 = vpop.permute.xlu0 %1330 }
 0x166   : > { %v5032_v17 = vadd.f32 %v1866_v37, %v1862_v59  ;;  %v1919_v8 = vmul.f32 %v4975_v12, %v1875_v0  ;;  %v1951_v14 = vmul.f32 %v4946_v9, %v1863_v60  ;;  %v1955_v25 = vmul.f32 %v4953_v40, %v1869_v34  ;;  %v5821_v60 = vld [vmem:[#allocation12_spill] sm:$0xff]  ;;  %v5822_v34 = vld [vmem:[#allocation11_spill] sm:$0xff] }
 0x167   : > { %v5043_v27 = vadd.f32 %v1908_v19, %v1904_v61  ;;  %v5045_v11 = vadd.f32 %v1871_v22, %v1867_v56  ;;  %v1909_v21 = vadd.f32 %v1907_v23, %v1903_v53  ;;  %v1961_v10 = vmul.f32 %v4960_v41, %v1875_v0  ;;  %v5056_v19 = vld [vmem:[%s5749_s3] ss:$0 sm:$0xff] }
 0x168   : > { %v1957_v16 = vadd.f32 %v1955_v25, %v1951_v14  ;;  %v1128_v37 = vmul.f32 %v5821_v60, %v4853_v31  ;;  %v1127_v49 = vmul.f32 %v5822_v34, %v4862_v7  ;;  %v1301_v29 = vmax.f32 %v4857_v62, 0.0  ;;  %v5823_v22 = vld [vmem:[#allocation31_spill] sm:$0xff]  ;;  %v1336_v60 = vpop.permute.xlu1 %1335 }
 0x169   : > { %v1915_v18 = vadd.f32 %v1913_v54, %v1909_v21  ;;  %v1263_v59 = vadd.f32 %v5056_v19, %v4664_v45  ;;  %v3957_v0 = vpack.c.bf16 %v2434_v42, %v2433_v44  ;;  %v1513_v23 = vadd.f32 %v5823_v22, %v4598_v35  ;;  %v5072_v45 = vld [vmem:[%s5755_s9] sm:$0xff] }
 0x16a   : > { %v5062_v31 = vadd.f32 %v1961_v10, %v1957_v16  ;;  %1144 = vst.msk [vmem:[#allocation2 + $0xa8] sm:$0xff] %vm769_vm2, %v1128_v37  ;;  %1143 = vst.msk [vmem:[#allocation2 + $0xa0] sm:$0xff] %vm769_vm2, %v1127_v49  ;;  %v1310_v62 = vmin.f32 %v1301_v29, 6.0  ;;  %v1268_v7 = vadd.f32 %v5056_v19, %v4690_v1  ;;  %v1524_v53 = vmax.f32 %v4729_v51, 0.0  ;;  %v5825_v54 = vld [vmem:[#allocation35_spill] sm:$0xff]  ;;  %v5826_v51 = vld [vmem:[#allocation36_spill] sm:$0xff]  ;;  %v1341_v29 = vpop.permute.xlu0 %1340 }
 0x16b   : > { %5824 = vst [vmem:[#allocation8_spill] sm:$0xff] %v5072_v45  ;;  %v5074_v61 = vadd.f32 %v1919_v8, %v1915_v18  ;;  %v1302_v35 = vmax.f32 %v1263_v59, 0.0  ;;  %3958 = vmatprep.subr.bf16.mxu1 %v3957_v0  ;;  %v1521_v56 = vadd.f32 %v4722_v55, %v1513_v23  ;;  %v1579_v14 = vadd.f32 %v5825_v54, %v4713_v48 }
 0x16c   : > { %3970 = vmatprep.subr.bf16.mxu0 %v3957_v0  ;;  %v1373_v25 = vmul.f32 %v1331_v63, %v1310_v62  ;;  %3960 = vmatpush3.bf16.msra.mxu1 %v3957_v0  ;;  %v1303_v1 = vmax.f32 %v1268_v7, 0.0  ;;  %v1526_v44 = vmin.f32 %v1524_v53, 6.0  ;;  %v1273_v42 = vadd.f32 %v5056_v19, %v5826_v51 }
 0x16d   : > { %3972 = vmatpush3.bf16.msra.mxu0 %v3957_v0  ;;  %v1311_v21 = vmin.f32 %v1302_v35, 6.0  ;;  %v1523_v10 = vmax.f32 %v1521_v56, 0.0  ;;  %v1581_v8 = vadd.f32 %v4722_v55, %v1579_v14  ;;  %3861 = vmatprep.subr.mxu1 %v5072_v45  ;;  %v1580_v16 = vadd.f32 %v4773_v50, %v4783_v43  ;;  %v5827_v35 = vld [vmem:[#allocation41_spill] sm:$0xff] }
 0x16e   : > { %1382 = vst.msk [vmem:[#allocation2 + $0x100] sm:$0xff] %vm769_vm2, %v1373_v25  ;;  %v1312_v48 = vmin.f32 %v1303_v1, 6.0  ;;  %1528 = vst.msk [vmem:[#allocation3 + $0x8] sm:$0xff] %vm769_vm2, %v1526_v44  ;;  %v1304_v37 = vmax.f32 %v1273_v42, 0.0  ;;  %v1639_v34 = vadd.f32 %v4871_v36, %v4883_v33  ;;  %v5091_v49 = vadd.f32 %v5056_v19, %v4726_v58 }
 0x16f   : > { %v1374_v63 = vmul.f32 %v1336_v60, %v1311_v21  ;;  %v1525_v18 = vmin.f32 %v1523_v10, 6.0  ;;  %v1583_v59 = vmax.f32 %v1581_v8, 0.0  ;;  %v5094_v43 = vadd.f32 %v4722_v55, %v1580_v16 }
 0x170   : > { %v1375_v50 = vmul.f32 %v1341_v29, %v1312_v48  ;;  %v5096_v0 = vmin.f32 %v1304_v37, 6.0  ;;  %v5099_v22 = vadd.f32 %v4722_v55, %v1639_v34  ;;  %v5107_v53 = vadd.f32 %v4874_v52, %v4891_v32 }
 0x171   : > { %v1924_v36 = vld [vmem:[#allocation2 + $0xaa] sm:$0xff]  ;;  %1383 = vst.msk [vmem:[#allocation2 + $0x108] sm:$0xff] %vm769_vm2, %v1374_v63  ;;  %1527 = vst.msk [vmem:[#allocation3] sm:$0xff] %vm769_vm2, %v1525_v18  ;;  %v1585_v58 = vmin.f32 %v1583_v59, 6.0  ;;  %v5111_v56 = vadd.f32 %v5056_v19, %v5827_v35  ;;  %v1870_v44 = vld [vmem:[#allocation2 + $0x99] sm:$0xff] }
 0x172   : > { %v1930_v33 = vld [vmem:[#allocation2 + $0xab] sm:$0xff]  ;;  %v1926_v54 = vmul.f32 %v4982_v57, %v1924_v36  ;;  %v1968_v1 = vmul.f32 %v4999_v28, %v1924_v36  ;;  %v1876_v51 = vld [vmem:[#allocation2 + $0x9a] sm:$0xff]  ;;  %v1923_v42 = vld [vmem:[#allocation2 + $0xa2] sm:$0xff]  ;;  %1384 = vst.msk [vmem:[#allocation2 + $0x110] sm:$0xff] %vm769_vm2, %v1375_v50  ;;  %v2012_v21 = vmul.f32 %v4946_v9, %v1924_v36  ;;  %v1872_v48 = vmul.f32 %v4989_v38, %v1870_v44 }
 0x173   : > { %v1936_v62 = vld [vmem:[#allocation2 + $0xac] sm:$0xff]  ;;  %v5115_v14 = vmul.f32 %v4989_v38, %v1930_v33  ;;  %v1974_v52 = vmul.f32 %v5006_v15, %v1930_v33  ;;  %v2016_v10 = vmul.f32 %v4953_v40, %v1930_v33  ;;  %v1929_v8 = vld [vmem:[#allocation2 + $0xa3] sm:$0xff]  ;;  %1587 = vst.msk [vmem:[#allocation3 + $0x10] sm:$0xff] %vm769_vm2, %v1585_v58  ;;  %v5132_v37 = vmul.f32 %v4967_v3, %v1876_v51 }
 0x174   : > { %v5118_v25 = vmul.f32 %v4967_v3, %v1936_v62  ;;  %v5124_v32 = vmul.f32 %v4975_v12, %v1936_v62  ;;  %v1935_v16 = vld [vmem:[#allocation2 + $0xa4] sm:$0xff]  ;;  %v2022_v60 = vmul.f32 %v4960_v41, %v1936_v62  ;;  %v1914_v34 = vmul.f32 %v5006_v15, %v1870_v44 }
 0x175   : > { %5828 = vst [vmem:[#allocation7_spill] sm:$0xff] %v5115_v14  ;;  %5830 = vst [vmem:[#allocation9_spill] sm:$0xff] %v5132_v37  ;;  %v2018_v29 = vadd.f32 %v2016_v10, %v2012_v21  ;;  %v1920_v63 = vmul.f32 %v4975_v12, %v1876_v51  ;;  %v1925_v18 = vmul.f32 %v4982_v57, %v1923_v42  ;;  %v5832_v14 = vld [vmem:[#allocation23_spill] sm:$0xff]  ;;  %v5833_v37 = vld [vmem:[#allocation24_spill] sm:$0xff] }
 0x176   : > { %5829 = vst [vmem:[#allocation10_spill] sm:$0xff] %v5118_v25  ;;  %v1931_v59 = vmul.f32 %v4989_v38, %v1929_v8  ;;  %v5139_v50 = vadd.f32 %v1872_v48, %v5032_v17  ;;  %v1916_v36 = vadd.f32 %v1914_v34, %v5043_v27  ;;  %v5143_v33 = vmul.f32 %v4967_v3, %v1935_v16  ;;  %v2223_v27 = vld [vmem:[#allocation2 + $0xfc] sm:$0xff]  ;;  %v2439_v25 = vld [vmem:[#allocation3 + $0x8] sm:$0xff] }
 0x177   : > { %v1956_v62 = vmul.f32 %v4953_v40, %v1870_v44  ;;  %v2024_v58 = vadd.f32 %v2022_v60, %v2018_v29  ;;  %v1927_v35 = vadd.f32 %v1925_v18, %v5074_v61  ;;  %v1962_v21 = vmul.f32 %v4960_v41, %v1876_v51  ;;  %v2229_v34 = vld [vmem:[#allocation2 + $0xfd] sm:$0xff] }
 0x178   : > { %5831 = vst [vmem:[#allocation12_spill] sm:$0xff] %v5143_v33  ;;  %v1967_v10 = vmul.f32 %v4999_v28, %v1923_v42  ;;  %v1922_v23 = vadd.f32 %v1920_v63, %v1916_v36  ;;  %v1973_v17 = vmul.f32 %v5006_v15, %v1929_v8  ;;  %v1979_v48 = vmul.f32 %v4975_v12, %v1935_v16  ;;  %v2235_v60 = vld [vmem:[#allocation2 + $0xfe] sm:$0xff]  ;;  %v2438_v29 = vld [vmem:[#allocation3] sm:$0xff] }
 0x179   : > { %v1958_v7 = vadd.f32 %v1956_v62, %v5023_v20  ;;  %v2030_v33 = vadd.f32 %v5832_v14, %v2024_v58  ;;  %v5153_v44 = vadd.f32 %v1931_v59, %v1927_v35  ;;  %v2011_v51 = vmul.f32 %v4946_v9, %v1923_v42  ;;  %3837 = vmatprep.mubr.msk.f32.mxu1 %vm769_vm2, %v2438_v29  ;;  %v2224_v35 = vld [vmem:[#allocation2 + $0x104] sm:$0xff] }
 0x17a   : > { %v1969_v61 = vadd.f32 %v1967_v10, %v5062_v31  ;;  %v5157_v63 = vadd.f32 %v1926_v54, %v1922_v23  ;;  %v2015_v18 = vmul.f32 %v4953_v40, %v1929_v8  ;;  %v2021_v36 = vmul.f32 %v4960_v41, %v1935_v16  ;;  %v2440_v62 = vld [vmem:[#allocation3 + $0x10] sm:$0xff]  ;;  %3838 = vmatmul.mubr.msk.f32.vlgmr.msra.gmra.mrb[10].mxu1 %vm769_vm2, %v2439_v25 }
 0x17b   : > { %v1964_v20 = vadd.f32 %v1962_v21, %v1958_v7  ;;  %v5163_v14 = vadd.f32 %v5833_v37, %v2030_v33  ;;  %v2225_v31 = vmul.f32 %v4982_v57, %v2223_v27  ;;  %v2231_v42 = vmul.f32 %v4989_v38, %v2229_v34  ;;  %3840 = vmatprep.mubr.msk.f32.mxu1 %vm769_vm2, %v2440_v62 }
 0x17c   : > { %v1975_v59 = vadd.f32 %v1973_v17, %v1969_v61  ;;  %v2017_v54 = vadd.f32 %v2015_v18, %v2011_v51  ;;  %v5169_v7 = vmul.f32 %v4967_v3, %v2235_v60  ;;  %v2267_v8 = vmul.f32 %v4999_v28, %v2223_v27  ;;  %3862 = vmatpush3.msra.mxu1 %v5072_v45  ;;  %v2230_v17 = vld [vmem:[#allocation2 + $0x105] sm:$0xff] }
 0x17d   : > { %v1970_v23 = vadd.f32 %v1968_v1, %v1964_v20  ;;  %v2227_v37 = vadd.f32 %v2225_v31, %v4821_v26  ;;  %v2273_v33 = vmul.f32 %v5006_v15, %v2229_v34  ;;  %v2279_v58 = vmul.f32 %v4975_v12, %v2235_v60  ;;  %v2236_v61 = vld [vmem:[#allocation2 + $0x106] sm:$0xff]  ;;  %3923 = vmatprep.subr.mxu1 %v5072_v45 }
 0x17e   : > { %v1981_v16 = vadd.f32 %v1979_v48, %v1975_v59  ;;  %v2023_v1 = vadd.f32 %v2021_v36, %v2017_v54  ;;  %v2269_v21 = vadd.f32 %v2267_v8, %v4827_v13  ;;  %v2311_v10 = vmul.f32 %v4946_v9, %v2223_v27  ;;  %v5834_v48 = vld [vmem:[#allocation13_spill] sm:$0xff]  ;;  %v5835_v18 = vld [vmem:[#allocation16_spill] sm:$0xff] }
 0x17f   : > { %v1976_v25 = vadd.f32 %v1974_v52, %v1970_v23  ;;  %v5183_v26 = vadd.f32 %v2231_v42, %v2227_v37  ;;  %v2315_v29 = vmul.f32 %v4953_v40, %v2229_v34  ;;  %v2321_v20 = vmul.f32 %v4960_v41, %v2235_v60  ;;  %v5836_v23 = vld [vmem:[#allocation20_spill] sm:$0xff]  ;;  %v5837_v34 = vld [vmem:[#allocation17_spill] sm:$0xff] }
 0x180   : > { %v5181_v51 = vadd.f32 %v5834_v48, %v1981_v16  ;;  %v2029_v36 = vadd.f32 %v5835_v18, %v2023_v1  ;;  %v2275_v13 = vadd.f32 %v2273_v33, %v2269_v21  ;;  %v2226_v27 = vmul.f32 %v4982_v57, %v2224_v35  ;;  %v2283_v16 = vld [vmem:[#allocation2 + $0x10e] sm:$0xff] }
 0x181   : > { %v1982_v52 = vadd.f32 %v5124_v32, %v1976_v25  ;;  %v2317_v62 = vadd.f32 %v2315_v29, %v2311_v10  ;;  %v2232_v59 = vmul.f32 %v4989_v38, %v2230_v17  ;;  %v5192_v31 = vmul.f32 %v4967_v3, %v2236_v61  ;;  %v2289_v37 = vld [vmem:[#allocation2 + $0x10f] sm:$0xff] }
 0x182   : > { %v2268_v42 = vmul.f32 %v4999_v28, %v2224_v35  ;;  %v5199_v60 = vadd.f32 %v5837_v34, %v2029_v36  ;;  %v2281_v32 = vadd.f32 %v2279_v58, %v2275_v13  ;;  %v2228_v8 = vadd.f32 %v2226_v27, %v4823_v4  ;;  %v2295_v33 = vld [vmem:[#allocation2 + $0x110] sm:$0xff] }
 0x183   : > { %v5196_v54 = vadd.f32 %v5836_v23, %v1982_v52  ;;  %v2323_v25 = vadd.f32 %v2321_v20, %v2317_v62  ;;  %v2274_v21 = vmul.f32 %v5006_v15, %v2230_v17  ;;  %v2280_v10 = vmul.f32 %v4975_v12, %v2236_v61 }
 0x184   : > { %v2270_v1 = vadd.f32 %v2268_v42, %v4836_v5  ;;  %v5205_v48 = vadd.f32 %v2232_v59, %v2228_v8  ;;  %v2312_v29 = vmul.f32 %v4946_v9, %v2224_v35  ;;  %v2316_v52 = vmul.f32 %v4953_v40, %v2230_v17  ;;  %v1346_v35 = vpop.permute.xlu1 %1345 }
 0x185   : > { %v2322_v58 = vmul.f32 %v4960_v41, %v2236_v61  ;;  %v2285_v4 = vmul.f32 %v4982_v57, %v2283_v16  ;;  %v2291_v36 = vmul.f32 %v4989_v38, %v2289_v37  ;;  %v5213_v20 = vmul.f32 %v4967_v3, %v2295_v33 }
 0x186   : > { %v2276_v18 = vadd.f32 %v2274_v21, %v2270_v1  ;;  %v2318_v5 = vadd.f32 %v2316_v52, %v2312_v29  ;;  %v2327_v13 = vmul.f32 %v4999_v28, %v2283_v16  ;;  %v2333_v27 = vmul.f32 %v5006_v15, %v2289_v37 }
 0x187   : > { %v2339_v62 = vmul.f32 %v4975_v12, %v2295_v33  ;;  %v2287_v17 = vadd.f32 %v2285_v4, %v2281_v32  ;;  %v2371_v61 = vmul.f32 %v4946_v9, %v2283_v16  ;;  %v2375_v42 = vmul.f32 %v4953_v40, %v2289_v37 }
 0x188   : > { %v5218_v59 = vadd.f32 %v2280_v10, %v2276_v18  ;;  %v5222_v23 = vadd.f32 %v2322_v58, %v2318_v5  ;;  %v2329_v34 = vadd.f32 %v2327_v13, %v2323_v25  ;;  %v2381_v8 = vmul.f32 %v4960_v41, %v2295_v33  ;;  %v5842_v13 = vld [vmem:[#allocation4_spill] sm:$0xff] }
 0x189   : > { %v1376_v1 = vmul.f32 %v1346_v35, %v5096_v0  ;;  %v5226_v21 = vadd.f32 %v2291_v36, %v2287_v17  ;;  %v2377_v29 = vadd.f32 %v2375_v42, %v2371_v61  ;;  %v5838_v52 = vmax.f32 %v5094_v43, 0.0  ;;  %v1351_v0 = vpop.permute.xlu0 %1350  ;;  %v5843_v17 = vld [vmem:[#allocation30_spill] sm:$0xff]  ;;  %v5844_v61 = vld [vmem:[#allocation28_spill] sm:$0xff]  ;;  %v5845_v42 = vld [vmem:[#allocation43_spill] sm:$0xff] }
 0x18a   : > { %v1643_v10 = vmax.f32 %v5099_v22, 0.0  ;;  %v2335_v32 = vadd.f32 %v2333_v27, %v2329_v34  ;;  %v5839_v16 = vmax.f32 %v5091_v49, 0.0  ;;  %v1642_v25 = vadd.f32 %v4722_v55, %v5107_v53  ;;  %v1356_v53 = vpop.permute.xlu1 %1355 }
 0x18b   : > { %v1586_v45 = vmin.f32 %v5838_v52, 6.0  ;;  %1385 = vst.msk [vmem:[#allocation2 + $0x118] sm:$0xff] %vm769_vm2, %v1376_v1  ;;  %v1306_v33 = vmax.f32 %v5111_v56, 0.0  ;;  %v5237_v58 = vadd.f32 %v2381_v8, %v2377_v29  ;;  %v1699_v22 = vadd.f32 %v4902_v30, %v4908_v24  ;;  %v5840_v24 = vld [vmem:[#allocation42_spill] sm:$0xff] }
 0x18c   : > { %v1314_v37 = vmin.f32 %v5839_v16, 6.0  ;;  %v1645_v43 = vmin.f32 %v1643_v10, 6.0  ;;  %v1700_v18 = vadd.f32 %v4905_v46, %v4913_v6  ;;  %v5244_v4 = vadd.f32 %v2339_v62, %v2335_v32  ;;  %v5841_v6 = vld [vmem:[#allocation29_spill] sm:$0xff] }
 0x18d   : > { %1588 = vst.msk [vmem:[#allocation3 + $0x18] sm:$0xff] %vm769_vm2, %v1586_v45  ;;  %v1644_v36 = vmax.f32 %v1642_v25, 0.0  ;;  %v1315_v5 = vmin.f32 %v1306_v33, 6.0  ;;  %v1701_v56 = vadd.f32 %v4722_v55, %v1699_v22  ;;  %v5251_v45 = vld [vmem:[%s5751_s5] ss:$0 sm:$0xff]  ;;  %v1288_v46 = vadd.f32 %v5056_v19, %v5840_v24  ;;  %v5846_v16 = vld [vmem:[#allocation5_spill] sm:$0xff] }
 0x18e   : > { %v1377_v49 = vmul.f32 %v1351_v0, %v1314_v37  ;;  %1647 = vst.msk [vmem:[#allocation3 + $0x20] sm:$0xff] %vm769_vm2, %v1645_v43  ;;  %v1702_v30 = vadd.f32 %v5251_v45, %v1700_v18  ;;  %v1759_v27 = vadd.f32 %v5842_v13, %v5841_v6  ;;  %v1760_v55 = vadd.f32 %v5844_v61, %v5843_v17  ;;  %v5847_v25 = vld [vmem:[#allocation6_spill] sm:$0xff] }
 0x18f   : > { %v1646_v62 = vmin.f32 %v1644_v36, 6.0  ;;  %v1378_v35 = vmul.f32 %v1356_v53, %v1315_v5  ;;  %v1293_v34 = vadd.f32 %v5056_v19, %v5845_v42  ;;  %v1703_v8 = vmax.f32 %v1701_v56, 0.0  ;;  %v5848_v5 = vld [vmem:[#allocation48_spill] sm:$0xff] }
 0x190   : > { %1386 = vst.msk [vmem:[#allocation2 + $0x120] sm:$0xff] %vm769_vm2, %v1377_v49  ;;  %v1704_v1 = vmax.f32 %v1702_v30, 0.0  ;;  %v1307_v29 = vmax.f32 %v1288_v46, 0.0  ;;  %v1761_v52 = vadd.f32 %v5251_v45, %v1759_v27  ;;  %v1762_v10 = vadd.f32 %v5251_v45, %v1760_v55  ;;  %v1361_v46 = vpop.permute.xlu0 %1360 }
 0x191   : > { %1648 = vst.msk [vmem:[#allocation3 + $0x28] sm:$0xff] %vm769_vm2, %v1646_v62  ;;  %1387 = vst.msk [vmem:[#allocation2 + $0x128] sm:$0xff] %vm769_vm2, %v1378_v35  ;;  %v1308_v32 = vmax.f32 %v1293_v34, 0.0  ;;  %v5269_v37 = vadd.f32 %v5846_v16, %v5012_v39  ;;  %v5273_v33 = vadd.f32 %v5847_v25, %v5014_v47  ;;  %v1705_v18 = vmin.f32 %v1703_v8, 6.0 }
 0x192   : > { %v2284_v0 = vld [vmem:[#allocation2 + $0x116] sm:$0xff]  ;;  %v1706_v49 = vmin.f32 %v1704_v1, 6.0  ;;  %v1316_v36 = vmin.f32 %v1307_v29, 6.0  ;;  %v5277_v53 = vadd.f32 %v5056_v19, %v5848_v5  ;;  %v1763_v34 = vmax.f32 %v1761_v52, 0.0  ;;  %v1366_v1 = vpop.permute.xlu1 %1365 }
 0x193   : > { %v2290_v43 = vld [vmem:[#allocation2 + $0x117] sm:$0xff]  ;;  %v2286_v56 = vmul.f32 %v4982_v57, %v2284_v0  ;;  %v2328_v47 = vmul.f32 %v4999_v28, %v2284_v0  ;;  %v2372_v27 = vmul.f32 %v4946_v9, %v2284_v0  ;;  %1707 = vst.msk [vmem:[#allocation3 + $0x30] sm:$0xff] %vm769_vm2, %v1705_v18  ;;  %v1317_v8 = vmin.f32 %v1308_v32, 6.0 }
 0x194   : > { %v2296_v22 = vld [vmem:[#allocation2 + $0x118] sm:$0xff]  ;;  %v2292_v30 = vmul.f32 %v4989_v38, %v2290_v43  ;;  %v2441_v24 = vld [vmem:[#allocation3 + $0x18] sm:$0xff]  ;;  %v2334_v6 = vmul.f32 %v5006_v15, %v2290_v43  ;;  %v2376_v19 = vmul.f32 %v4953_v40, %v2290_v43  ;;  %1708 = vst.msk [vmem:[#allocation3 + $0x38] sm:$0xff] %vm769_vm2, %v1706_v49  ;;  %v1379_v55 = vmul.f32 %v1361_v46, %v1316_v36 }
 0x195   : > { %v5282_v39 = vmul.f32 %v4967_v3, %v2296_v22  ;;  %v2340_v13 = vmul.f32 %v4975_v12, %v2296_v22  ;;  %3841 = vmatmul.mubr.msk.f32.gmra.mrb[12].mxu1 %vm769_vm2, %v2441_v24  ;;  %v2288_v62 = vadd.f32 %v2286_v56, %v5218_v59  ;;  %v2330_v35 = vadd.f32 %v2328_v47, %v5222_v23  ;;  %v2442_v61 = vld [vmem:[#allocation3 + $0x20] sm:$0xff] }
 0x196   : > { %v2382_v17 = vmul.f32 %v4960_v41, %v2296_v22  ;;  %v2378_v42 = vadd.f32 %v2376_v19, %v2372_v27  ;;  %3843 = vmatprep.mubr.msk.f32.mxu1 %vm769_vm2, %v2442_v61  ;;  %v1764_v40 = vmax.f32 %v1762_v10, 0.0  ;;  %1388 = vst.msk [vmem:[#allocation2 + $0x130] sm:$0xff] %vm769_vm2, %v1379_v55  ;;  %v1765_v22 = vmin.f32 %v1763_v34, 6.0 }
 0x197   : > { %v2343_v9 = vld [vmem:[#allocation2 + $0x120] sm:$0xff]  ;;  %v5296_v29 = vadd.f32 %v2292_v30, %v2288_v62  ;;  %v2336_v16 = vadd.f32 %v2334_v6, %v2330_v35  ;;  %v1380_v49 = vmul.f32 %v1366_v1, %v1317_v8  ;;  %v1822_v27 = vadd.f32 %v5251_v45, %v5273_v33  ;;  %v5850_v8 = vld [vmem:[#allocation12_spill] sm:$0xff] }
 0x198   : > { %v2345_v25 = vmul.f32 %v4982_v57, %v2343_v9  ;;  %v2387_v59 = vmul.f32 %v4999_v28, %v2343_v9  ;;  %v2384_v41 = vadd.f32 %v2382_v17, %v2378_v42  ;;  %v2443_v23 = vld [vmem:[#allocation3 + $0x28] sm:$0xff]  ;;  %v2344_v0 = vld [vmem:[#allocation2 + $0x128] sm:$0xff]  ;;  %v1766_v18 = vmin.f32 %v1764_v40, 6.0  ;;  %1767 = vst.msk [vmem:[#allocation3 + $0x40] sm:$0xff] %vm769_vm2, %v1765_v22 }
 0x199   : > { %v2349_v43 = vld [vmem:[#allocation2 + $0x121] sm:$0xff]  ;;  %v2342_v52 = vadd.f32 %v2340_v13, %v2336_v16  ;;  %3844 = vmatmul.mubr.msk.f32.gmra.mrb[14].mxu1 %vm769_vm2, %v2443_v23  ;;  %v2346_v36 = vmul.f32 %v4982_v57, %v2344_v0  ;;  %v2388_v47 = vmul.f32 %v4999_v28, %v2344_v0  ;;  %1389 = vst.msk [vmem:[#allocation2 + $0x138] sm:$0xff] %vm769_vm2, %v1380_v49  ;;  %v1309_v35 = vmax.f32 %v5277_v53, 0.0 }
 0x19a   : > { %v2347_v10 = vadd.f32 %v2345_v25, %v5244_v4  ;;  %v2389_v32 = vadd.f32 %v2387_v59, %v5237_v58  ;;  %v2355_v5 = vld [vmem:[#allocation2 + $0x122] sm:$0xff]  ;;  %v2351_v56 = vmul.f32 %v4989_v38, %v2349_v43  ;;  %v2393_v24 = vmul.f32 %v5006_v15, %v2349_v43  ;;  %1768 = vst.msk [vmem:[#allocation3 + $0x48] sm:$0xff] %vm769_vm2, %v1766_v18  ;;  %v2444_v46 = vld [vmem:[#allocation3 + $0x30] sm:$0xff]  ;;  %v1371_v25 = vpop.permute.xlu0 %1370 }
 0x19b   : > { %v5307_v30 = vmul.f32 %v4967_v3, %v2355_v5  ;;  %v2348_v58 = vadd.f32 %v2346_v36, %v2342_v52  ;;  %v2399_v4 = vmul.f32 %v4975_v12, %v2355_v5  ;;  %v2445_v6 = vld [vmem:[#allocation3 + $0x38] sm:$0xff]  ;;  %v1821_v13 = vadd.f32 %v5251_v45, %v5269_v37  ;;  %3846 = vmatprep.mubr.msk.f32.mxu1 %vm769_vm2, %v2444_v46  ;;  %v5849_v37 = vld [vmem:[#allocation9_spill] sm:$0xff]  ;;  %v5852_v5 = vld [vmem:[#allocation10_spill] sm:$0xff] }
 0x19c   : > { %v5319_v28 = vadd.f32 %v2351_v56, %v2347_v10  ;;  %v2390_v19 = vadd.f32 %v2388_v47, %v2384_v41  ;;  %v2395_v62 = vadd.f32 %v2393_v24, %v2389_v32  ;;  %v1824_v61 = vmax.f32 %v1822_v27, 0.0  ;;  %v5851_v16 = vld [vmem:[#allocation7_spill] sm:$0xff]  ;;  %v5853_v47 = vld [vmem:[#allocation14_spill] sm:$0xff] }
 0x19d   : > { %3847 = vmatmul.mubr.msk.f32.gmra.mrb[16].mxu1 %vm769_vm2, %v2445_v6  ;;  %v1823_v17 = vmax.f32 %v1821_v13, 0.0  ;;  %v1879_v55 = vadd.f32 %v5028_v2, %v5045_v11  ;;  %v1880_v42 = vadd.f32 %v5849_v37, %v5139_v50  ;;  %v2350_v33 = vld [vmem:[#allocation2 + $0x129] sm:$0xff]  ;;  %v1318_v40 = vmin.f32 %v1309_v35, 6.0  ;;  %v5856_v37 = vld [vmem:[#allocation18_spill] sm:$0xff] }
 0x19e   : > { %v2401_v9 = vadd.f32 %v2399_v4, %v2395_v62  ;;  %v2356_v34 = vld [vmem:[#allocation2 + $0x12a] sm:$0xff]  ;;  %v1939_v1 = vadd.f32 %v5850_v8, %v5153_v44  ;;  %v1934_v53 = vadd.f32 %v5851_v16, %v5157_v63  ;;  %v2352_v59 = vmul.f32 %v4989_v38, %v2350_v33  ;;  %v5858_v16 = vld [vmem:[#allocation22_spill] sm:$0xff] }
 0x19f   : > { %v5334_v41 = vmul.f32 %v4967_v3, %v2356_v34  ;;  %v2394_v2 = vmul.f32 %v5006_v15, %v2350_v33  ;;  %v2400_v11 = vmul.f32 %v4975_v12, %v2356_v34  ;;  %v1825_v50 = vmin.f32 %v1823_v17, 6.0  ;;  %v2446_v18 = vld [vmem:[#allocation3 + $0x40] sm:$0xff]  ;;  %v5854_v17 = vld [vmem:[#allocation15_spill] sm:$0xff] }
 0x1a0   : > { %v1826_v23 = vmin.f32 %v1824_v61, 6.0  ;;  %v1381_v0 = vmul.f32 %v1371_v25, %v1318_v40  ;;  %v1881_v43 = vadd.f32 %v5251_v45, %v1879_v55  ;;  %v5339_v22 = vadd.f32 %v2352_v59, %v2348_v58  ;;  %v2403_v49 = vld [vmem:[#allocation2 + $0x132] sm:$0xff]  ;;  %3849 = vmatprep.mubr.msk.f32.mxu1 %vm769_vm2, %v2446_v18  ;;  %v5866_v18 = vld [vmem:[#allocation44_spill] sm:$0xff] }
 0x1a1   : > { %v2396_v44 = vadd.f32 %v2394_v2, %v2390_v19  ;;  %v2447_v63 = vld [vmem:[#allocation3 + $0x48] sm:$0xff]  ;;  %v1882_v52 = vadd.f32 %v5251_v45, %v1880_v42  ;;  %v1941_v10 = vadd.f32 %v5251_v45, %v1939_v1  ;;  %v2405_v15 = vmul.f32 %v4982_v57, %v2403_v49  ;;  %1827 = vst.msk [vmem:[#allocation3 + $0x50] sm:$0xff] %vm769_vm2, %v1825_v50  ;;  %v5859_v25 = vld [vmem:[#allocation26_spill] sm:$0xff]  ;;  %v5862_v50 = vld [vmem:[#allocation32_spill] sm:$0xff] }
 0x1a2   : > { %v2409_v12 = vld [vmem:[#allocation2 + $0x133] sm:$0xff]  ;;  %1828 = vst.msk [vmem:[#allocation3 + $0x58] sm:$0xff] %vm769_vm2, %v1826_v23  ;;  %1390 = vst.msk [vmem:[#allocation2 + $0x140] sm:$0xff] %vm769_vm2, %v1381_v0  ;;  %v1883_v36 = vmax.f32 %v1881_v43, 0.0  ;;  %v1940_v56 = vadd.f32 %v5852_v5, %v1934_v53  ;;  %v1993_v24 = vadd.f32 %v5853_v47, %v5181_v51  ;;  %3850 = vmatmul.mubr.msk.f32.gmra.mrb[18].mxu1 %vm769_vm2, %v2447_v63  ;;  %v5863_v0 = vld [vmem:[#allocation40_spill] sm:$0xff] }
 0x1a3   : > { %v2415_v32 = vld [vmem:[#allocation2 + $0x134] sm:$0xff]  ;;  %v2402_v58 = vadd.f32 %v2400_v11, %v2396_v44  ;;  %v2411_v4 = vmul.f32 %v4989_v38, %v2409_v12  ;;  %v1884_v6 = vmax.f32 %v1882_v52, 0.0  ;;  %v2407_v13 = vadd.f32 %v2405_v15, %v2401_v9  ;;  %v5864_v43 = vld [vmem:[#allocation39_spill] sm:$0xff] }
 0x1a4   : > { %v5354_v46 = vmul.f32 %v4967_v3, %v2415_v32  ;;  %v1885_v27 = vmin.f32 %v1883_v36, 6.0  ;;  %v1943_v19 = vmax.f32 %v1941_v10, 0.0  ;;  %v1942_v62 = vadd.f32 %v5251_v45, %v1940_v56  ;;  %v5855_v55 = vld [vmem:[#allocation21_spill] sm:$0xff]  ;;  %v5861_v2 = vld [vmem:[#allocation38_spill] sm:$0xff]  ;;  %v5867_v32 = vld [vmem:[#allocation27_spill] sm:$0xff] }
 0x1a5   : > { %v1886_v35 = vmin.f32 %v1884_v6, 6.0  ;;  %v1999_v61 = vadd.f32 %v5854_v17, %v1993_v24  ;;  %v1994_v51 = vadd.f32 %v5855_v55, %v5196_v54  ;;  %v2041_v42 = vadd.f32 %v5856_v37, %v5199_v60  ;;  %v5857_v9 = vld [vmem:[#allocation25_spill] sm:$0xff] }
 0x1a6   : > { %v5362_v33 = vadd.f32 %v2411_v4, %v2407_v13  ;;  %1887 = vst.msk [vmem:[#allocation3 + $0x60] sm:$0xff] %vm769_vm2, %v1885_v27  ;;  %v1945_v34 = vmin.f32 %v1943_v19, 6.0  ;;  %v1944_v40 = vmax.f32 %v1942_v62, 0.0  ;;  %v2042_v8 = vadd.f32 %v5857_v9, %v5163_v14  ;;  %v5860_v59 = vld [vmem:[#allocation37_spill] sm:$0xff]  ;;  %v5865_v14 = vld [vmem:[#allocation46_spill] sm:$0xff] }
 0x1a7   : > { %1888 = vst.msk [vmem:[#allocation3 + $0x68] sm:$0xff] %vm769_vm2, %v1886_v35  ;;  %v2001_v1 = vadd.f32 %v5251_v45, %v1999_v61  ;;  %v2000_v53 = vadd.f32 %v5858_v16, %v1994_v51  ;;  %v2047_v54 = vadd.f32 %v5859_v25, %v2041_v42  ;;  %v2119_v60 = vadd.f32 %v5861_v2, %v5860_v59  ;;  %v5868_v4 = vld [vmem:[#allocation33_spill] sm:$0xff]  ;;  %v5869_v61 = vld [vmem:[#allocation19_spill] sm:$0xff]  ;;  %v5870_v51 = vld [vmem:[#allocation34_spill] sm:$0xff] }
 0x1a8   : > { %1947 = vst.msk [vmem:[#allocation3 + $0x70] sm:$0xff] %vm769_vm2, %v1945_v34  ;;  %v1946_v11 = vmin.f32 %v1944_v40, 6.0  ;;  %v2048_v23 = vadd.f32 %v5862_v50, %v2042_v8  ;;  %v2120_v44 = vadd.f32 %v5864_v43, %v5863_v0  ;;  %v2179_v63 = vadd.f32 %v5866_v18, %v5865_v14  ;;  %v2448_v49 = vld [vmem:[#allocation3 + $0x50] sm:$0xff]  ;;  %v2685_v18 = vld [vmem:[%s5405_s19] sm:$0xff] }
 0x1a9   : > { %v2449_v52 = vld [vmem:[#allocation3 + $0x58] sm:$0xff]  ;;  %v2003_v15 = vmax.f32 %v2001_v1, 0.0  ;;  %v2002_v12 = vadd.f32 %v5251_v45, %v2000_v53  ;;  %v2053_v36 = vadd.f32 %v5867_v32, %v2047_v54  ;;  %v2121_v5 = vadd.f32 %v5251_v45, %v2119_v60  ;;  %3852 = vmatprep.mubr.msk.f32.mxu1 %vm769_vm2, %v2448_v49  ;;  %v5872_v1 = vld [vmem:[#allocation45_spill] sm:$0xff] }
 0x1aa   : > { %v2404_v10 = vld [vmem:[#allocation2 + $0x13a] sm:$0xff]  ;;  %1948 = vst.msk [vmem:[#allocation3 + $0x78] sm:$0xff] %vm769_vm2, %v1946_v11  ;;  %v2054_v6 = vadd.f32 %v5868_v4, %v2048_v23  ;;  %v2122_v13 = vadd.f32 %v5251_v45, %v2120_v44  ;;  %v2181_v27 = vadd.f32 %v5251_v45, %v2179_v63  ;;  %3853 = vmatmul.mubr.msk.f32.gmra.mrb[20].mxu1 %vm769_vm2, %v2449_v52 }
 0x1ab   : > { %v2406_v56 = vmul.f32 %v4982_v57, %v2404_v10  ;;  %v2410_v47 = vld [vmem:[#allocation2 + $0x13b] sm:$0xff]  ;;  %v2005_v35 = vmin.f32 %v2003_v15, 6.0  ;;  %v2004_v57 = vmax.f32 %v2002_v12, 0.0  ;;  %v2059_v55 = vadd.f32 %v5869_v61, %v2053_v36 }
 0x1ac   : > { %v2416_v24 = vld [vmem:[#allocation2 + $0x13c] sm:$0xff]  ;;  %v2412_v19 = vmul.f32 %v4989_v38, %v2410_v47  ;;  %v2060_v37 = vadd.f32 %v5870_v51, %v2054_v6  ;;  %v2123_v42 = vmax.f32 %v2121_v5, 0.0  ;;  %v2124_v9 = vmax.f32 %v2122_v13, 0.0  ;;  %v2687_v5 = vld [vmem:[%s5405_s19 + $0x10] sm:$0xff] }
 0x1ad   : > { %v5391_v62 = vmul.f32 %v4967_v3, %v2416_v24  ;;  %v2408_v17 = vadd.f32 %v2406_v56, %v2402_v58  ;;  %v2450_v34 = vld [vmem:[#allocation3 + $0x60] sm:$0xff]  ;;  %2007 = vst.msk [vmem:[#allocation3 + $0x80] sm:$0xff] %vm769_vm2, %v2005_v35  ;;  %v2006_v40 = vmin.f32 %v2004_v57, 6.0  ;;  %v2183_v8 = vmax.f32 %v2181_v27, 0.0  ;;  %v5871_v38 = vld [vmem:[#allocation47_spill] sm:$0xff] }
 0x1ae   : > { %v2180_v3 = vadd.f32 %v5872_v1, %v5871_v38  ;;  %3855 = vmatprep.mubr.msk.f32.mxu1 %vm769_vm2, %v2450_v34  ;;  %v2451_v53 = vld [vmem:[#allocation3 + $0x68] sm:$0xff]  ;;  %v2061_v58 = vadd.f32 %v5251_v45, %v2059_v55  ;;  %v2062_v25 = vadd.f32 %v5251_v45, %v2060_v37  ;;  %v2125_v54 = vmin.f32 %v2123_v42, 6.0  ;;  %v5873_v35 = vld [vmem:[#allocation8_spill] sm:$0xff]  ;;  %v2689_v61 = vld [vmem:[%s5405_s19 + $0x20] sm:$0xff] }
 0x1af   : > { %v2414_v16 = vadd.f32 %v2412_v19, %v2408_v17  ;;  %3856 = vmatmul.mubr.msk.f32.gmra.mrb[22].mxu1 %vm769_vm2, %v2451_v53  ;;  %v2452_v59 = vld [vmem:[#allocation3 + $0x70] sm:$0xff]  ;;  %2008 = vst.msk [vmem:[#allocation3 + $0x88] sm:$0xff] %vm769_vm2, %v2006_v40  ;;  %v2126_v2 = vmin.f32 %v2124_v9, 6.0  ;;  %v2185_v60 = vmin.f32 %v2183_v8, 6.0  ;;  %v2239_v50 = vadd.f32 %v5169_v7, %v5183_v26  ;;  %v2690_v40 = vld [vmem:[%s5405_s19 + $0x28] sm:$0xff]  ;;  %v2691_v8 = vld [vmem:[%s5405_s19 + $0x30] sm:$0xff] }
 0x1b0   : > { %v2182_v11 = vadd.f32 %v5251_v45, %v2180_v3  ;;  %3858 = vmatprep.mubr.msk.f32.mxu1 %vm769_vm2, %v2452_v59  ;;  %v2063_v23 = vmax.f32 %v2061_v58, 0.0  ;;  %v2064_v0 = vmax.f32 %v2062_v25, 0.0  ;;  %2127 = vst.msk [vmem:[#allocation3 + $0xa0] sm:$0xff] %vm769_vm2, %v2125_v54  ;;  %v2240_v43 = vadd.f32 %v5192_v31, %v5205_v48  ;;  %v2692_v1 = vld [vmem:[%s5405_s19 + $0x38] sm:$0xff]  ;;  %v2694_v58 = vld [vmem:[%s5405_s19 + $0x48] sm:$0xff]  ;;  %v2695_v54 = vld [vmem:[%s5405_s19 + $0x50] sm:$0xff] }
 0x1b1   : > { %v2299_v44 = vadd.f32 %v5213_v20, %v5226_v21  ;;  %v2453_v14 = vld [vmem:[#allocation3 + $0x78] sm:$0xff]  ;;  %2128 = vst.msk [vmem:[#allocation3 + $0xa8] sm:$0xff] %vm769_vm2, %v2126_v2  ;;  %2187 = vst.msk [vmem:[#allocation3 + $0xb0] sm:$0xff] %vm769_vm2, %v2185_v60  ;;  %v2241_v26 = vadd.f32 %v5251_v45, %v2239_v50  ;;  %v2300_v63 = vadd.f32 %v5282_v39, %v5296_v29  ;;  %v2686_v39 = vld [vmem:[%s5405_s19 + $0x8] sm:$0xff] }
 0x1b2   : > { %v2184_v7 = vmax.f32 %v2182_v11, 0.0  ;;  %v2359_v49 = vadd.f32 %v5307_v30, %v5319_v28  ;;  %v2065_v31 = vmin.f32 %v2063_v23, 6.0  ;;  %v2066_v48 = vmin.f32 %v2064_v0, 6.0  ;;  %v2696_v2 = vld [vmem:[%s5405_s19 + $0x58] sm:$0xff]  ;;  %v2697_v11 = vld [vmem:[%s5405_s19 + $0x60] sm:$0xff]  ;;  %v2698_v23 = vld [vmem:[%s5405_s19 + $0x68] sm:$0xff] }
 0x1b3   : > { %v2242_v20 = vadd.f32 %v5251_v45, %v2240_v43  ;;  %v2301_v21 = vadd.f32 %v5251_v45, %v2299_v44  ;;  %3859 = vmatmul.mubr.msk.f32.gmra.mrb[24].mxu1 %vm769_vm2, %v2453_v14  ;;  %v2243_v10 = vmax.f32 %v2241_v26, 0.0  ;;  %v2302_v15 = vadd.f32 %v5251_v45, %v2300_v63  ;;  %v2699_v43 = vld [vmem:[%s5405_s19 + $0x70] sm:$0xff]  ;;  %v2700_v14 = vld [vmem:[%s5405_s19 + $0x78] sm:$0xff]  ;;  %v3175_v63 = vld [vmem:[%s5405_s19 + $0x88] sm:$0xff] }
 0x1b4   : > { %v2186_v52 = vmin.f32 %v2184_v7, 6.0  ;;  %v2361_v12 = vadd.f32 %v5251_v45, %v2359_v49  ;;  %v2933_v32 = vld [vmem:[#allocation3 + $0x80] sm:$0xff]  ;;  %3863 = vmatprep.mubr.msk.f32.mxu1 %vm431_vm0, %v2685_v18  ;;  %2067 = vst.msk [vmem:[#allocation3 + $0x90] sm:$0xff] %vm769_vm2, %v2065_v31  ;;  %2068 = vst.msk [vmem:[#allocation3 + $0x98] sm:$0xff] %vm769_vm2, %v2066_v48  ;;  %v2360_v28 = vadd.f32 %v5334_v41, %v5339_v22  ;;  %v3174_v7 = vld [vmem:[%s5405_s19 + $0x80] sm:$0xff] }
 0x1b5   : > { %v2244_v29 = vmax.f32 %v2242_v20, 0.0  ;;  %v2303_v30 = vmax.f32 %v2301_v21, 0.0  ;;  %v2419_v36 = vadd.f32 %v5354_v46, %v5362_v33  ;;  %3899 = vmatprep.mubr.msk.f32.mxu0 %vm769_vm2, %v2933_v32  ;;  %v2245_v56 = vmin.f32 %v2243_v10, 6.0  ;;  %v3176_v49 = vld [vmem:[%s5405_s19 + $0x90] sm:$0xff]  ;;  %v3177_v31 = vld [vmem:[%s5405_s19 + $0x98] sm:$0xff]  ;;  %v3178_v48 = vld [vmem:[%s5405_s19 + $0xa0] sm:$0xff] }
 0x1b6   : > { %2188 = vst.msk [vmem:[#allocation3 + $0xb8] sm:$0xff] %vm769_vm2, %v2186_v52  ;;  %v2304_v47 = vmax.f32 %v2302_v15, 0.0  ;;  %v2363_v24 = vmax.f32 %v2361_v12, 0.0  ;;  %v2420_v4 = vadd.f32 %v5391_v62, %v2414_v16  ;;  %v2934_v6 = vld [vmem:[#allocation3 + $0x88] sm:$0xff]  ;;  %v2362_v41 = vadd.f32 %v5251_v45, %v2360_v28  ;;  %v2688_v62 = vld [vmem:[%s5405_s19 + $0x18] sm:$0xff]  ;;  %v2693_v16 = vld [vmem:[%s5405_s19 + $0x40] sm:$0xff] }
 0x1b7   : > { %v2246_v13 = vmin.f32 %v2244_v29, 6.0  ;;  %v2305_v27 = vmin.f32 %v2303_v30, 6.0  ;;  %v2421_v22 = vadd.f32 %v5251_v45, %v2419_v36  ;;  %3864 = vmatmul.mubr.msk.f32.vlgmr.msra.gmra.mrb[26].mxu1 %vm431_vm0, %v2686_v39  ;;  %3900 = vmatmul.mubr.msk.f32.vlgmr.msra.gmra.mrb[40].mxu0 %vm769_vm2, %v2934_v6  ;;  %2247 = vst.msk [vmem:[#allocation3 + $0xc0] sm:$0xff] %vm769_vm2, %v2245_v56  ;;  %v2937_v9 = vld [vmem:[#allocation3 + $0xa0] sm:$0xff]  ;;  %v3180_v21 = vld [vmem:[%s5405_s19 + $0xb0] sm:$0xff]  ;;  %v3181_v52 = vld [vmem:[%s5405_s19 + $0xb8] sm:$0xff] }
 0x1b8   : > { %v2306_v46 = vmin.f32 %v2304_v47, 6.0  ;;  %v2365_v33 = vmin.f32 %v2363_v24, 6.0  ;;  %v2422_v19 = vadd.f32 %v5251_v45, %v2420_v4  ;;  %3924 = vmatpush3.msra.mxu1 %v5873_v35  ;;  %3866 = vmatprep.mubr.msk.f32.mxu1 %vm431_vm0, %v2687_v5  ;;  %v2364_v57 = vmax.f32 %v2362_v41, 0.0  ;;  %v2938_v38 = vld [vmem:[#allocation3 + $0xa8] sm:$0xff]  ;;  %v2939_v3 = vld [vmem:[#allocation3 + $0xb0] sm:$0xff]  ;;  %v3179_v20 = vld [vmem:[%s5405_s19 + $0xa8] sm:$0xff] }
 0x1b9   : > { %2248 = vst.msk [vmem:[#allocation3 + $0xc8] sm:$0xff] %vm769_vm2, %v2246_v13  ;;  %2307 = vst.msk [vmem:[#allocation3 + $0xd0] sm:$0xff] %vm769_vm2, %v2305_v27  ;;  %v2423_v17 = vmax.f32 %v2421_v22, 0.0  ;;  %v3182_v10 = vld [vmem:[%s5405_s19 + $0xc0] sm:$0xff]  ;;  %v3183_v15 = vld [vmem:[%s5405_s19 + $0xc8] sm:$0xff] }
 0x1ba   : > { %2308 = vst.msk [vmem:[#allocation3 + $0xd8] sm:$0xff] %vm769_vm2, %v2306_v46  ;;  %2367 = vst.msk [vmem:[#allocation3 + $0xe0] sm:$0xff] %vm769_vm2, %v2365_v33  ;;  %v2424_v55 = vmax.f32 %v2422_v19, 0.0  ;;  %v2366_v45 = vmin.f32 %v2364_v57, 6.0  ;;  %v3184_v12 = vld [vmem:[%s5405_s19 + $0xd0] sm:$0xff]  ;;  %v3185_v32 = vld [vmem:[%s5405_s19 + $0xd8] sm:$0xff] }
 0x1bb   : > { %v2425_v51 = vmin.f32 %v2423_v17, 6.0  ;;  %v2935_v37 = vld [vmem:[#allocation3 + $0x90] sm:$0xff]  ;;  %3867 = vmatmul.mubr.msk.f32.gmra.mrb[28].mxu1 %vm431_vm0, %v2688_v62  ;;  %v2936_v34 = vld [vmem:[#allocation3 + $0x98] sm:$0xff]  ;;  %v3187_v29 = vld [vmem:[%s5405_s19 + $0xe8] sm:$0xff] }
 0x1bc   : > { %v2426_v42 = vmin.f32 %v2424_v55, 6.0  ;;  %3902 = vmatprep.mubr.msk.f32.mxu0 %vm769_vm2, %v2935_v37  ;;  %3869 = vmatprep.mubr.msk.f32.mxu1 %vm431_vm0, %v2689_v61  ;;  %2368 = vst.msk [vmem:[#allocation3 + $0xe8] sm:$0xff] %vm769_vm2, %v2366_v45  ;;  %v3186_v39 = vld [vmem:[%s5405_s19 + $0xe0] sm:$0xff]  ;;  %v3188_v30 = vld [vmem:[%s5405_s19 + $0xf0] sm:$0xff]  ;;  %v3189_v28 = vld [vmem:[%s5405_s19 + $0xf8] sm:$0xff] }
 0x1bd   : > { %2427 = vst.msk [vmem:[#allocation3 + $0xf0] sm:$0xff] %vm769_vm2, %v2425_v51  ;;  %3903 = vmatmul.mubr.msk.f32.gmra.mrb[42].mxu0 %vm769_vm2, %v2936_v34  ;;  %v2940_v53 = vld [vmem:[#allocation3 + $0xb8] sm:$0xff] }
 0x1be   : > { %2428 = vst.msk [vmem:[#allocation3 + $0xf8] sm:$0xff] %vm769_vm2, %v2426_v42  ;;  %3905 = vmatprep.mubr.msk.f32.mxu0 %vm769_vm2, %v2937_v9  ;;  %v2941_v25 = vld [vmem:[#allocation3 + $0xc0] sm:$0xff]  ;;  %v5539_v33 = vld [vmem:[%s5753_s7] ss:$0 sm:$0xff] }
 0x1bf   : > { %3870 = vmatmul.mubr.msk.f32.gmra.mrb[30].mxu1 %vm431_vm0, %v2690_v40  ;;  %v5556_v42 = vld [vmem:[%s5756_s10] ss:$0 sm:$0xff] }
 0x1c0   : > { %3872 = vmatprep.mubr.msk.f32.mxu1 %vm431_vm0, %v2691_v8  ;;  %v2942_v59 = vld [vmem:[#allocation3 + $0xc8] sm:$0xff]  ;;  %v2943_v60 = vld [vmem:[#allocation3 + $0xd0] sm:$0xff] }
 0x1c1   : > { %3906 = vmatmul.mubr.msk.f32.gmra.mrb[44].mxu0 %vm769_vm2, %v2938_v38  ;;  %v2944_v50 = vld [vmem:[#allocation3 + $0xd8] sm:$0xff]  ;;  %v2945_v0 = vld [vmem:[#allocation3 + $0xe0] sm:$0xff] }
 0x1c2   : > { %3908 = vmatprep.mubr.msk.f32.mxu0 %vm769_vm2, %v2939_v3 }
 0x1c3   : > { %3873 = vmatmul.mubr.msk.f32.gmra.mrb[32].mxu1 %vm431_vm0, %v2692_v1  ;;  %v2946_v44 = vld [vmem:[#allocation3 + $0xe8] sm:$0xff] }
 0x1c4   : > { %3875 = vmatprep.mubr.msk.f32.mxu1 %vm431_vm0, %v2693_v16  ;;  %v2947_v18 = vld [vmem:[#allocation3 + $0xf0] sm:$0xff] }
 0x1c5   : > { %3909 = vmatmul.mubr.msk.f32.gmra.mrb[46].mxu0 %vm769_vm2, %v2940_v53  ;;  %v2948_v26 = vld [vmem:[#allocation3 + $0xf8] sm:$0xff] }
 0x1c6   : > { %3911 = vmatprep.mubr.msk.f32.mxu0 %vm769_vm2, %v2941_v25 }
 0x1c7   : > { %3876 = vmatmul.mubr.msk.f32.gmra.mrb[34].mxu1 %vm431_vm0, %v2694_v58 }
 0x1c8   : > { %3878 = vmatprep.mubr.msk.f32.mxu1 %vm431_vm0, %v2695_v54 }
 0x1c9   : > { %3912 = vmatmul.mubr.msk.f32.gmra.mrb[48].mxu0 %vm769_vm2, %v2942_v59 }
 0x1ca   : > { %3914 = vmatprep.mubr.msk.f32.mxu0 %vm769_vm2, %v2943_v60 }
 0x1cb   : > { %3879 = vmatmul.mubr.msk.f32.gmra.mrb[36].mxu1 %vm431_vm0, %v2696_v2 }
 0x1cc   : > { %3881 = vmatprep.mubr.msk.f32.mxu1 %vm431_vm0, %v2697_v11 }
 0x1cd   : > { %3915 = vmatmul.mubr.msk.f32.gmra.mrb[50].mxu0 %vm769_vm2, %v2944_v50 }
 0x1ce   : > { %3917 = vmatprep.mubr.msk.f32.mxu0 %vm769_vm2, %v2945_v0 }
 0x1cf   : > { %3882 = vmatmul.mubr.msk.f32.gmra.mrb[38].mxu1 %vm431_vm0, %v2698_v23 }
 0x1d0   : > { %3884 = vmatprep.mubr.msk.f32.mxu1 %vm431_vm0, %v2699_v43 }
 0x1d1   : > { %3918 = vmatmul.mubr.msk.f32.gmra.mrb[52].mxu0 %vm769_vm2, %v2946_v44 }
 0x1d2   : > { %3920 = vmatprep.mubr.msk.f32.mxu0 %vm769_vm2, %v2947_v18 }
 0x1d3   : > { %3885 = vmatmul.mubr.msk.f32.gmra.mrb[40].mxu1 %vm431_vm0, %v2700_v14 }
 0x1d4   : > { %3925 = vmatprep.mubr.msk.f32.mxu1 %vm431_vm0, %v3174_v7 }
 0x1d5   : > { %3921 = vmatmul.mubr.msk.f32.gmra.mrb[54].mxu0 %vm769_vm2, %v2948_v26 }
 0x1d7   : > { %3926 = vmatmul.mubr.msk.f32.vlgmr.msra.gmra.mrb[42].mxu1 %vm431_vm0, %v3175_v63 }
 0x1d8   : > { %3928 = vmatprep.mubr.msk.f32.mxu1 %vm431_vm0, %v3176_v49 }
 0x1db   : > { %3929 = vmatmul.mubr.msk.f32.gmra.mrb[44].mxu1 %vm431_vm0, %v3177_v31 }
 0x1dc   : > { %3931 = vmatprep.mubr.msk.f32.mxu1 %vm431_vm0, %v3178_v48 }
 0x1df   : > { %3932 = vmatmul.mubr.msk.f32.gmra.mrb[46].mxu1 %vm431_vm0, %v3179_v20 }
 0x1e0   : > { %3934 = vmatprep.mubr.msk.f32.mxu1 %vm431_vm0, %v3180_v21 }
 0x1e3   : > { %3935 = vmatmul.mubr.msk.f32.gmra.mrb[48].mxu1 %vm431_vm0, %v3181_v52 }
 0x1e4   : > { %3937 = vmatprep.mubr.msk.f32.mxu1 %vm431_vm0, %v3182_v10 }
 0x1e7   : > { %3938 = vmatmul.mubr.msk.f32.gmra.mrb[50].mxu1 %vm431_vm0, %v3183_v15 }
 0x1e8   : > { %3940 = vmatprep.mubr.msk.f32.mxu1 %vm431_vm0, %v3184_v12 }
 0x1eb   : > { %3941 = vmatmul.mubr.msk.f32.gmra.mrb[52].mxu1 %vm431_vm0, %v3185_v32 }
 0x1ec   : > { %3943 = vmatprep.mubr.msk.f32.mxu1 %vm431_vm0, %v3186_v39 }
 0x1ef   : > { %3944 = vmatmul.mubr.msk.f32.gmra.mrb[54].mxu1 %vm431_vm0, %v3187_v29 }
 0x1f0   : > { %3946 = vmatprep.mubr.msk.f32.mxu1 %vm431_vm0, %v3188_v30 }
 0x1f3   : > { %3947 = vmatmul.mubr.msk.f32.gmra.mrb[56].mxu1 %vm431_vm0, %v3189_v28 }
 0x24d   : > { %v3839_v36 = vpop.f32.mrb[10].mxu1 }
 0x24e   : > { %v2574_v5 = vpop.f32.mrb[11].mxu1  ;;  %v2580_v35 = vadd.f32 %v3839_v36, %v5539_v33 }
 0x24f   : > { %v2575_v57 = vadd.f32 %v5539_v33, %v2574_v5 }
 0x250   : > { %v2654_v61 = vmax.f32 %v2580_v35, 0.0 }
 0x251   : > { %v2653_v51 = vmax.f32 %v2575_v57, 0.0 }
 0x252   : > { %v2670_v9 = vmin.f32 %v2654_v61, 6.0 }
 0x253   : > { %v2669_v53 = vmin.f32 %v2653_v51, 6.0 }
 0x268   : > { %v3842_v56 = vpop.f32.mrb[12].mxu1 }
 0x269   : > { %v2584_v47 = vpop.f32.mrb[13].mxu1  ;;  %v2590_v55 = vadd.f32 %v3842_v56, %v5539_v33 }
 0x26a   : > { %v2585_v37 = vadd.f32 %v5539_v33, %v2584_v47 }
 0x26b   : > { %v2656_v8 = vmax.f32 %v2590_v55, 0.0 }
 0x26c   : > { %v3845_v24 = vpop.f32.mrb[14].mxu1  ;;  %v2655_v58 = vmax.f32 %v2585_v37, 0.0 }
 0x26d   : > { %v2594_v4 = vpop.f32.mrb[15].mxu1  ;;  %v2600_v38 = vadd.f32 %v3845_v24, %v5539_v33  ;;  %v2672_v11 = vmin.f32 %v2656_v8, 6.0 }
 0x26e   : > { %v2595_v25 = vadd.f32 %v5539_v33, %v2594_v4  ;;  %v2671_v44 = vmin.f32 %v2655_v58, 6.0 }
 0x26f   : > { %v2658_v50 = vmax.f32 %v2600_v38, 0.0 }
 0x270   : > { %v3848_v6 = vpop.f32.mrb[16].mxu1  ;;  %v2657_v14 = vmax.f32 %v2595_v25, 0.0 }
 0x271   : > { %v2604_v13 = vpop.f32.mrb[17].mxu1  ;;  %v2610_v23 = vadd.f32 %v3848_v6, %v5539_v33  ;;  %v2674_v20 = vmin.f32 %v2658_v50, 6.0 }
 0x272   : > { %v2605_v18 = vadd.f32 %v5539_v33, %v2604_v13  ;;  %v2673_v12 = vmin.f32 %v2657_v14, 6.0 }
 0x273   : > { %v2660_v21 = vmax.f32 %v2610_v23, 0.0 }
 0x274   : > { %v2659_v32 = vmax.f32 %v2605_v18, 0.0 }
 0x275   : > { %v3851_v27 = vpop.f32.mrb[18].mxu1  ;;  %v2676_v47 = vmin.f32 %v2660_v21, 6.0 }
 0x276   : > { %v2614_v41 = vpop.f32.mrb[19].mxu1  ;;  %v2620_v52 = vadd.f32 %v3851_v27, %v5539_v33  ;;  %v2675_v27 = vmin.f32 %v2659_v32, 6.0 }
 0x277   : > { %v2615_v39 = vadd.f32 %v5539_v33, %v2614_v41 }
 0x278   : > { %v2662_v24 = vmax.f32 %v2620_v52, 0.0 }
 0x279   : > { %v2661_v41 = vmax.f32 %v2615_v39, 0.0 }
 0x27d   : > { %v5532_v22 = vpop.f32.mrb[20].mxu1 }
 0x27e   : > { %v5534_v46 = vpop.f32.mrb[21].mxu1  ;;  %v2630_v4 = vadd.f32 %v5532_v22, %v5539_v33 }
 0x27f   : > { %v2625_v35 = vadd.f32 %v5539_v33, %v5534_v46 }
 0x282   : > { %v5541_v19 = vpop.f32.mrb[22].mxu1 }
 0x283   : > { %v5544_v62 = vpop.f32.mrb[23].mxu1  ;;  %v2640_v8 = vadd.f32 %v5541_v19, %v5539_v33 }
 0x286   : > { %v5547_v17 = vpop.f32.mrb[24].mxu1 }
 0x287   : > { %v5550_v45 = vpop.f32.mrb[25].mxu1  ;;  %v2650_v50 = vadd.f32 %v5547_v17, %v5539_v33 }
 0x28a   : > { %v3865_v34 = vpop.f32.mrb[26].mxu1  ;;  %v5558_v40 = vpop.f32.mrb[40].mxu0 }
 0x28b   : > { %v2827_v1 = vadd.f32 %v3865_v34, %v5556_v42  ;;  %v2821_v3 = vpop.f32.mrb[27].mxu1  ;;  %v5562_v16 = vpop.f32.mrb[41].mxu0  ;;  %v2678_v34 = vmin.f32 %v2662_v24, 6.0  ;;  %v3069_v21 = vadd.f32 %v5558_v40, %v5539_v33 }
 0x28c   : > { %v2822_v54 = vadd.f32 %v5556_v42, %v2821_v3  ;;  %v2663_v3 = vmax.f32 %v2625_v35, 0.0 }
 0x28d   : > { %v2901_v59 = vadd.f32 %v2827_v1, %v2670_v9  ;;  %v2664_v9 = vmax.f32 %v2630_v4, 0.0  ;;  %v2677_v1 = vmin.f32 %v2661_v41, 6.0 }
 0x28e   : > { %v2900_v2 = vadd.f32 %v2822_v54, %v2669_v53  ;;  %v3868_v60 = vpop.f32.mrb[28].mxu1  ;;  %v2635_v53 = vadd.f32 %v5539_v33, %v5544_v62 }
 0x28f   : > { %2918 = vst.msk [vmem:[%s5569_s28 + $0x8] sm:$0xff] %vm2916_vm3, %v2901_v59  ;;  %v2837_v0 = vadd.f32 %v3868_v60, %v5556_v42  ;;  %v2831_v43 = vpop.f32.mrb[29].mxu1  ;;  %v2680_v60 = vmin.f32 %v2664_v9, 6.0 }
 0x290   : > { %2917 = vst.msk [vmem:[%s5569_s28] sm:$0xff] %vm2916_vm3, %v2900_v2  ;;  %v2832_v7 = vadd.f32 %v5556_v42, %v2831_v43  ;;  %v5581_v26 = vpop.f32.mrb[42].mxu0  ;;  %v2665_v43 = vmax.f32 %v2635_v53, 0.0 }
 0x291   : > { %v2903_v63 = vadd.f32 %v2837_v0, %v2672_v11  ;;  %v5583_v49 = vpop.f32.mrb[43].mxu0  ;;  %v2666_v11 = vmax.f32 %v2640_v8, 0.0  ;;  %v2679_v0 = vmin.f32 %v2663_v3, 6.0  ;;  %v3079_v24 = vadd.f32 %v5581_v26, %v5539_v33 }
 0x292   : > { %v2902_v31 = vadd.f32 %v2832_v7, %v2671_v44  ;;  %v3871_v48 = vpop.f32.mrb[30].mxu1  ;;  %v2645_v44 = vadd.f32 %v5539_v33, %v5550_v45 }
 0x293   : > { %2920 = vst.msk [vmem:[%s5569_s28 + $0x18] sm:$0xff] %vm2916_vm3, %v2903_v63  ;;  %v2847_v10 = vadd.f32 %v3871_v48, %v5556_v42  ;;  %v2841_v15 = vpop.f32.mrb[31].mxu1  ;;  %v2682_v48 = vmin.f32 %v2666_v11, 6.0 }
 0x294   : > { %2919 = vst.msk [vmem:[%s5569_s28 + $0x10] sm:$0xff] %vm2916_vm3, %v2902_v31  ;;  %v2842_v29 = vadd.f32 %v5556_v42, %v2841_v15  ;;  %v5593_v30 = vpop.f32.mrb[44].mxu0  ;;  %v2667_v15 = vmax.f32 %v2645_v44, 0.0 }
 0x295   : > { %v2905_v28 = vadd.f32 %v2847_v10, %v2674_v20  ;;  %v5595_v36 = vpop.f32.mrb[45].mxu0  ;;  %v2668_v20 = vmax.f32 %v2650_v50, 0.0  ;;  %v2681_v10 = vmin.f32 %v2665_v43, 6.0  ;;  %v3089_v9 = vadd.f32 %v5593_v30, %v5539_v33 }
 0x296   : > { %v2904_v5 = vadd.f32 %v2842_v29, %v2673_v12  ;;  %v3874_v56 = vpop.f32.mrb[32].mxu1  ;;  %v3064_v12 = vadd.f32 %v5539_v33, %v5562_v16 }
 0x297   : > { %2922 = vst.msk [vmem:[%s5569_s28 + $0x28] sm:$0xff] %vm2916_vm3, %v2905_v28  ;;  %v2857_v6 = vadd.f32 %v3874_v56, %v5556_v42  ;;  %v2851_v13 = vpop.f32.mrb[33].mxu1  ;;  %v2684_v56 = vmin.f32 %v2668_v20, 6.0  ;;  %v3147_v30 = vmax.f32 %v3089_v9, 0.0 }
 0x298   : > { %2921 = vst.msk [vmem:[%s5569_s28 + $0x20] sm:$0xff] %vm2916_vm3, %v2904_v5  ;;  %v2852_v57 = vadd.f32 %v5556_v42, %v2851_v13  ;;  %v5607_v61 = vpop.f32.mrb[46].mxu0  ;;  %v3142_v13 = vmax.f32 %v3064_v12, 0.0 }
 0x299   : > { %v2907_v55 = vadd.f32 %v2857_v6, %v2676_v47  ;;  %v5609_v22 = vpop.f32.mrb[47].mxu0  ;;  %v3143_v47 = vmax.f32 %v3069_v21, 0.0  ;;  %v2683_v6 = vmin.f32 %v2667_v15, 6.0 }
 0x29a   : > { %v2906_v51 = vadd.f32 %v2852_v57, %v2675_v27  ;;  %v3877_v37 = vpop.f32.mrb[34].mxu1  ;;  %v3074_v27 = vadd.f32 %v5539_v33, %v5583_v49 }
 0x29b   : > { %2924 = vst.msk [vmem:[%s5569_s28 + $0x38] sm:$0xff] %vm2916_vm3, %v2907_v55  ;;  %v2867_v46 = vadd.f32 %v3877_v37, %v5556_v42  ;;  %v2861_v38 = vpop.f32.mrb[35].mxu1  ;;  %v3159_v37 = vmin.f32 %v3143_v47, 6.0 }
 0x29c   : > { %2923 = vst.msk [vmem:[%s5569_s28 + $0x30] sm:$0xff] %vm2916_vm3, %v2906_v51  ;;  %v2862_v58 = vadd.f32 %v5556_v42, %v2861_v38  ;;  %v5621_v25 = vpop.f32.mrb[48].mxu0  ;;  %v3144_v38 = vmax.f32 %v3074_v27, 0.0 }
 0x29d   : > { %v2909_v54 = vadd.f32 %v2867_v46, %v2678_v34  ;;  %v5623_v19 = vpop.f32.mrb[49].mxu0  ;;  %v3145_v34 = vmax.f32 %v3079_v24, 0.0  ;;  %v3158_v46 = vmin.f32 %v3142_v13, 6.0 }
 0x29e   : > { %v2908_v59 = vadd.f32 %v2862_v58, %v2677_v1  ;;  %v3880_v2 = vpop.f32.mrb[36].mxu1  ;;  %v3084_v1 = vadd.f32 %v5539_v33, %v5595_v36  ;;  %v3160_v50 = vmin.f32 %v3144_v38, 6.0  ;;  %v3104_v20 = vadd.f32 %v5539_v33, %v5623_v19 }
 0x29f   : > { %2926 = vst.msk [vmem:[%s5569_s28 + $0x48] sm:$0xff] %vm2916_vm3, %v2909_v54  ;;  %v2877_v62 = vadd.f32 %v3880_v2, %v5556_v42  ;;  %v2871_v23 = vpop.f32.mrb[37].mxu1  ;;  %v3099_v2 = vadd.f32 %v5607_v61, %v5539_v33 }
 0x2a0   : > { %2925 = vst.msk [vmem:[%s5569_s28 + $0x40] sm:$0xff] %vm2916_vm3, %v2908_v59  ;;  %v2872_v14 = vadd.f32 %v5556_v42, %v2871_v23  ;;  %v5635_v18 = vpop.f32.mrb[50].mxu0  ;;  %v3161_v59 = vmin.f32 %v3145_v34, 6.0  ;;  %v3146_v36 = vmax.f32 %v3084_v1, 0.0  ;;  %v3150_v19 = vmax.f32 %v3104_v20, 0.0 }
 0x2a1   : > { %v2911_v7 = vadd.f32 %v2877_v62, %v2680_v60  ;;  %v5637_v17 = vpop.f32.mrb[51].mxu0  ;;  %v3094_v62 = vadd.f32 %v5539_v33, %v5609_v22  ;;  %v3149_v61 = vmax.f32 %v3099_v2, 0.0  ;;  %v3119_v12 = vadd.f32 %v5635_v18, %v5539_v33 }
 0x2a2   : > { %v2910_v63 = vadd.f32 %v2872_v14, %v2679_v0  ;;  %v3883_v31 = vpop.f32.mrb[38].mxu1  ;;  %v3163_v14 = vmin.f32 %v3147_v30, 6.0 }
 0x2a3   : > { %2928 = vst.msk [vmem:[%s5569_s28 + $0x58] sm:$0xff] %vm2916_vm3, %v2911_v7  ;;  %v2887_v45 = vadd.f32 %v3883_v31, %v5556_v42  ;;  %v2881_v52 = vpop.f32.mrb[39].mxu1  ;;  %v3109_v7 = vadd.f32 %v5621_v25, %v5539_v33  ;;  %v3148_v22 = vmax.f32 %v3094_v62, 0.0  ;;  %v3165_v15 = vmin.f32 %v3149_v61, 6.0 }
 0x2a4   : > { %2927 = vst.msk [vmem:[%s5569_s28 + $0x50] sm:$0xff] %vm2916_vm3, %v2910_v63  ;;  %v2882_v32 = vadd.f32 %v5556_v42, %v2881_v52  ;;  %v5649_v39 = vpop.f32.mrb[52].mxu0  ;;  %v3153_v18 = vmax.f32 %v3119_v12, 0.0 }
 0x2a5   : > { %v2913_v29 = vadd.f32 %v2887_v45, %v2682_v48  ;;  %v5651_v40 = vpop.f32.mrb[53].mxu0  ;;  %v3162_v48 = vmin.f32 %v3146_v36, 6.0  ;;  %v3151_v25 = vmax.f32 %v3109_v7, 0.0 }
 0x2a6   : > { %v2912_v28 = vadd.f32 %v2882_v32, %v2681_v10  ;;  %v3886_v5 = vpop.f32.mrb[40].mxu1  ;;  %v3169_v9 = vmin.f32 %v3153_v18, 6.0 }
 0x2a7   : > { %2930 = vst.msk [vmem:[%s5569_s28 + $0x68] sm:$0xff] %vm2916_vm3, %v2913_v29  ;;  %v2897_v16 = vadd.f32 %v3886_v5, %v5556_v42  ;;  %v2891_v4 = vpop.f32.mrb[41].mxu1  ;;  %v3114_v5 = vadd.f32 %v5539_v33, %v5637_v17 }
 0x2a8   : > { %2929 = vst.msk [vmem:[%s5569_s28 + $0x60] sm:$0xff] %vm2916_vm3, %v2912_v28  ;;  %v2892_v41 = vadd.f32 %v5556_v42, %v2891_v4  ;;  %v5663_v35 = vpop.f32.mrb[54].mxu0  ;;  %v3164_v28 = vmin.f32 %v3148_v22, 6.0  ;;  %v3167_v4 = vmin.f32 %v3151_v25, 6.0 }
 0x2a9   : > { %v2915_v57 = vadd.f32 %v2897_v16, %v2684_v56  ;;  %v5665_v26 = vpop.f32.mrb[55].mxu0  ;;  %v3152_v17 = vmax.f32 %v3114_v5, 0.0 }
 0x2aa   : > { %v2914_v55 = vadd.f32 %v2892_v41, %v2683_v6  ;;  %v3927_v51 = vpop.f32.mrb[42].mxu1  ;;  %v3129_v6 = vadd.f32 %v5649_v39, %v5539_v33  ;;  %v3166_v41 = vmin.f32 %v3150_v19, 6.0  ;;  %v3134_v1 = vadd.f32 %v5539_v33, %v5665_v26 }
 0x2ab   : > { %2932 = vst.msk [vmem:[%s5569_s28 + $0x78] sm:$0xff] %vm2916_vm3, %v2915_v57  ;;  %v3310_v49 = vadd.f32 %v3927_v51, %v5556_v42  ;;  %v3304_v8 = vpop.f32.mrb[43].mxu1  ;;  %v3124_v57 = vadd.f32 %v5539_v33, %v5651_v40  ;;  %v3168_v40 = vmin.f32 %v3152_v17, 6.0 }
 0x2ac   : > { %2931 = vst.msk [vmem:[%s5569_s28 + $0x70] sm:$0xff] %vm2916_vm3, %v2914_v55  ;;  %v3305_v3 = vadd.f32 %v5556_v42, %v3304_v8  ;;  %v3155_v39 = vmax.f32 %v3129_v6, 0.0 }
 0x2ad   : > { %v3384_v53 = vadd.f32 %v3310_v49, %v3159_v37  ;;  %v3139_v49 = vadd.f32 %v5663_v35, %v5539_v33  ;;  %v3154_v38 = vmax.f32 %v3124_v57, 0.0 }
 0x2ae   : > { %v3383_v58 = vadd.f32 %v3305_v3, %v3158_v46  ;;  %v3930_v54 = vpop.f32.mrb[44].mxu1  ;;  %v3171_v35 = vmin.f32 %v3155_v39, 6.0 }
 0x2af   : > { %3400 = vst.msk [vmem:[%s5569_s28 + $0x88] sm:$0xff] %vm2916_vm3, %v3384_v53  ;;  %v3320_v60 = vadd.f32 %v3930_v54, %v5556_v42  ;;  %v3314_v11 = vpop.f32.mrb[45].mxu1 }
 0x2b0   : > { %3399 = vst.msk [vmem:[%s5569_s28 + $0x80] sm:$0xff] %vm2916_vm3, %v3383_v58  ;;  %v3315_v23 = vadd.f32 %v5556_v42, %v3314_v11  ;;  %v3156_v11 = vmax.f32 %v3134_v1, 0.0 }
 0x2b1   : > { %v3386_v0 = vadd.f32 %v3320_v60, %v3161_v59  ;;  %v3157_v59 = vmax.f32 %v3139_v49, 0.0  ;;  %v3170_v60 = vmin.f32 %v3154_v38, 6.0 }
 0x2b2   : > { %v3385_v43 = vadd.f32 %v3315_v23, %v3160_v50  ;;  %v3933_v44 = vpop.f32.mrb[46].mxu1 }
 0x2b3   : > { %3402 = vst.msk [vmem:[%s5569_s28 + $0x98] sm:$0xff] %vm2916_vm3, %v3386_v0  ;;  %v3330_v63 = vadd.f32 %v3933_v44, %v5556_v42  ;;  %v3324_v31 = vpop.f32.mrb[47].mxu1  ;;  %v3173_v62 = vmin.f32 %v3157_v59, 6.0 }
 0x2b4   : > { %3401 = vst.msk [vmem:[%s5569_s28 + $0x90] sm:$0xff] %vm2916_vm3, %v3385_v43  ;;  %v3325_v21 = vadd.f32 %v5556_v42, %v3324_v31  ;;  %v3172_v43 = vmin.f32 %v3156_v11, 6.0 }
 0x2b5   : > { %v3388_v45 = vadd.f32 %v3330_v63, %v3163_v14 }
 0x2b6   : > { %v3387_v52 = vadd.f32 %v3325_v21, %v3162_v48  ;;  %v3936_v10 = vpop.f32.mrb[48].mxu1 }
 0x2b7   : > { %3404 = vst.msk [vmem:[%s5569_s28 + $0xa8] sm:$0xff] %vm2916_vm3, %v3388_v45  ;;  %v3340_v32 = vadd.f32 %v3936_v10, %v5556_v42  ;;  %v3334_v29 = vpop.f32.mrb[49].mxu1 }
 0x2b8   : > { %3403 = vst.msk [vmem:[%s5569_s28 + $0xa0] sm:$0xff] %vm2916_vm3, %v3387_v52  ;;  %v3335_v56 = vadd.f32 %v5556_v42, %v3334_v29 }
 0x2b9   : > { %v3390_v47 = vadd.f32 %v3340_v32, %v3165_v15 }
 0x2ba   : > { %v3389_v24 = vadd.f32 %v3335_v56, %v3164_v28  ;;  %v3939_v16 = vpop.f32.mrb[50].mxu1 }
 0x2bb   : > { %3406 = vst.msk [vmem:[%s5569_s28 + $0xb8] sm:$0xff] %vm2916_vm3, %v3390_v47  ;;  %v3350_v13 = vadd.f32 %v3939_v16, %v5556_v42  ;;  %v3344_v27 = vpop.f32.mrb[51].mxu1 }
 0x2bc   : > { %3405 = vst.msk [vmem:[%s5569_s28 + $0xb0] sm:$0xff] %vm2916_vm3, %v3389_v24  ;;  %v3345_v55 = vadd.f32 %v5556_v42, %v3344_v27 }
 0x2bd   : > { %v3392_v51 = vadd.f32 %v3350_v13, %v3167_v4 }
 0x2be   : > { %v3391_v37 = vadd.f32 %v3345_v55, %v3166_v41  ;;  %v3942_v34 = vpop.f32.mrb[52].mxu1 }
 0x2bf   : > { %3408 = vst.msk [vmem:[%s5569_s28 + $0xc8] sm:$0xff] %vm2916_vm3, %v3392_v51  ;;  %v3360_v8 = vadd.f32 %v3942_v34, %v5556_v42  ;;  %v3354_v46 = vpop.f32.mrb[53].mxu1 }
 0x2c0   : > { %3407 = vst.msk [vmem:[%s5569_s28 + $0xc0] sm:$0xff] %vm2916_vm3, %v3391_v37  ;;  %v3355_v3 = vadd.f32 %v5556_v42, %v3354_v46 }
 0x2c1   : > { %v3394_v53 = vadd.f32 %v3360_v8, %v3169_v9 }
 0x2c2   : > { %v3393_v58 = vadd.f32 %v3355_v3, %v3168_v40  ;;  %v3945_v54 = vpop.f32.mrb[54].mxu1 }
 0x2c3   : > { %3410 = vst.msk [vmem:[%s5569_s28 + $0xd8] sm:$0xff] %vm2916_vm3, %v3394_v53  ;;  %v3370_v30 = vadd.f32 %v3945_v54, %v5556_v42  ;;  %v3364_v2 = vpop.f32.mrb[55].mxu1 }
 0x2c4   : > { %3409 = vst.msk [vmem:[%s5569_s28 + $0xd0] sm:$0xff] %vm2916_vm3, %v3393_v58  ;;  %v3365_v33 = vadd.f32 %v5556_v42, %v3364_v2 }
 0x2c5   : > { %v3396_v26 = vadd.f32 %v3370_v30, %v3171_v35 }
 0x2c6   : > { %v3395_v50 = vadd.f32 %v3365_v33, %v3170_v60  ;;  %v3948_v36 = vpop.f32.mrb[56].mxu1 }
 0x2c7   : > { %3412 = vst.msk [vmem:[%s5569_s28 + $0xe8] sm:$0xff] %vm2916_vm3, %v3396_v26  ;;  %v3380_v23 = vadd.f32 %v3948_v36, %v5556_v42  ;;  %v3374_v0 = vpop.f32.mrb[57].mxu1 }
 0x2c8   : > { %3411 = vst.msk [vmem:[%s5569_s28 + $0xe0] sm:$0xff] %vm2916_vm3, %v3395_v50  ;;  %v3375_v44 = vadd.f32 %v5556_v42, %v3374_v0 }
 0x2c9   : > { %v3398_v14 = vadd.f32 %v3380_v23, %v3173_v62 }
 0x2ca   : > { %v3397_v61 = vadd.f32 %v3375_v44, %v3172_v43 }
 0x2cb   : > { %3414 = vst.msk [vmem:[%s5569_s28 + $0xf8] sm:$0xff] %vm2916_vm3, %v3398_v14 }
 0x2cc   : > { %3413 = vst.msk [vmem:[%s5569_s28 + $0xf0] sm:$0xff] %vm2916_vm3, %v3397_v61 }
 0x2cd PF: > { %s21_s17 = sadd.s32 1, %s4006_s17  }
 0x2ce   : > { %p18_p4 = scmp.ge.s32.totalorder %s21_s17, 4  }
 0x2d0   :  { %20 = sbr.rel (!%p18_p4) target bundleno = 1 (0x1), region = 105 }

</bundles_post_ra>
